<compile_context>
chip_gen: v5e
topology: v5e:2x2
jax: 0.10.0
libtpu: 0.0.40
codegen_flags: <defaults>
</compile_context>

<pallas_src>
import functools

import jax
import jax.numpy as jnp
from jax import lax
from jax.experimental import pallas as pl
from jax.experimental.pallas import tpu as pltpu


def _hybrid_field_kernel(grid_ref, coords_ref,
                         w1_ref, w2_ref, w3_ref, w4_ref, b_ref,
                         o_ref, *, C, H, W, out_pad):
    """One tile of points.  Lane axis = points, sublane axis = features.

    grid_ref   : (C, H*W)     ground-plan features, spatially flattened
    coords_ref : (3, tile_n)  rows = (x, y, z) per point, in [-1, 1]
    w?_ref     : PyTorch-layout Linear weights (out, in); w4 zero-padded to out_pad rows
    b_ref      : (max(C,out_pad), 4)  column l = bias of MLP layer l (0-padded)
    o_ref      : (out_pad, tile_n)
    """
    HW = H * W
    tn = coords_ref.shape[1]

    x = coords_ref[0:1, :]           # (1, tile_n)  width coordinate
    y = coords_ref[1:2, :]           # height coordinate
    z = coords_ref[2:3, :]

    # ---- bilinear grid_sample (align_corners=False, padding_mode='zeros') ----
    ix = ((x + 1.0) * W - 1.0) * 0.5
    iy = ((y + 1.0) * H - 1.0) * 0.5
    ix0f = jnp.floor(ix)
    iy0f = jnp.floor(iy)
    wx1 = ix - ix0f
    wx0 = 1.0 - wx1
    wy1 = iy - iy0f
    wy0 = 1.0 - wy1
    ix0 = ix0f.astype(jnp.int32)
    iy0 = iy0f.astype(jnp.int32)

    # Separable 2-hot selectors over only W / H sublanes (cheap VPU compares).
    # Out-of-bounds indices (< 0 or >= W/H) never match an iota row, so the
    # zero-padding of grid_sample is automatic -- no clamping or masking needed.
    cols = lax.broadcasted_iota(jnp.int32, (W, tn), 0)     # (W, tile_n)
    rows = lax.broadcasted_iota(jnp.int32, (H, tn), 0)     # (H, tile_n)
    sx = (jnp.where(cols == ix0, wx0, 0.0) +
          jnp.where(cols == ix0 + 1, wx1, 0.0))            # (W, tile_n)
    sy = (jnp.where(rows == iy0, wy0, 0.0) +
          jnp.where(rows == iy0 + 1, wy1, 0.0))            # (H, tile_n)

    # sel[h*W + w, n] = Sy[h, n] * Sx[w, n]  -- single full-size VPU multiply.
    # (W is a multiple of 8 here, so the (H, W, tn)->(H*W, tn) merge is a
    #  layout no-op; lane dim tn is untouched.)
    sel = (sy[:, None, :] * sx[None, :, :]).reshape(HW, tn)   # (HW, tile_n)

    # Gather + bilinear interpolation as one MXU matmul; output is lane-dense.
    feats = jnp.dot(grid_ref[...], sel,
                    preferred_element_type=jnp.float32)        # (C, tile_n)

    # ---- MLP, kept in (feature, tile_n) layout: y = W @ h + b ----
    # Layer 1 input is [features ; z].  Split W1 so the MXU contraction stays
    # at K = C and z enters as one cheap VPU multiply-add.
    h = (jnp.dot(w1_ref[:, 0:C], feats, preferred_element_type=jnp.float32)
         + w1_ref[:, C:C + 1] * z
         + b_ref[0:C, 0:1])
    h = jnp.maximum(h, 0.0)

    h = jnp.dot(w2_ref[...], h, preferred_element_type=jnp.float32) + b_ref[0:C, 1:2]
    h = jnp.maximum(h, 0.0)

    h = jnp.dot(w3_ref[...], h, preferred_element_type=jnp.float32) + b_ref[0:C, 2:3]
    h = jnp.maximum(h, 0.0)

    out = (jnp.dot(w4_ref[...], h, preferred_element_type=jnp.float32)
           + b_ref[0:out_pad, 3:4])
    o_ref[...] = out.astype(o_ref.dtype)


def hybrid_ground_plan_forward(coordinate, grid_param, mlp_params, *, tile_n=1024):
    """coordinate: (B, P, 3); grid_param: (1, C, H, W);
       mlp_params: [(W, b)] * 4 with W in PyTorch (out, in) layout."""
    B, P, _ = coordinate.shape
    _, C, H, W = grid_param.shape
    out_dim = mlp_params[-1][0].shape[0]
    assert mlp_params[0][0].shape == (C, C + 1)

    N = B * P
    n_pad = pl.cdiv(N, tile_n) * tile_n
    coords_t = coordinate.reshape(N, 3).T.astype(jnp.float32)      # (3, N)
    coords_t = jnp.pad(coords_t, ((0, 0), (0, n_pad - N)))         # (3, n_pad)

    grid_flat = grid_param.reshape(C, H * W).astype(jnp.float32)   # (C, HW)

    # Pad the output feature dim up to a multiple of 8 for full-tile stores.
    out_pad = max(8, ((out_dim + 7) // 8) * 8)

    # Pack the four biases into a single (max(C,out_pad), 4) operand.
    bias_dim = max(C, out_pad)
    b_packed = jnp.zeros((bias_dim, 4), jnp.float32)
    for li, (_, b) in enumerate(mlp_params):
        b_packed = b_packed.at[:b.shape[0], li].set(b.astype(jnp.float32))

    w1, w2, w3 = (p[0].astype(jnp.float32) for p in mlp_params[:3])
    w4 = jnp.zeros((out_pad, C), jnp.float32).at[:out_dim, :].set(
        mlp_params[3][0].astype(jnp.float32))

    kernel = functools.partial(_hybrid_field_kernel,
                               C=C, H=H, W=W, out_pad=out_pad)
    const = lambda i: (0, 0)

    out_t = pl.pallas_call(
        kernel,
        out_shape=jax.ShapeDtypeStruct((out_pad, n_pad), jnp.float32),
        grid_spec=pltpu.PrefetchScalarGridSpec(
            num_scalar_prefetch=0,
            grid=(n_pad // tile_n,),
            in_specs=[
                pl.BlockSpec((C, H * W), const),                 # ground plan
                pl.BlockSpec((3, tile_n), lambda i: (0, i)),     # coords tile
                pl.BlockSpec(w1.shape, const),
                pl.BlockSpec(w2.shape, const),
                pl.BlockSpec(w3.shape, const),
                pl.BlockSpec(w4.shape, const),
                pl.BlockSpec(b_packed.shape, const),
            ],
            out_specs=pl.BlockSpec((out_pad, tile_n), lambda i: (0, i)),
        ),
        compiler_params=pltpu.CompilerParams(
            dimension_semantics=("parallel",),
            vmem_limit_bytes=32 * 1024 * 1024),
    )(grid_flat, coords_t, w1, w2, w3, w4, b_packed)

    # TODO(synk): if the downstream consumer can accept (out_dim, N) layout,
    # return out_t[:out_dim, :N] directly and skip this lane-sparse transpose.
    return out_t[:out_dim, :N].T.reshape(B, P, out_dim)


# ----------------------------- reference ------------------------------------
def hybrid_ground_plan_reference(coordinate, grid_param, mlp_params):
    B, P, _ = coordinate.shape
    _, C, H, W = grid_param.shape
    g = grid_param[0]                                          # (C, H, W)
    xy = coordinate[..., :2].reshape(-1, 2)
    z = coordinate[..., 2].reshape(-1, 1)
    x, y = xy[:, 0], xy[:, 1]

    ix = ((x + 1.0) * W - 1.0) * 0.5
    iy = ((y + 1.0) * H - 1.0) * 0.5
    ix0 = jnp.floor(ix)
    iy0 = jnp.floor(iy)
    ix1 = ix0 + 1.0
    iy1 = iy0 + 1.0
    wx1 = ix - ix0
    wx0 = 1.0 - wx1
    wy1 = iy - iy0
    wy0 = 1.0 - wy1

    def corner(iy_f, ix_f, wgt):
        valid = (ix_f >= 0) & (ix_f <= W - 1) & (iy_f >= 0) & (iy_f <= H - 1)
        iyc = jnp.clip(iy_f, 0, H - 1).astype(jnp.int32)
        ixc = jnp.clip(ix_f, 0, W - 1).astype(jnp.int32)
        vals = g[:, iyc, ixc]                                  # (C, N)
        return jnp.where(valid[None, :], vals * wgt[None, :], 0.0)

    feats = (corner(iy0, ix0, wy0 * wx0) + corner(iy0, ix1, wy0 * wx1) +
             corner(iy1, ix0, wy1 * wx0) + corner(iy1, ix1, wy1 * wx1)).T

    h = jnp.concatenate([feats, z], axis=-1)
    for li, (w, b) in enumerate(mlp_params):
        h = h @ w.T + b
        if li < len(mlp_params) - 1:
            h = jnp.maximum(h, 0.0)
    return h.reshape(B, P, -1)


def init_params(key, C, out_dim, H, W):
    """grid ~ 0.1*randn; Linear weights kaiming_normal_(fan_in, relu); bias 0."""
    kg, k1, k2, k3, k4 = jax.random.split(key, 5)
    grid_param = 0.1 * jax.random.normal(kg, (1, C, H, W), dtype=jnp.float32)
    shapes = [(C, C + 1), (C, C), (C, C), (out_dim, C)]
    params = []
    for k, (fo, fi) in zip((k1, k2, k3, k4), shapes):
        std = (2.0 / fi) ** 0.5
        wmat = std * jax.random.normal(k, (fo, fi), dtype=jnp.float32)
        params.append((wmat, jnp.zeros((fo,), jnp.float32)))
    return grid_param, params


if __name__ == "__main__":
    feature_dim = 32
    out_dim = 4
    H = W = 16                       # resolution_per_dim = (16, 16)
    B, P = 1, 2000                   # grid has batch 1, so coordinate batch = 1
    tile_n = 1024                    # 2000 -> 2048 padded -> 2 parallel steps (v7x: both TCs)

    key = jax.random.PRNGKey(0)
    kp, kc = jax.random.split(key)
    grid_param, mlp_params = init_params(kp, feature_dim, out_dim, H, W)
    # Range slightly beyond [-1, 1] to exercise the zero-padding path.
    coordinate = jax.random.uniform(kc, (B, P, 3), jnp.float32, -1.1, 1.1)

    out = hybrid_ground_plan_forward(coordinate, grid_param, mlp_params,
                                     tile_n=tile_n)
    out = jax.block_until_ready(out)

    ref = hybrid_ground_plan_reference(coordinate, grid_param, mlp_params)
    assert out.shape == (B, P, out_dim)
    err = float(jnp.max(jnp.abs(out - ref)))
    assert jnp.allclose(out, ref, atol=1e-4, rtol=1e-4), f"mismatch, max err {err}"

    print("KERNEL_OK")
</pallas_src>

<mosaic_0001>
module attributes {stable_mosaic.version = 11 : i64} {
  func.func @_hybrid_field_kernel(%arg0: i32, %arg1: memref<32x256xf32, #tpu.memory_space<vmem>>, %arg2: memref<3x1024xf32, #tpu.memory_space<vmem>>, %arg3: memref<32x33xf32, #tpu.memory_space<vmem>>, %arg4: memref<32x32xf32, #tpu.memory_space<vmem>>, %arg5: memref<32x32xf32, #tpu.memory_space<vmem>>, %arg6: memref<8x32xf32, #tpu.memory_space<vmem>>, %arg7: memref<32x4xf32, #tpu.memory_space<vmem>>, %arg8: memref<8x1024xf32, #tpu.memory_space<vmem>>) attributes {dimension_semantics = [#tpu.dimension_semantics<parallel>], iteration_bounds = array<i64: 2>, scalar_prefetch = 0 : i64, scratch_operands = 0 : i64, tpu.core_type = #tpu.core_type<tc>, window_params = [{pipeline_mode = #tpu.pipeline_mode<synchronous>, transform_indices = @transform_0, window_bounds = array<i64: 32, 256>}, {transform_indices = @transform_1, window_bounds = array<i64: 3, 1024>}, {pipeline_mode = #tpu.pipeline_mode<synchronous>, transform_indices = @transform_2, window_bounds = array<i64: 32, 33>}, {pipeline_mode = #tpu.pipeline_mode<synchronous>, transform_indices = @transform_3, window_bounds = array<i64: 32, 32>}, {pipeline_mode = #tpu.pipeline_mode<synchronous>, transform_indices = @transform_4, window_bounds = array<i64: 32, 32>}, {pipeline_mode = #tpu.pipeline_mode<synchronous>, transform_indices = @transform_5, window_bounds = array<i64: 8, 32>}, {pipeline_mode = #tpu.pipeline_mode<synchronous>, transform_indices = @transform_6, window_bounds = array<i64: 32, 4>}, {transform_indices = @transform_7, window_bounds = array<i64: 8, 1024>}]} {
    %c0 = arith.constant 0 : index
    %c0_0 = arith.constant 0 : index
    %0 = vector.load %arg2[%c0, %c0_0] : memref<3x1024xf32, #tpu.memory_space<vmem>>, vector<1x1024xf32>
    %c1 = arith.constant 1 : index
    %c0_1 = arith.constant 0 : index
    %1 = vector.load %arg2[%c1, %c0_1] : memref<3x1024xf32, #tpu.memory_space<vmem>>, vector<1x1024xf32>
    %c2 = arith.constant 2 : index
    %c0_2 = arith.constant 0 : index
    %2 = vector.load %arg2[%c2, %c0_2] : memref<3x1024xf32, #tpu.memory_space<vmem>>, vector<1x1024xf32>
    %cst = arith.constant 1.000000e+00 : f32
    %3 = vector.broadcast %cst : f32 to vector<1x1024xf32>
    %4 = arith.addf %0, %3 : vector<1x1024xf32>
    %cst_3 = arith.constant 1.600000e+01 : f32
    %5 = vector.broadcast %cst_3 : f32 to vector<1x1024xf32>
    %6 = arith.mulf %4, %5 : vector<1x1024xf32>
    %cst_4 = arith.constant 1.000000e+00 : f32
    %7 = vector.broadcast %cst_4 : f32 to vector<1x1024xf32>
    %8 = arith.subf %6, %7 : vector<1x1024xf32>
    %cst_5 = arith.constant 5.000000e-01 : f32
    %9 = vector.broadcast %cst_5 : f32 to vector<1x1024xf32>
    %10 = arith.mulf %8, %9 : vector<1x1024xf32>
    %cst_6 = arith.constant 1.000000e+00 : f32
    %11 = vector.broadcast %cst_6 : f32 to vector<1x1024xf32>
    %12 = arith.addf %1, %11 : vector<1x1024xf32>
    %cst_7 = arith.constant 1.600000e+01 : f32
    %13 = vector.broadcast %cst_7 : f32 to vector<1x1024xf32>
    %14 = arith.mulf %12, %13 : vector<1x1024xf32>
    %cst_8 = arith.constant 1.000000e+00 : f32
    %15 = vector.broadcast %cst_8 : f32 to vector<1x1024xf32>
    %16 = arith.subf %14, %15 : vector<1x1024xf32>
    %cst_9 = arith.constant 5.000000e-01 : f32
    %17 = vector.broadcast %cst_9 : f32 to vector<1x1024xf32>
    %18 = arith.mulf %16, %17 : vector<1x1024xf32>
    %19 = math.floor %10 : vector<1x1024xf32>
    %20 = math.floor %18 : vector<1x1024xf32>
    %21 = arith.subf %10, %19 : vector<1x1024xf32>
    %cst_10 = arith.constant 1.000000e+00 : f32
    %22 = vector.broadcast %cst_10 : f32 to vector<1x1024xf32>
    %23 = arith.subf %22, %21 : vector<1x1024xf32>
    %24 = arith.subf %18, %20 : vector<1x1024xf32>
    %cst_11 = arith.constant 1.000000e+00 : f32
    %25 = vector.broadcast %cst_11 : f32 to vector<1x1024xf32>
    %26 = arith.subf %25, %24 : vector<1x1024xf32>
    %27 = arith.fptosi %19 : vector<1x1024xf32> to vector<1x1024xi32>
    %28 = arith.fptosi %20 : vector<1x1024xf32> to vector<1x1024xi32>
    %29 = tpu.iota {dimensions = array<i32: 0>} : vector<16x1024xi32>
    %30 = tpu.iota {dimensions = array<i32: 0>} : vector<16x1024xi32>
    %31 = vector.broadcast %27 : vector<1x1024xi32> to vector<16x1024xi32>
    %32 = arith.cmpi eq, %29, %31 : vector<16x1024xi32>
    %cst_12 = arith.constant 0.000000e+00 : f32
    %33 = vector.shape_cast %23 : vector<1x1024xf32> to vector<1x1024xf32>
    %34 = vector.broadcast %33 : vector<1x1024xf32> to vector<16x1024xf32>
    %35 = vector.broadcast %cst_12 : f32 to vector<16x1024xf32>
    %36 = arith.select %32, %34, %35 : vector<16x1024xi1>, vector<16x1024xf32>
    %c1_i32 = arith.constant 1 : i32
    %37 = vector.broadcast %c1_i32 : i32 to vector<1x1024xi32>
    %38 = arith.addi %27, %37 : vector<1x1024xi32>
    %39 = vector.broadcast %38 : vector<1x1024xi32> to vector<16x1024xi32>
    %40 = arith.cmpi eq, %29, %39 : vector<16x1024xi32>
    %cst_13 = arith.constant 0.000000e+00 : f32
    %41 = vector.shape_cast %21 : vector<1x1024xf32> to vector<1x1024xf32>
    %42 = vector.broadcast %41 : vector<1x1024xf32> to vector<16x1024xf32>
    %43 = vector.broadcast %cst_13 : f32 to vector<16x1024xf32>
    %44 = arith.select %40, %42, %43 : vector<16x1024xi1>, vector<16x1024xf32>
    %45 = arith.addf %36, %44 : vector<16x1024xf32>
    %46 = vector.broadcast %28 : vector<1x1024xi32> to vector<16x1024xi32>
    %47 = arith.cmpi eq, %30, %46 : vector<16x1024xi32>
    %cst_14 = arith.constant 0.000000e+00 : f32
    %48 = vector.shape_cast %26 : vector<1x1024xf32> to vector<1x1024xf32>
    %49 = vector.broadcast %48 : vector<1x1024xf32> to vector<16x1024xf32>
    %50 = vector.broadcast %cst_14 : f32 to vector<16x1024xf32>
    %51 = arith.select %47, %49, %50 : vector<16x1024xi1>, vector<16x1024xf32>
    %c1_i32_15 = arith.constant 1 : i32
    %52 = vector.broadcast %c1_i32_15 : i32 to vector<1x1024xi32>
    %53 = arith.addi %28, %52 : vector<1x1024xi32>
    %54 = vector.broadcast %53 : vector<1x1024xi32> to vector<16x1024xi32>
    %55 = arith.cmpi eq, %30, %54 : vector<16x1024xi32>
    %cst_16 = arith.constant 0.000000e+00 : f32
    %56 = vector.shape_cast %24 : vector<1x1024xf32> to vector<1x1024xf32>
    %57 = vector.broadcast %56 : vector<1x1024xf32> to vector<16x1024xf32>
    %58 = vector.broadcast %cst_16 : f32 to vector<16x1024xf32>
    %59 = arith.select %55, %57, %58 : vector<16x1024xi1>, vector<16x1024xf32>
    %60 = arith.addf %51, %59 : vector<16x1024xf32>
    %61 = vector.shape_cast %60 : vector<16x1024xf32> to vector<16x1x1024xf32>
    %62 = vector.shape_cast %45 : vector<16x1024xf32> to vector<1x16x1024xf32>
    %63 = vector.broadcast %61 : vector<16x1x1024xf32> to vector<16x16x1024xf32>
    %64 = vector.broadcast %62 : vector<1x16x1024xf32> to vector<16x16x1024xf32>
    %65 = arith.mulf %63, %64 : vector<16x16x1024xf32>
    %66 = vector.shape_cast %65 : vector<16x16x1024xf32> to vector<256x1024xf32>
    %c0_17 = arith.constant 0 : index
    %c0_18 = arith.constant 0 : index
    %67 = vector.load %arg1[%c0_17, %c0_18] : memref<32x256xf32, #tpu.memory_space<vmem>>, vector<32x256xf32>
    %cst_19 = arith.constant dense<0.000000e+00> : vector<32x1024xf32>
    %68 = tpu.matmul %67, %66, %cst_19 {dimension_numbers = #tpu.dot_dimension_numbers<[1], [0], [0], [1], [0, 0, 1, 1], [], []>} : vector<32x256xf32>, vector<256x1024xf32>, vector<32x1024xf32> -> vector<32x1024xf32>
    %c0_20 = arith.constant 0 : index
    %c0_21 = arith.constant 0 : index
    %69 = vector.load %arg3[%c0_20, %c0_21] : memref<32x33xf32, #tpu.memory_space<vmem>>, vector<32x32xf32>
    %cst_22 = arith.constant dense<0.000000e+00> : vector<32x1024xf32>
    %70 = tpu.matmul %69, %68, %cst_22 {dimension_numbers = #tpu.dot_dimension_numbers<[1], [0], [0], [1], [0, 0, 1, 1], [], []>} : vector<32x32xf32>, vector<32x1024xf32>, vector<32x1024xf32> -> vector<32x1024xf32>
    %c0_23 = arith.constant 0 : index
    %c32 = arith.constant 32 : index
    %71 = vector.load %arg3[%c0_23, %c32] : memref<32x33xf32, #tpu.memory_space<vmem>>, vector<32x1xf32>
    %72 = vector.broadcast %71 : vector<32x1xf32> to vector<32x1024xf32>
    %73 = vector.broadcast %2 : vector<1x1024xf32> to vector<32x1024xf32>
    %74 = arith.mulf %72, %73 : vector<32x1024xf32>
    %75 = arith.addf %70, %74 : vector<32x1024xf32>
    %c0_24 = arith.constant 0 : index
    %c0_25 = arith.constant 0 : index
    %76 = vector.load %arg7[%c0_24, %c0_25] : memref<32x4xf32, #tpu.memory_space<vmem>>, vector<32x1xf32>
    %77 = vector.broadcast %76 : vector<32x1xf32> to vector<32x1024xf32>
    %78 = arith.addf %75, %77 : vector<32x1024xf32>
    %cst_26 = arith.constant 0.000000e+00 : f32
    %79 = vector.broadcast %cst_26 : f32 to vector<32x1024xf32>
    %80 = arith.maximumf %78, %79 : vector<32x1024xf32>
    %c0_27 = arith.constant 0 : index
    %c0_28 = arith.constant 0 : index
    %81 = vector.load %arg4[%c0_27, %c0_28] : memref<32x32xf32, #tpu.memory_space<vmem>>, vector<32x32xf32>
    %cst_29 = arith.constant dense<0.000000e+00> : vector<32x1024xf32>
    %82 = tpu.matmul %81, %80, %cst_29 {dimension_numbers = #tpu.dot_dimension_numbers<[1], [0], [0], [1], [0, 0, 1, 1], [], []>} : vector<32x32xf32>, vector<32x1024xf32>, vector<32x1024xf32> -> vector<32x1024xf32>
    %c0_30 = arith.constant 0 : index
    %c1_31 = arith.constant 1 : index
    %83 = vector.load %arg7[%c0_30, %c1_31] : memref<32x4xf32, #tpu.memory_space<vmem>>, vector<32x1xf32>
    %84 = vector.broadcast %83 : vector<32x1xf32> to vector<32x1024xf32>
    %85 = arith.addf %82, %84 : vector<32x1024xf32>
    %cst_32 = arith.constant 0.000000e+00 : f32
    %86 = vector.broadcast %cst_32 : f32 to vector<32x1024xf32>
    %87 = arith.maximumf %85, %86 : vector<32x1024xf32>
    %c0_33 = arith.constant 0 : index
    %c0_34 = arith.constant 0 : index
    %88 = vector.load %arg5[%c0_33, %c0_34] : memref<32x32xf32, #tpu.memory_space<vmem>>, vector<32x32xf32>
    %cst_35 = arith.constant dense<0.000000e+00> : vector<32x1024xf32>
    %89 = tpu.matmul %88, %87, %cst_35 {dimension_numbers = #tpu.dot_dimension_numbers<[1], [0], [0], [1], [0, 0, 1, 1], [], []>} : vector<32x32xf32>, vector<32x1024xf32>, vector<32x1024xf32> -> vector<32x1024xf32>
    %c0_36 = arith.constant 0 : index
    %c2_37 = arith.constant 2 : index
    %90 = vector.load %arg7[%c0_36, %c2_37] : memref<32x4xf32, #tpu.memory_space<vmem>>, vector<32x1xf32>
    %91 = vector.broadcast %90 : vector<32x1xf32> to vector<32x1024xf32>
    %92 = arith.addf %89, %91 : vector<32x1024xf32>
    %cst_38 = arith.constant 0.000000e+00 : f32
    %93 = vector.broadcast %cst_38 : f32 to vector<32x1024xf32>
    %94 = arith.maximumf %92, %93 : vector<32x1024xf32>
    %c0_39 = arith.constant 0 : index
    %c0_40 = arith.constant 0 : index
    %95 = vector.load %arg6[%c0_39, %c0_40] : memref<8x32xf32, #tpu.memory_space<vmem>>, vector<8x32xf32>
    %cst_41 = arith.constant dense<0.000000e+00> : vector<8x1024xf32>
    %96 = tpu.matmul %95, %94, %cst_41 {dimension_numbers = #tpu.dot_dimension_numbers<[1], [0], [0], [1], [0, 0, 1, 1], [], []>} : vector<8x32xf32>, vector<32x1024xf32>, vector<8x1024xf32> -> vector<8x1024xf32>
    %c0_42 = arith.constant 0 : index
    %c3 = arith.constant 3 : index
    %97 = vector.load %arg7[%c0_42, %c3] : memref<32x4xf32, #tpu.memory_space<vmem>>, vector<8x1xf32>
    %98 = vector.broadcast %97 : vector<8x1xf32> to vector<8x1024xf32>
    %99 = arith.addf %96, %98 : vector<8x1024xf32>
    %c0_43 = arith.constant 0 : index
    %c0_44 = arith.constant 0 : index
    %100 = vector.load %arg8[%c0_43, %c0_44] : memref<8x1024xf32, #tpu.memory_space<vmem>>, vector<8x1024xf32>
    tpu.vector_store %arg8[%c0_43, %c0_44], %99 {strides = array<i32>} : memref<8x1024xf32, #tpu.memory_space<vmem>>, vector<8x1024xf32>,
    return
  }
  func.func @transform_0(%arg0: i32) -> (i32, i32) {
    %c0_i32 = arith.constant 0 : i32
    %c0_i32_0 = arith.constant 0 : i32
    %c0_i32_1 = arith.constant 0 : i32
    return %c0_i32, %c0_i32_0 : i32, i32
  }
  func.func @transform_1(%arg0: i32) -> (i32, i32) {
    %c0_i32 = arith.constant 0 : i32
    %c0_i32_0 = arith.constant 0 : i32
    return %c0_i32, %arg0 : i32, i32
  }
  func.func @transform_2(%arg0: i32) -> (i32, i32) {
    %c0_i32 = arith.constant 0 : i32
    %c0_i32_0 = arith.constant 0 : i32
    %c0_i32_1 = arith.constant 0 : i32
    return %c0_i32, %c0_i32_0 : i32, i32
  }
  func.func @transform_3(%arg0: i32) -> (i32, i32) {
    %c0_i32 = arith.constant 0 : i32
    %c0_i32_0 = arith.constant 0 : i32
    %c0_i32_1 = arith.constant 0 : i32
    return %c0_i32, %c0_i32_0 : i32, i32
  }
  func.func @transform_4(%arg0: i32) -> (i32, i32) {
    %c0_i32 = arith.constant 0 : i32
    %c0_i32_0 = arith.constant 0 : i32
    %c0_i32_1 = arith.constant 0 : i32
    return %c0_i32, %c0_i32_0 : i32, i32
  }
  func.func @transform_5(%arg0: i32) -> (i32, i32) {
    %c0_i32 = arith.constant 0 : i32
    %c0_i32_0 = arith.constant 0 : i32
    %c0_i32_1 = arith.constant 0 : i32
    return %c0_i32, %c0_i32_0 : i32, i32
  }
  func.func @transform_6(%arg0: i32) -> (i32, i32) {
    %c0_i32 = arith.constant 0 : i32
    %c0_i32_0 = arith.constant 0 : i32
    %c0_i32_1 = arith.constant 0 : i32
    return %c0_i32, %c0_i32_0 : i32, i32
  }
  func.func @transform_7(%arg0: i32) -> (i32, i32) {
    %c0_i32 = arith.constant 0 : i32
    %c0_i32_0 = arith.constant 0 : i32
    return %c0_i32, %arg0 : i32, i32
  }
}

</mosaic_0001>

<bundles_post_ra>
// kernel: tpu_custom_call.1
= control target key start
LH: loop header
LB: loop body
LE: loop exit
PB: predicated region body
PF: predicated region fallthrough
CT: control target
= control target key end

     0   :  { %s5561_s0 = inlined_call_operand.hbm [shape: f32[32,256], index: 0, kind: input, shape index: {}]   ;;  %s5562_s1 = inlined_call_operand.hbm [shape: f32[3,2048], index: 1, kind: input, shape index: {}]   ;;  %s5563_s2 = inlined_call_operand.vmem [shape: f32[32,33], index: 2, kind: input, shape index: {}]   ;;  %s5564_s3 = inlined_call_operand.hbm [shape: f32[32,32], index: 3, kind: input, shape index: {}]   ;;  %s5565_s4 = inlined_call_operand.hbm [shape: f32[32,32], index: 4, kind: input, shape index: {}]   ;;  %s5566_s5 = inlined_call_operand.hbm [shape: f32[8,32], index: 5, kind: input, shape index: {}]   ;;  %s5567_s6 = inlined_call_operand.vmem [shape: f32[32,4], index: 6, kind: input, shape index: {}]   ;;  %s5568_s7 = inlined_call_operand.hbm [shape: f32[8,2048], index: 7, kind: output, shape index: {}]  }
   0x1   :  { %5588 = sst [smem:[#allocation19_spill]] %s5561_s0 }
   0x2   :  { %5589 = sst [smem:[#allocation20_spill]] %s5564_s3 }
   0x3   :  { %12 = vsyncpa [#allocation3], 0 }
   0x4   :  { %13 = vsyncpa [#allocation6], 0 }
   0x5   :  { %15 = vsyncpa [#allocation6 + $0x1], 0 }
   0x6   :  { %16 = vsyncpa [#allocation9], 0 }
   0x7   :  { %17 = vsyncpa [#allocation4], 0 }
   0x8   :  { %19 = vsyncpa [#allocation4 + $0x1], 0  ;;  %s3641_s24 = smov 0   ;;  %s3643_s25 = smov 0  }
   0x9   :  { %s3645_s26 = smov 0   ;;  %s3647_s27 = smov 0  }
   0xa LB: > { %s5590_s3 = sld [smem:[#allocation20_spill]]  ;;  %s3665_s8 = sadd.s32 4294967295, %s3586_s27   ;;  %s3586_s27 = sphi %s3647_s27, %s5679_s27   ;;  %s3582_s26 = sphi %s3645_s26, %s5678_s26   ;;  %s3578_s25 = sphi %s3643_s25, %s5677_s25   ;;  %s3574_s24 = sphi %s3641_s24, %s5676_s24  }
   0xb   : > { %p3109_p0 = scmp.ge.s32.totalorder %s3586_s27, 1  ;;  %p67_p1 = scmp.eq.s32.totalorder %s3665_s8, 0 }
   0xc   : > { %p195_p2 = scmp.eq.s32.totalorder %s3665_s8, 1  ;;  %p208_p3 = scmp.lt.s32.totalorder %s3586_s27, 3 }
   0xd   : > { %s3588_s10 = smov [#allocation7]   ;;  %s250_s14 = sshll.u32 %s5565_s4, 4  ;;  %s251_s14 = int_to_ptr.hbm [resolvable:$true] %s250_s14 }
   0xe   : > { %p3671_p4 = pnand %p3109_p0, %p208_p3  ;;  %s238_s11 = sshll.u32 %s3588_s10, 4  ;;  %s239_s11 = int_to_ptr.vmem [resolvable:$true] %s238_s11 }
   0xf   : > { %s3589_s16 = smov [#allocation8]   ;;  %s5593_s0 = sld [smem:[#allocation19_spill]] }
  0x10   : > { %s236_s30 = sshll.u32 %s5590_s3, 4  ;;  %p3264_p5 = pneg %p3671_p4  ;;  %s237_s30 = int_to_ptr.hbm [resolvable:$true] %s236_s30 }
  0x11   : > { %s252_s17 = sshll.u32 %s3589_s16, 4  ;;  %s3590_s21 = smov 128   ;;  %s253_s17 = int_to_ptr.vmem [resolvable:$true] %s252_s17 }
  0x12   : > { %p3683_p7 = pnand %p3264_p5, %p67_p1  ;;  %s3591_s22 = smov 8  }
  0x13   : > { %s3592_s23 = smov [#allocation2]   ;;  %s3593_s29 = smov 256  }
  0x14   : > { %3270 = dma.hbm_to_vmem [thread:$0]  (!%p3683_p7), %s237_s30, 512, %s239_s11, [#allocation6], %s3590_s21, %s3590_s21, %s3591_s22  }
  0x15   : > { %s219_s20 = sshll.u32 %s5593_s0, 4  ;;  %s221_s28 = sshll.u32 %s3592_s23, 4  ;;  %s220_s20 = int_to_ptr.hbm [resolvable:$true] %s219_s20  ;;  %s222_s28 = int_to_ptr.vmem [resolvable:$true] %s221_s28 }
  0x16   : > { %3273 = dma.hbm_to_vmem [thread:$0]  (!%p3683_p7), %s251_s14, 512, %s253_s17, [#allocation9], %s3590_s21, %s3590_s21, %s3591_s22  }
  0x17   : > { %s3594_s10 = smov 16   ;;  %s265_s12 = sshll.u32 %s5566_s5, 4  ;;  %s266_s12 = int_to_ptr.hbm [resolvable:$true] %s265_s12 }
  0x18   : > { %3267 = dma.hbm_to_vmem [thread:$0]  (!%p3683_p7), %s220_s20, 1024, %s222_s28, [#allocation3], %s3593_s29, %s3593_s29, %s3594_s10  }
  0x19   : > { %s3595_s13 = smov [#allocation10]   ;;  %s3108_s16 = sadd.s32 4294967294, %s3586_s27  }
  0x1a   : > { %s267_s14 = sshll.u32 %s3595_s13, 4  ;;  %s3703_s17 = sadd.s32 1, %s3586_s27   ;;  %s268_s14 = int_to_ptr.vmem [resolvable:$true] %s267_s14 }
  0x1b   : > { %3276 = dma.hbm_to_vmem [thread:$0]  (!%p3683_p7), %s266_s12, 128, %s268_s14, [#allocation9]  }
  0x1c   : > { %s53_s18 = sadd.s32 1, %s3582_s26  ;;  %s50_s19 = ssub.s32 %s3586_s27, %s3703_s17 }
  0x1d   : > { %p60_p8 = scmp.ne.s32.totalorder %s3582_s26, %s3578_s25  ;;  %p51_p9 = scmp.eq.s32.totalorder %s50_s19, 0 }
  0x1e   : > { %p61_p10 = scmp.eq.s32.totalorder %s3586_s27, 0  ;;  %p66_p11 = scmp.ne.s32.totalorder %s3578_s25, %s3574_s24 }
  0x1f   : > { %p3715_p12 = por %p195_p2, %p60_p8  ;;  %p201_p3 = scmp.eq.s32.totalorder %s3108_s16, 1 }
  0x20   : > { %s3720_s15 = scalar_select %p51_p9, %s3582_s26, %s53_s18  }
  0x21   : > { %p3724_p13 = por %p67_p1, %p66_p11  ;;  %p3728_p0 = por %p61_p10, %p60_p8 }
  0x22   : > { %p3289_p5 = scmp.lt.s32.totalorder %s3586_s27, 2  ;;  %s283_s23 = sand.u32 1, %s3582_s26  }
  0x23   : > { %p3734_p7 = por %p201_p3, %p66_p11  ;;  %s281_s29 = sand.u32 1, %s3586_s27  }
  0x24   : > { %s3115_s10 = sshll.u32 %s283_s23, 5  ;;  %s3238_s30 = sshll.u32 %s3586_s27, 5 }
  0x25   : > { %s290_s13 = scalar_lea.hbm %s5562_s1, %s3238_s30  ;;  %s285_s18 = scalar_lea.vmem [#allocation5], %s3115_s10 }
  0x26   : > { %s292_s14 = sshll.u32 %s290_s13, 4  ;;  %s294_s19 = sshll.u32 %s285_s18, 4  ;;  %s293_s14 = int_to_ptr.hbm [resolvable:$true] %s292_s14  ;;  %s295_s19 = int_to_ptr.vmem [resolvable:$true] %s294_s19 }
  0x27   : > { %p3745_p2 = pnand %p3289_p5, %p3728_p0  ;;  %s282_s0 = scalar_lea.sflag [#allocation6], %s281_s29 }
  0x28   : > { %s3478_s3 = sshra.s32 %s293_s14, 4  ;;  %s3485_s11 = scalar_lea.hbm %s5562_s1, 64  ;;  %s3479_s3 = int_to_ptr.hbm [resolvable:$true] %s3478_s3 }
  0x29   : > { %s3480_s23 = scalar_lea.hbm %s3479_s3, 32  ;;  %p3482_p9 = pneg %p3745_p2 }
  0x2a   : > { %p3481_p8 = scmp.ne.s32.totalorder %s3479_s3, %s3480_s23  ;;  %p3486_p0 = scmp.lt.s32.totalorder %s3479_s3, %s5562_s1 }
  0x2b   : > { %p3487_p3 = scmp.lt.s32.totalorder %s3485_s11, %s3480_s23 }
  0x2c   : > { %p3483_p10 = pnand %p3482_p9, %p3481_p8 }
  0x2d   : > { %p3488_p5 = por %p3487_p3, %p3486_p0 }
  0x2e   : > { %p3484_p11 = pneg %p3483_p10 }
  0x30   : > { %p3489_p6 = pnand %p3488_p5, %p3484_p11 }
  0x32   : > { %3492 = shalt.err (!%p3489_p6)
}
  0x33   : > { %3280 = dma.hbm_to_vmem [thread:$0]  (!%p3745_p2), %s293_s14, 512, %s295_s19, %s282_s0  }
  0x34   : > { %303 = sbr.rel (%p3671_p4) target bundleno = 1116 (0x45c), region = 48 }
  0x39   : > { %3553 = dma.done.wait (%p67_p1), [#allocation3], 1024  }
  0x3a   : > { %3555 = vsyncadd (%p67_p1), [#allocation3], 4294966272  ;;  %s310_s3 = sand.u32 1, %s3665_s8   ;;  %s3767_s29 = sand.u32 1, %s3578_s25  }
  0x3b   : > { %s3120_s13 = sshll.u32 %s3767_s29, 5  ;;  %s311_s18 = scalar_lea.sflag [#allocation6], %s310_s3 }
  0x3c   : > { %s3770_s16 = scalar_lea.vmem [#allocation5], %s3120_s13 }
  0x3d   : > { %3557 = dma.done.wait (%p3724_p13), %s311_s18, 512  }
  0x3e   : > { %3559 = vsyncadd (%p3724_p13), %s311_s18, 4294966784 }
  0x3f   : > { %3561 = dma.done.wait (%p67_p1), [#allocation6], 512  }
  0x40   : > { %3563 = vsyncadd (%p67_p1), [#allocation6], 4294966784 }
  0x41   : > { %3565 = dma.done.wait (%p67_p1), [#allocation9], 640  }
  0x42   : > { %3567 = vsyncadd (%p67_p1), [#allocation9], 4294966656  ;;  %v363_v0 = vld [vmem:[%s3770_s16] ss:$4 sm:$0xff]  ;;  %v3125_v1 = vld [vmem:[%s3770_s16 + $0x1] ss:$4 sm:$0xff]  ;;  %v384_v6 = vlaneseq }
  0x43   : > { %v368_v2 = vadd.f32 1.0, %v363_v0  ;;  %v372_v3 = vadd.f32 1.0, %v3125_v1  ;;  %vm701_vm10 = vcmask 1046528   ;;  %vm693_vm11 = vcmask 1041409   ;;  %s3124_s14 = sshll.u32 %s3767_s29, 6  ;;  %s3239_s23 = sshll.u32 %s3665_s8, 6 }
  0x44   : > { %v3786_v11 = vshrl.u32 %v384_v6, 7  ;;  %vm695_vm12 = vcmask 1043459   ;;  %vm699_vm13 = vcmask 1045509   ;;  %vm725_vm14 = vcmask 1046529   ;;  %s360_s19 = scalar_lea.vmem [#allocation11], %s3124_s14  ;;  %s2993_s11 = scalar_lea.hbm %s5568_s7, %s3239_s23 }
  0x45   : > { %v369_v4 = vmul.f32 16.0, %v368_v2  ;;  %v373_v5 = vmul.f32 16.0, %v372_v3  ;;  %s2995_s12 = sshll.u32 %s360_s19, 4  ;;  %s2997_s22 = sshll.u32 %s2993_s11, 4  ;;  %s2996_s12 = int_to_ptr.vmem [resolvable:$true] %s2995_s12  ;;  %s2998_s22 = int_to_ptr.hbm [resolvable:$true] %s2997_s22 }
  0x46   : > { %v3797_v18 = vadd.s32 8, %v3786_v11  ;;  %s2982_s3 = scalar_lea.sflag [#allocation4], %s3767_s29  ;;  %s3522_s13 = sshra.s32 %s2998_s22, 4  ;;  %s3523_s13 = int_to_ptr.hbm [resolvable:$true] %s3522_s13 }
  0x47   : > { %v3127_v7 = vadd.f32 -1.0, %v369_v4  ;;  %v3128_v8 = vadd.f32 -1.0, %v373_v5  ;;  %s3524_s18 = scalar_lea.hbm %s3523_s13, 64  ;;  %s3528_s9 = scalar_lea.hbm %s5568_s7, 128 }
  0x48   : > { %p3525_p1 = scmp.ne.s32.totalorder %s3523_s13, %s3524_s18  ;;  %p3529_p13 = scmp.lt.s32.totalorder %s3523_s13, %s5568_s7 }
  0x49   : > { %v371_v9 = vmul.f32 0.5, %v3127_v7  ;;  %v375_v10 = vmul.f32 0.5, %v3128_v8  ;;  %p3530_p2 = scmp.lt.s32.totalorder %s3528_s9, %s3524_s18 }
  0x4a   : > { %p3526_p4 = pnand %p3525_p1, %p3715_p12 }
  0x4b   : > { %v376_v12 = vfloor.f32 %v371_v9  ;;  %v377_v13 = vfloor.f32 %v375_v10  ;;  %p3531_p8 = por %p3530_p2, %p3529_p13 }
  0x4c   : > { %p3527_p6 = pneg %p3526_p4 }
  0x4d   : > { %v3788_v14 = vsub.f32 %v371_v9, %v376_v12  ;;  %v3790_v15 = vsub.f32 %v375_v10, %v377_v13  ;;  %v3792_v16 = vcvt.f32.s32 %v376_v12  ;;  %v3794_v17 = vcvt.f32.s32 %v377_v13 }
  0x4e   : > { %p3532_p9 = pnand %p3531_p8, %p3527_p6 }
  0x4f   : > { %v3800_v19 = vsub.f32 1.0, %v3788_v14  ;;  %v3803_v20 = vsub.f32 1.0, %v3790_v15  ;;  %v5572_v21 = vperm.slane %v3792_v16, 0  ;;  %v3807_v22 = vadd.s32 1, %v3792_v16 }
  0x50   : > { %v5569_v23 = vperm.slane %v3788_v14, 0  ;;  %v518_v24 = vperm.slane %v3794_v17, 0  ;;  %v519_v25 = vperm.slane %v3794_v17, 1  ;;  %v520_v26 = vperm.slane %v3794_v17, 2 }
  0x51   : > { %vm403_vm0 = vcmp.eq.s32.totalorder %v3797_v18, %v5572_v21  ;;  %v5571_v27 = vperm.slane %v3800_v19, 0  ;;  %v5570_v28 = vperm.slane %v3807_v22, 0  ;;  %v521_v29 = vperm.slane %v3794_v17, 3 }
  0x52   : > { %v522_v30 = vperm.slane %v3794_v17, 4  ;;  %v523_v31 = vperm.slane %v3794_v17, 5  ;;  %v524_v32 = vperm.slane %v3794_v17, 6  ;;  %v525_v33 = vperm.slane %v3794_v17, 7 }
  0x53   : > { %v436_v34 = vsel %vm403_vm0, %v5571_v27, 0.0  ;;  %vm461_vm1 = vcmp.eq.s32.totalorder %v3797_v18, %v5570_v28  ;;  %vm3831_vm2 = vcmp.eq.s32.totalorder %v3786_v11, %v518_v24  ;;  %vm3838_vm3 = vcmp.eq.s32.totalorder %v3786_v11, %v519_v25 }
  0x54   : > { %v494_v37 = vsel %vm461_vm1, %v5569_v23, 0.0  ;;  %vm3847_vm4 = vcmp.eq.s32.totalorder %v3786_v11, %v520_v26  ;;  %vm3854_vm5 = vcmp.eq.s32.totalorder %v3786_v11, %v521_v29  ;;  %vm3861_vm6 = vcmp.eq.s32.totalorder %v3786_v11, %v522_v30 }
  0x55   : > { %v3865_v41 = vadd.f32 %v494_v37, %v436_v34  ;;  %vm3870_vm7 = vcmp.eq.s32.totalorder %v3786_v11, %v523_v31  ;;  %vm3877_vm8 = vcmp.eq.s32.totalorder %v3786_v11, %v524_v32  ;;  %vm3884_vm9 = vcmp.eq.s32.totalorder %v3786_v11, %v525_v33 }
  0x56   : > { %v543_v45 = vperm.slane %v3803_v20, 0  ;;  %v544_v46 = vperm.slane %v3803_v20, 1  ;;  %v545_v47 = vperm.slane %v3803_v20, 2  ;;  %v546_v48 = vperm.slane %v3803_v20, 3 }
  0x57   : > { %v547_v49 = vperm.slane %v3803_v20, 4  ;;  %v548_v50 = vperm.slane %v3803_v20, 5  ;;  %v549_v51 = vperm.slane %v3803_v20, 6  ;;  %v550_v52 = vperm.slane %v3803_v20, 7 }
  0x58   : > { %v559_v53 = vsel %vm3831_vm2, %v543_v45, 0.0  ;;  %v560_v54 = vsel %vm3838_vm3, %v544_v46, 0.0  ;;  %v561_v55 = vsel %vm3847_vm4, %v545_v47, 0.0  ;;  %v562_v56 = vsel %vm3854_vm5, %v546_v48, 0.0 }
  0x59   : > { %v563_v57 = vsel %vm3861_vm6, %v547_v49, 0.0  ;;  %v564_v58 = vsel %vm3870_vm7, %v548_v50, 0.0  ;;  %v565_v59 = vsel %vm3877_vm8, %v549_v51, 0.0  ;;  %v566_v60 = vsel %vm3884_vm9, %v550_v52, 0.0 }
  0x5a   : > { %v3929_v61 = vadd.s32 1, %v3794_v17  ;;  %v5576_v62 = vperm.slane %v3790_v15, 0  ;;  %v5575_v63 = vperm.slane %v3790_v15, 1  ;;  %v5573_v0 = vperm.slane %v3790_v15, 2 }
  0x5b   : > { %v5574_v1 = vperm.slane %v3790_v15, 3  ;;  %v5577_v2 = vperm.slane %v3790_v15, 4  ;;  %v606_v3 = vperm.slane %v3790_v15, 5  ;;  %v5578_v4 = vperm.slane %v3790_v15, 6 }
  0x5c   : > { %v576_v5 = vperm.slane %v3929_v61, 0  ;;  %v577_v6 = vperm.slane %v3929_v61, 1  ;;  %v578_v7 = vperm.slane %v3929_v61, 2  ;;  %v579_v8 = vperm.slane %v3929_v61, 3 }
  0x5d   : > { %v580_v9 = vperm.slane %v3929_v61, 4  ;;  %v581_v10 = vperm.slane %v3929_v61, 5  ;;  %v582_v12 = vperm.slane %v3929_v61, 6  ;;  %v583_v13 = vperm.slane %v3929_v61, 7 }
  0x5e   : > { %vm584_vm15 = vcmp.eq.s32.totalorder %v3786_v11, %v576_v5  ;;  %vm585_vm0 = vcmp.eq.s32.totalorder %v3786_v11, %v577_v6  ;;  %vm586_vm1 = vcmp.eq.s32.totalorder %v3786_v11, %v578_v7  ;;  %vm587_vm2 = vcmp.eq.s32.totalorder %v3786_v11, %v579_v8 }
  0x5f   : > { %vm721_vm3 = vcmask 1044483   ;;  %vm588_vm4 = vcmp.eq.s32.totalorder %v3786_v11, %v580_v9  ;;  %vm589_vm5 = vcmp.eq.s32.totalorder %v3786_v11, %v581_v10  ;;  %vm590_vm6 = vcmp.eq.s32.totalorder %v3786_v11, %v582_v12 }
  0x60   : > { %vm591_vm7 = vcmp.eq.s32.totalorder %v3786_v11, %v583_v13  ;;  %vm5579_vm8 = vcmask 1046531   ;;  %v608_v34 = vperm.slane %v3790_v15, 7  ;;  %v617_v35 = vsel %vm584_vm15, %v5576_v62, 0.0 }
  0x61   : > { %v618_v36 = vsel %vm585_vm0, %v5575_v63, 0.0  ;;  %v619_v37 = vsel %vm586_vm1, %v5573_v0, 0.0  ;;  %v620_v38 = vsel %vm587_vm2, %v5574_v1, 0.0  ;;  %v621_v39 = vsel %vm588_vm4, %v5577_v2, 0.0 }
  0x62   : > { %v622_v40 = vsel %vm589_vm5, %v606_v3, 0.0  ;;  %v623_v42 = vsel %vm590_vm6, %v5578_v4, 0.0  ;;  %v624_v43 = vsel %vm591_vm7, %v608_v34, 0.0  ;;  %v3987_v44 = vadd.f32 %v617_v35, %v559_v53 }
  0x63   : > { %v634_v23 = vadd.f32 %v618_v36, %v560_v54  ;;  %v635_v28 = vadd.f32 %v619_v37, %v561_v55  ;;  %v636_v27 = vadd.f32 %v620_v38, %v562_v56  ;;  %v637_v21 = vadd.f32 %v621_v39, %v563_v57 }
  0x64   : > { %v638_v0 = vadd.f32 %v622_v40, %v564_v58  ;;  %v639_v1 = vadd.f32 %v623_v42, %v565_v59  ;;  %v640_v63 = vadd.f32 %v624_v43, %v566_v60  ;;  %vm3996_vm9 = vcmp.eq.s32.totalorder %v3797_v18, %v518_v24 }
  0x65   : > { %v3989_v62 = vrot.slane %v634_v23, 7  ;;  %v3991_v2 = vrot.slane %v635_v28, 6  ;;  %v4000_v53 = vrot.slane %v636_v27, 5  ;;  %v4002_v54 = vrot.slane %v637_v21, 4 }
  0x66   : > { %v4004_v55 = vrot.slane %v638_v0, 3  ;;  %v4006_v56 = vrot.slane %v639_v1, 2  ;;  %v4008_v57 = vrot.slane %v640_v63, 1  ;;  %vm535_vm15 = vcmp.eq.s32.totalorder %v3797_v18, %v519_v25 }
  0x67   : > { %v754_v23 = vsel %vm701_vm10, %v3989_v62, %v3987_v44  ;;  %vm536_vm0 = vcmp.eq.s32.totalorder %v3797_v18, %v520_v26  ;;  %v755_v21 = vsel %vm693_vm11, %v3991_v2, %v4000_v53  ;;  %vm537_vm1 = vcmp.eq.s32.totalorder %v3797_v18, %v521_v29 }
  0x68   : > { %v757_v24 = vsel %vm695_vm12, %v4002_v54, %v4004_v55  ;;  %vm538_vm2 = vcmp.eq.s32.totalorder %v3797_v18, %v522_v30  ;;  %v756_v25 = vsel %vm725_vm14, %v755_v21, %v754_v23  ;;  %v758_v26 = vsel %vm699_vm13, %v4006_v56, %v4008_v57 }
  0x69   : > { %vm539_vm4 = vcmp.eq.s32.totalorder %v3797_v18, %v523_v31  ;;  %vm540_vm5 = vcmp.eq.s32.totalorder %v3797_v18, %v524_v32  ;;  %v759_v27 = vsel %vm721_vm3, %v757_v24, %v758_v26  ;;  %vm541_vm6 = vcmp.eq.s32.totalorder %v3797_v18, %v525_v33 }
  0x6a   : > { %v567_v28 = vsel %vm3996_vm9, %v543_v45, 0.0  ;;  %v568_v29 = vsel %vm535_vm15, %v544_v46, 0.0  ;;  %v760_v30 = vsel %vm5579_vm8, %v759_v27, %v756_v25  ;;  %v569_v31 = vsel %vm536_vm0, %v545_v47, 0.0 }
  0x6b   : > { %v570_v32 = vsel %vm537_vm1, %v546_v48, 0.0  ;;  %v571_v17 = vsel %vm538_vm2, %v547_v49, 0.0  ;;  %v4058_v33 = vrot.slane %v760_v30, 7  ;;  %v572_v58 = vsel %vm539_vm4, %v548_v50, 0.0 }
  0x6c   : > { %v573_v45 = vsel %vm540_vm5, %v549_v51, 0.0  ;;  %v574_v46 = vsel %vm541_vm6, %v550_v52, 0.0  ;;  %vm592_vm7 = vcmp.eq.s32.totalorder %v3797_v18, %v576_v5  ;;  %vm593_vm9 = vcmp.eq.s32.totalorder %v3797_v18, %v577_v6 }
  0x6d   : > { %vm594_vm15 = vcmp.eq.s32.totalorder %v3797_v18, %v578_v7  ;;  %vm595_vm0 = vcmp.eq.s32.totalorder %v3797_v18, %v579_v8  ;;  %v881_v47 = vperm.slane %v4058_v33, 0  ;;  %vm596_vm1 = vcmp.eq.s32.totalorder %v3797_v18, %v580_v9 }
  0x6e   : > { %vm597_vm2 = vcmp.eq.s32.totalorder %v3797_v18, %v581_v10  ;;  %vm598_vm4 = vcmp.eq.s32.totalorder %v3797_v18, %v582_v12  ;;  %vm599_vm5 = vcmp.eq.s32.totalorder %v3797_v18, %v583_v13  ;;  %v5617_v20 = vperm.slane %v3790_v15, 0 }
  0x6f   : > { %v5618_v49 = vperm.slane %v3790_v15, 1  ;;  %v5619_v51 = vperm.slane %v3790_v15, 2  ;;  %v1201_v59 = vmul.f32 %v881_v47, %v3865_v41  ;;  %v5620_v60 = vperm.slane %v3790_v15, 3 }
  0x70   : > { %v625_v48 = vsel %vm592_vm7, %v5617_v20, 0.0  ;;  %v5621_v0 = vperm.slane %v3790_v15, 4  ;;  %v630_v61 = vsel %vm597_vm2, %v606_v3, 0.0  ;;  %v5622_v4 = vperm.slane %v3790_v15, 6 }
  0x71   : > { %v626_v50 = vsel %vm593_vm9, %v5618_v49, 0.0  ;;  %v627_v52 = vsel %vm594_vm15, %v5619_v51, 0.0  ;;  %v628_v63 = vsel %vm595_vm0, %v5620_v60, 0.0  ;;  %v632_v6 = vsel %vm599_vm5, %v608_v34, 0.0  ;;  %1345 = vmatpush.msra.mxu0 %v1201_v59 }
  0x72   : > { %v629_v1 = vsel %vm596_vm1, %v5621_v0, 0.0  ;;  %v631_v5 = vsel %vm598_vm4, %v5622_v4, 0.0  ;;  %v4108_v7 = vadd.f32 %v625_v48, %v567_v28  ;;  %v642_v8 = vadd.f32 %v626_v50, %v568_v29 }
  0x73   : > { %v643_v9 = vadd.f32 %v627_v52, %v569_v31  ;;  %v644_v10 = vadd.f32 %v628_v63, %v570_v32  ;;  %v645_v12 = vadd.f32 %v629_v1, %v571_v17  ;;  %v646_v13 = vadd.f32 %v630_v61, %v572_v58 }
  0x74   : > { %v647_v35 = vadd.f32 %v631_v5, %v573_v45  ;;  %v648_v36 = vadd.f32 %v632_v6, %v574_v46  ;;  %v4110_v37 = vrot.slane %v642_v8, 7  ;;  %v388_v3 = vperm.slane %v3792_v16, 1 }
  0x75   : > { %v4113_v38 = vrot.slane %v643_v9, 6  ;;  %v4115_v39 = vrot.slane %v644_v10, 5  ;;  %v4117_v15 = vrot.slane %v645_v12, 4  ;;  %v4119_v34 = vrot.slane %v646_v13, 3 }
  0x76   : > { %v4121_v40 = vrot.slane %v647_v35, 2  ;;  %v4123_v42 = vrot.slane %v648_v36, 1  ;;  %v817_v43 = vsel %vm701_vm10, %v4110_v37, %v4108_v7  ;;  %vm404_vm6 = vcmp.eq.s32.totalorder %v3797_v18, %v388_v3 }
  0x77   : > { %v818_v23 = vsel %vm693_vm11, %v4113_v38, %v4115_v39  ;;  %v820_v21 = vsel %vm695_vm12, %v4117_v15, %v4119_v34  ;;  %v413_v24 = vperm.slane %v3800_v19, 1  ;;  %v446_v25 = vperm.slane %v3807_v22, 1 }
  0x78   : > { %v819_v26 = vsel %vm725_vm14, %v818_v23, %v817_v43  ;;  %v821_v27 = vsel %vm699_vm13, %v4121_v40, %v4123_v42  ;;  %v471_v28 = vperm.slane %v3788_v14, 1  ;;  %v882_v29 = vperm.slane %v4058_v33, 1 }
  0x79   : > { %v822_v30 = vsel %vm721_vm3, %v820_v21, %v821_v27  ;;  %v437_v31 = vsel %vm404_vm6, %v413_v24, 0.0  ;;  %vm462_vm7 = vcmp.eq.s32.totalorder %v3797_v18, %v446_v25  ;;  %v5623_v32 = vperm.slane %v3792_v16, 0 }
  0x7a   : > { %v823_v17 = vsel %vm5579_vm8, %v822_v30, %v819_v26  ;;  %v495_v58 = vsel %vm462_vm7, %v471_v28, 0.0  ;;  %v5624_v45 = vperm.slane %v3800_v19, 0  ;;  %v5625_v20 = vperm.slane %v3807_v22, 0 }
  0x7b   : > { %vm395_vm9 = vcmp.eq.s32.totalorder %v3786_v11, %v5623_v32  ;;  %v4154_v48 = vrot.slane %v823_v17, 7  ;;  %v4156_v49 = vadd.f32 %v495_v58, %v437_v31  ;;  %v5626_v50 = vperm.slane %v3788_v14, 0 }
  0x7c   : > { %v428_v46 = vsel %vm395_vm9, %v5624_v45, 0.0  ;;  %vm453_vm15 = vcmp.eq.s32.totalorder %v3786_v11, %v5625_v20  ;;  %vm396_vm0 = vcmp.eq.s32.totalorder %v3786_v11, %v388_v3  ;;  %vm454_vm1 = vcmp.eq.s32.totalorder %v3786_v11, %v446_v25 }
  0x7d   : > { %v486_v51 = vsel %vm453_vm15, %v5626_v50, 0.0  ;;  %v429_v59 = vsel %vm396_vm0, %v413_v24, 0.0  ;;  %vm679_vm2 = vcmask 1040384   ;;  %v945_v60 = vperm.slane %v4154_v48, 0 }
  0x7e   : > { %v4161_v52 = vadd.f32 %v486_v51, %v428_v46  ;;  %v1202_v63 = vmul.f32 %v882_v29, %v4156_v49  ;;  %v946_v0 = vperm.slane %v4154_v48, 1  ;;  %v487_v1 = vsel %vm454_vm1, %v471_v28, 0.0 }
  0x7f   : > { %v4168_v4 = vadd.f32 %v487_v1, %v429_v59  ;;  %vm681_vm4 = vcmask 1042434   ;;  %vm685_vm5 = vcmask 1044484   ;;  %v1329_v5 = vmul.f32 %v945_v60, %v3865_v41 }
  0x80   : > { %v1193_v61 = vmul.f32 %v881_v47, %v4161_v52  ;;  %1403 = vmatpush.msra.mxu2 %v1202_v63  ;;  %v1330_v6 = vmul.f32 %v946_v0, %v4156_v49  ;;  %v1321_v8 = vmul.f32 %v945_v60, %v4161_v52  ;;  %vm687_vm6 = vcmask 1046534  }
  0x81   : > { %v1194_v9 = vmul.f32 %v882_v29, %v4168_v4  ;;  %v1322_v10 = vmul.f32 %v946_v0, %v4168_v4  ;;  %vm710_vm7 = vcmask 1043458   ;;  %vm5582_vm9 = vcmask 1045504   ;;  %1374 = vmatpush.msra.mxu1 %v1329_v5 }
  0x82   : > { %1346 = vmatpush.msra.mxu0 %v1193_v61  ;;  %1432 = vmatpush.msra.mxu3 %v1330_v6  ;;  %vm5581_vm15 = vcmask 1045506   ;;  %v746_v47 = vsel %vm687_vm6, %v3987_v44, %v3989_v62  ;;  %v747_v12 = vsel %vm679_vm2, %v3991_v2, %v4000_v53  ;;  %v749_v13 = vsel %vm681_vm4, %v4002_v54, %v4004_v55 }
  0x83   : > { %1404 = vmatpush.msra.mxu2 %v1194_v9  ;;  %v748_v35 = vsel %vm5582_vm9, %v747_v12, %v746_v47  ;;  %v750_v36 = vsel %vm685_vm5, %v4006_v56, %v4008_v57  ;;  %v809_v3 = vsel %vm687_vm6, %v4108_v7, %v4110_v37  ;;  %v810_v43 = vsel %vm679_vm2, %v4113_v38, %v4115_v39 }
  0x84   : > { %1375 = vmatpush.msra.mxu1 %v1321_v8  ;;  %1433 = vmatpush.msra.mxu3 %v1322_v10  ;;  %v751_v23 = vsel %vm710_vm7, %v749_v13, %v750_v36  ;;  %v811_v21 = vsel %vm5582_vm9, %v810_v43, %v809_v3  ;;  %v812_v24 = vsel %vm681_vm4, %v4117_v15, %v4119_v34  ;;  %vm697_vm0 = vcmask 1042433  }
  0x85   : > { %v752_v25 = vsel %vm5581_vm15, %v751_v23, %v748_v35  ;;  %v813_v26 = vsel %vm685_vm5, %v4121_v40, %v4123_v42  ;;  %vm5580_vm1 = vcmask 1046533   ;;  %vm705_vm8 = vcmask 1044481  }
  0x86   : > { %v4203_v27 = vrot.slane %v752_v25, 6  ;;  %v814_v28 = vsel %vm710_vm7, %v812_v24, %v813_v26  ;;  %v738_v29 = vsel %vm699_vm13, %v3987_v44, %v3989_v62  ;;  %v739_v30 = vsel %vm701_vm10, %v4000_v53, %v3991_v2 }
  0x87   : > { %v815_v31 = vsel %vm5581_vm15, %v814_v28, %v811_v21  ;;  %v740_v32 = vsel %vm5580_vm1, %v738_v29, %v739_v30  ;;  %v741_v17 = vsel %vm693_vm11, %v4002_v54, %v4004_v55  ;;  %v742_v58 = vsel %vm695_vm12, %v4006_v56, %v4008_v57 }
  0x88   : > { %v873_v45 = vperm.slane %v4203_v27, 0  ;;  %v4221_v46 = vrot.slane %v815_v31, 6  ;;  %v874_v20 = vperm.slane %v4203_v27, 1  ;;  %v743_v50 = vsel %vm697_vm0, %v741_v17, %v742_v58 }
  0x89   : > { %v744_v51 = vsel %vm705_vm8, %v743_v50, %v740_v32  ;;  %v801_v59 = vsel %vm699_vm13, %v4108_v7, %v4110_v37  ;;  %v802_v60 = vsel %vm701_vm10, %v4115_v39, %v4113_v38  ;;  %v804_v63 = vsel %vm693_vm11, %v4117_v15, %v4119_v34 }
  0x8a   : > { %v1185_v0 = vmul.f32 %v873_v45, %v3865_v41  ;;  %v937_v1 = vperm.slane %v4221_v46, 0  ;;  %v1186_v61 = vmul.f32 %v874_v20, %v4156_v49  ;;  %v938_v5 = vperm.slane %v4221_v46, 1 }
  0x8b   : > { %v1177_v6 = vmul.f32 %v873_v45, %v4161_v52  ;;  %v1178_v8 = vmul.f32 %v874_v20, %v4168_v4  ;;  %v4241_v9 = vrot.slane %v744_v51, 5  ;;  %v803_v10 = vsel %vm5580_vm1, %v801_v59, %v802_v60 }
  0x8c   : > { %1347 = vmatpush.msra.mxu0 %v1185_v0  ;;  %v1313_v47 = vmul.f32 %v937_v1, %v3865_v41  ;;  %1405 = vmatpush.msra.mxu2 %v1186_v61  ;;  %v1314_v12 = vmul.f32 %v938_v5, %v4156_v49  ;;  %v1305_v13 = vmul.f32 %v937_v1, %v4161_v52  ;;  %vm683_vm1 = vcmask 1041408  }
  0x8d   : > { %v1306_v35 = vmul.f32 %v938_v5, %v4168_v4  ;;  %v865_v36 = vperm.slane %v4241_v9, 0  ;;  %v805_v3 = vsel %vm695_vm12, %v4121_v40, %v4123_v42  ;;  %v866_v43 = vperm.slane %v4241_v9, 1 }
  0x8e   : > { %1376 = vmatpush.msra.mxu1 %v1313_v47  ;;  %1434 = vmatpush.msra.mxu3 %v1314_v12  ;;  %v806_v23 = vsel %vm697_vm0, %v804_v63, %v805_v3  ;;  %vm689_vm15 = vcmask 1045508   ;;  %v730_v21 = vsel %vm685_vm5, %v3987_v44, %v3989_v62  ;;  %vm5583_vm9 = vcmask 1043456  }
  0x8f   : > { %1348 = vmatpush.msra.mxu0 %v1177_v6  ;;  %1406 = vmatpush.msra.mxu2 %v1178_v8  ;;  %v1169_v24 = vmul.f32 %v865_v36, %v3865_v41  ;;  %v807_v25 = vsel %vm705_vm8, %v806_v23, %v803_v10  ;;  %v1170_v26 = vmul.f32 %v866_v43, %v4156_v49 }
  0x90   : > { %1377 = vmatpush.msra.mxu1 %v1305_v13  ;;  %1435 = vmatpush.msra.mxu3 %v1306_v35  ;;  %v4260_v28 = vrot.slane %v807_v25, 5  ;;  %v1161_v29 = vmul.f32 %v865_v36, %v4161_v52  ;;  %v1162_v30 = vmul.f32 %v866_v43, %v4168_v4  ;;  %v731_v31 = vsel %vm687_vm6, %v3991_v2, %v4000_v53 }
  0x91   : > { %1349 = vmatpush.msra.mxu0 %v1169_v24  ;;  %1407 = vmatpush.msra.mxu2 %v1170_v26  ;;  %v732_v32 = vsel %vm689_vm15, %v730_v21, %v731_v31  ;;  %v733_v17 = vsel %vm679_vm2, %v4002_v54, %v4004_v55  ;;  %v734_v58 = vsel %vm681_vm4, %v4006_v56, %v4008_v57  ;;  %v389_v36 = vperm.slane %v3792_v16, 2 }
  0x92   : > { %v929_v45 = vperm.slane %v4260_v28, 0  ;;  %v930_v20 = vperm.slane %v4260_v28, 1  ;;  %v735_v50 = vsel %vm683_vm1, %v733_v17, %v734_v58  ;;  %v793_v51 = vsel %vm685_vm5, %v4108_v7, %v4110_v37 }
  0x93   : > { %1350 = vmatpush.msra.mxu0 %v1161_v29  ;;  %1408 = vmatpush.msra.mxu2 %v1162_v30  ;;  %v736_v59 = vsel %vm5583_vm9, %v735_v50, %v732_v32  ;;  %v794_v60 = vsel %vm687_vm6, %v4113_v38, %v4115_v39  ;;  %v796_v63 = vsel %vm679_vm2, %v4117_v15, %v4119_v34 }
  0x94   : > { %v1297_v0 = vmul.f32 %v929_v45, %v3865_v41  ;;  %v1298_v1 = vmul.f32 %v930_v20, %v4156_v49  ;;  %v1289_v61 = vmul.f32 %v929_v45, %v4161_v52  ;;  %v1290_v5 = vmul.f32 %v930_v20, %v4168_v4 }
  0x95   : > { %v4291_v6 = vrot.slane %v736_v59, 4  ;;  %v795_v8 = vsel %vm689_vm15, %v793_v51, %v794_v60  ;;  %v797_v10 = vsel %vm681_vm4, %v4121_v40, %v4123_v42  ;;  %v719_v47 = vsel %vm695_vm12, %v3987_v44, %v3989_v62 }
  0x96   : > { %1378 = vmatpush.msra.mxu1 %v1297_v0  ;;  %1436 = vmatpush.msra.mxu3 %v1298_v1  ;;  %v798_v12 = vsel %vm683_vm1, %v796_v63, %v797_v10  ;;  %v720_v13 = vsel %vm699_vm13, %v3991_v2, %v4000_v53  ;;  %v723_v35 = vsel %vm701_vm10, %v4004_v55, %v4002_v54  ;;  %v414_v63 = vperm.slane %v3800_v19, 2 }
  0x97   : > { %v857_v3 = vperm.slane %v4291_v6, 0  ;;  %v799_v43 = vsel %vm5583_vm9, %v798_v12, %v795_v8  ;;  %v858_v23 = vperm.slane %v4291_v6, 1  ;;  %v722_v21 = vsel %vm721_vm3, %v719_v47, %v720_v13 }
  0x98   : > { %1379 = vmatpush.msra.mxu1 %v1289_v61  ;;  %1437 = vmatpush.msra.mxu3 %v1290_v5  ;;  %v4312_v24 = vrot.slane %v799_v43, 4  ;;  %v724_v25 = vsel %vm693_vm11, %v4006_v56, %v4008_v57  ;;  %v785_v26 = vsel %vm695_vm12, %v4108_v7, %v4110_v37  ;;  %v786_v29 = vsel %vm699_vm13, %v4113_v38, %v4115_v39 }
  0x99   : > { %v1153_v30 = vmul.f32 %v857_v3, %v3865_v41  ;;  %v1154_v31 = vmul.f32 %v858_v23, %v4156_v49  ;;  %v1145_v32 = vmul.f32 %v857_v3, %v4161_v52  ;;  %v1146_v17 = vmul.f32 %v858_v23, %v4168_v4 }
  0x9a   : > { %v921_v58 = vperm.slane %v4312_v24, 0  ;;  %v922_v45 = vperm.slane %v4312_v24, 1  ;;  %v726_v20 = vsel %vm725_vm14, %v724_v25, %v723_v35  ;;  %v787_v50 = vsel %vm721_vm3, %v785_v26, %v786_v29 }
  0x9b   : > { %1351 = vmatpush.msra.mxu0 %v1153_v30  ;;  %1409 = vmatpush.msra.mxu2 %v1154_v31  ;;  %vm5627_vm9 = vcmask 1046531   ;;  %v788_v59 = vsel %vm701_vm10, %v4119_v34, %v4117_v15  ;;  %v789_v60 = vsel %vm693_vm11, %v4121_v40, %v4123_v42  ;;  %v708_v47 = vsel %vm681_vm4, %v3987_v44, %v3989_v62 }
  0x9c   : > { %v728_v51 = vsel %vm5627_vm9, %v722_v21, %v726_v20  ;;  %v1281_v0 = vmul.f32 %v921_v58, %v3865_v41  ;;  %v1282_v1 = vmul.f32 %v922_v45, %v4156_v49  ;;  %v1273_v61 = vmul.f32 %v921_v58, %v4161_v52  ;;  %vm5628_vm3 = vmmov %vm5627_vm9 }
  0x9d   : > { %v1274_v5 = vmul.f32 %v922_v45, %v4168_v4  ;;  %1352 = vmatpush.msra.mxu0 %v1145_v32  ;;  %1410 = vmatpush.msra.mxu2 %v1146_v17  ;;  %v4343_v8 = vrot.slane %v728_v51, 3  ;;  %v790_v10 = vsel %vm725_vm14, %v789_v60, %v788_v59  ;;  %v709_v12 = vsel %vm685_vm5, %v3991_v2, %v4000_v53 }
  0x9e   : > { %1380 = vmatpush.msra.mxu1 %v1281_v0  ;;  %1438 = vmatpush.msra.mxu3 %v1282_v1  ;;  %v791_v13 = vsel %vm5628_vm3, %v787_v50, %v790_v10  ;;  %v711_v35 = vsel %vm710_vm7, %v708_v47, %v709_v12  ;;  %v712_v3 = vsel %vm687_vm6, %v4002_v54, %v4004_v55  ;;  %v447_v43 = vperm.slane %v3807_v22, 2 }
  0x9f   : > { %v849_v23 = vperm.slane %v4343_v8, 0  ;;  %v4359_v21 = vrot.slane %v791_v13, 3  ;;  %v850_v25 = vperm.slane %v4343_v8, 1  ;;  %v713_v26 = vsel %vm679_vm2, %v4006_v56, %v4008_v57 }
  0xa0   : > { %1381 = vmatpush.msra.mxu1 %v1273_v61  ;;  %1439 = vmatpush.msra.mxu3 %v1274_v5  ;;  %vm5629_vm14 = vcmask 1045504   ;;  %v777_v30 = vsel %vm681_vm4, %v4108_v7, %v4110_v37  ;;  %v778_v31 = vsel %vm685_vm5, %v4113_v38, %v4115_v39  ;;  %v472_v32 = vperm.slane %v3788_v14, 2 }
  0xa1   : > { %v715_v29 = vsel %vm5629_vm14, %v713_v26, %v712_v3  ;;  %v1137_v17 = vmul.f32 %v849_v23, %v3865_v41  ;;  %v913_v58 = vperm.slane %v4359_v21, 0  ;;  %v1138_v45 = vmul.f32 %v850_v25, %v4156_v49 }
  0xa2   : > { %v914_v20 = vperm.slane %v4359_v21, 1  ;;  %v1129_v50 = vmul.f32 %v849_v23, %v4161_v52  ;;  %v1130_v51 = vmul.f32 %v850_v25, %v4168_v4  ;;  %vm5630_vm9 = vcmask 1045506  }
  0xa3   : > { %v717_v59 = vsel %vm5630_vm9, %v711_v35, %v715_v29  ;;  %v779_v60 = vsel %vm710_vm7, %v777_v30, %v778_v31  ;;  %1353 = vmatpush.msra.mxu0 %v1137_v17  ;;  %v1265_v0 = vmul.f32 %v913_v58, %v3865_v41  ;;  %1411 = vmatpush.msra.mxu2 %v1138_v45  ;;  %vm5631_vm7 = vmmov %vm5629_vm14  ;;  %v883_v31 = vperm.slane %v4058_v33, 2 }
  0xa4   : > { %v1266_v1 = vmul.f32 %v914_v20, %v4156_v49  ;;  %v1257_v61 = vmul.f32 %v913_v58, %v4161_v52  ;;  %v4384_v5 = vrot.slane %v717_v59, 2  ;;  %v1258_v10 = vmul.f32 %v914_v20, %v4168_v4  ;;  %vm5632_vm3 = vmmov %vm5630_vm9 }
  0xa5   : > { %v780_v47 = vsel %vm687_vm6, %v4117_v15, %v4119_v34  ;;  %v781_v12 = vsel %vm679_vm2, %v4121_v40, %v4123_v42  ;;  %v694_v13 = vsel %vm693_vm11, %v3987_v44, %v3989_v62  ;;  %1382 = vmatpush.msra.mxu1 %v1265_v0  ;;  %v696_v25 = vsel %vm695_vm12, %v3991_v2, %v4000_v53 }
  0xa6   : > { %1440 = vmatpush.msra.mxu3 %v1266_v1  ;;  %v841_v35 = vperm.slane %v4384_v5, 0  ;;  %v782_v3 = vsel %vm5631_vm7, %v781_v12, %v780_v47  ;;  %v842_v23 = vperm.slane %v4384_v5, 1  ;;  %1354 = vmatpush.msra.mxu0 %v1129_v50  ;;  %v698_v29 = vsel %vm697_vm0, %v694_v13, %v696_v25 }
  0xa7   : > { %1412 = vmatpush.msra.mxu2 %v1130_v51  ;;  %v783_v26 = vsel %vm5632_vm3, %v779_v60, %v782_v3  ;;  %v700_v30 = vsel %vm699_vm13, %v4002_v54, %v4004_v55  ;;  %1383 = vmatpush.msra.mxu1 %v1257_v61  ;;  %v702_v51 = vsel %vm701_vm10, %v4008_v57, %v4006_v56  ;;  %vm5633_vm14 = vcmask 1046533  }
  0xa8   : > { %1441 = vmatpush.msra.mxu3 %v1258_v10  ;;  %v1121_v17 = vmul.f32 %v841_v35, %v3865_v41  ;;  %v4409_v58 = vrot.slane %v783_v26, 2  ;;  %v1122_v45 = vmul.f32 %v842_v23, %v4156_v49  ;;  %v1113_v20 = vmul.f32 %v841_v35, %v4161_v52 }
  0xa9   : > { %v1114_v50 = vmul.f32 %v842_v23, %v4168_v4  ;;  %v769_v59 = vsel %vm693_vm11, %v4108_v7, %v4110_v37  ;;  %v770_v60 = vsel %vm695_vm12, %v4113_v38, %v4115_v39  ;;  %v704_v61 = vsel %vm5633_vm14, %v700_v30, %v702_v51  ;;  %vm5634_vm11 = vmmov %vm5633_vm14 }
  0xaa   : > { %1355 = vmatpush.msra.mxu0 %v1121_v17  ;;  %v905_v0 = vperm.slane %v4409_v58, 0  ;;  %1413 = vmatpush.msra.mxu2 %v1122_v45  ;;  %v906_v1 = vperm.slane %v4409_v58, 1  ;;  %v771_v10 = vsel %vm697_vm0, %v769_v59, %v770_v60  ;;  %v706_v47 = vsel %vm705_vm8, %v698_v29, %v704_v61 }
  0xab   : > { %v772_v12 = vsel %vm699_vm13, %v4117_v15, %v4119_v34  ;;  %v773_v13 = vsel %vm701_vm10, %v4123_v42, %v4121_v40  ;;  %v680_v35 = vsel %vm679_vm2, %v3987_v44, %v3989_v62  ;;  %v4440_v26 = vrot.slane %v706_v47, 1 }
  0xac   : > { %v1249_v3 = vmul.f32 %v905_v0, %v3865_v41  ;;  %v1250_v23 = vmul.f32 %v906_v1, %v4156_v49  ;;  %1356 = vmatpush.msra.mxu0 %v1113_v20  ;;  %v1241_v25 = vmul.f32 %v905_v0, %v4161_v52  ;;  %1414 = vmatpush.msra.mxu2 %v1114_v50  ;;  %v947_v0 = vperm.slane %v4154_v48, 2 }
  0xad   : > { %v1242_v29 = vmul.f32 %v906_v1, %v4168_v4  ;;  %v774_v30 = vsel %vm5634_vm11, %v772_v12, %v773_v13  ;;  %v682_v17 = vsel %vm681_vm4, %v3991_v2, %v4000_v53  ;;  %v686_v62 = vsel %vm685_vm5, %v4002_v54, %v4004_v55 }
  0xae   : > { %1384 = vmatpush.msra.mxu1 %v1249_v3  ;;  %1442 = vmatpush.msra.mxu3 %v1250_v23  ;;  %v833_v44 = vperm.slane %v4440_v26, 0  ;;  %v775_v45 = vsel %vm705_vm8, %v771_v10, %v774_v30  ;;  %v834_v20 = vperm.slane %v4440_v26, 1  ;;  %v684_v50 = vsel %vm683_vm1, %v680_v35, %v682_v17 }
  0xaf   : > { %v4454_v51 = vrot.slane %v775_v45, 1  ;;  %v688_v2 = vsel %vm687_vm6, %v4006_v56, %v4008_v57  ;;  %v762_v53 = vsel %vm679_vm2, %v4108_v7, %v4110_v37  ;;  %v763_v54 = vsel %vm681_vm4, %v4113_v38, %v4115_v39 }
  0xb0   : > { %1385 = vmatpush.msra.mxu1 %v1241_v25  ;;  %1443 = vmatpush.msra.mxu3 %v1242_v29  ;;  %v1105_v55 = vmul.f32 %v833_v44, %v3865_v41  ;;  %v1106_v59 = vmul.f32 %v834_v20, %v4156_v49  ;;  %v1097_v60 = vmul.f32 %v833_v44, %v4161_v52  ;;  %vm5635_vm10 = vcmask 1043456  }
  0xb1   : > { %v897_v56 = vperm.slane %v4454_v51, 0  ;;  %v898_v57 = vperm.slane %v4454_v51, 1  ;;  %v1098_v7 = vmul.f32 %v834_v20, %v4168_v4  ;;  %v690_v37 = vsel %vm689_vm15, %v686_v62, %v688_v2  ;;  %vm5638_vm2 = vmmov %vm5635_vm10 }
  0xb2   : > { %1357 = vmatpush.msra.mxu0 %v1105_v55  ;;  %1415 = vmatpush.msra.mxu2 %v1106_v59  ;;  %v4474_v38 = vsel %vm5635_vm10, %v684_v50, %v690_v37  ;;  %v764_v39 = vsel %vm683_vm1, %v762_v53, %v763_v54  ;;  %v765_v1 = vsel %vm685_vm5, %v4117_v15, %v4119_v34  ;;  %v390_v61 = vperm.slane %v3792_v16, 3 }
  0xb3   : > { %v1233_v10 = vmul.f32 %v897_v56, %v3865_v41  ;;  %v1234_v47 = vmul.f32 %v898_v57, %v4156_v49  ;;  %v1225_v12 = vmul.f32 %v897_v56, %v4161_v52  ;;  %v1226_v13 = vmul.f32 %v898_v57, %v4168_v4  ;;  %v4524_v56 = vld [vmem:[#allocation2] sm:$0xff] }
  0xb4   : > { %1358 = vmatpush.msra.mxu0 %v1097_v60  ;;  %1416 = vmatpush.msra.mxu2 %v1098_v7  ;;  %v825_v35 = vperm.slane %v4474_v38, 0  ;;  %v766_v3 = vsel %vm687_vm6, %v4121_v40, %v4123_v42  ;;  %v826_v15 = vperm.slane %v4474_v38, 1  ;;  %vm405_vm12 = vcmp.eq.s32.totalorder %v3797_v18, %v389_v36 }
  0xb5   : > { %1386 = vmatpush.msra.mxu1 %v1233_v10  ;;  %1444 = vmatpush.msra.mxu3 %v1234_v47  ;;  %v767_v34 = vsel %vm689_vm15, %v765_v1, %v766_v3  ;;  %v438_v23 = vsel %vm405_vm12, %v414_v63, 0.0  ;;  %vm463_vm13 = vcmp.eq.s32.totalorder %v3797_v18, %v447_v43  ;;  %vm4500_vm8 = vcmp.eq.s32.totalorder %v3797_v18, %v390_v61 }
  0xb6   : > { %v1089_v42 = vmul.f32 %v825_v35, %v3865_v41  ;;  %v4506_v25 = vsel %vm5638_vm2, %v764_v39, %v767_v34  ;;  %v1090_v29 = vmul.f32 %v826_v15, %v4156_v49  ;;  %v1081_v30 = vmul.f32 %v825_v35, %v4161_v52 }
  0xb7   : > { %1387 = vmatpush.msra.mxu1 %v1225_v12  ;;  %1445 = vmatpush.msra.mxu3 %v1226_v13  ;;  %v889_v17 = vperm.slane %v4506_v25, 0  ;;  %v890_v62 = vperm.slane %v4506_v25, 1  ;;  %v1082_v44 = vmul.f32 %v826_v15, %v4168_v4  ;;  %v496_v45 = vsel %vm463_vm13, %v472_v32, 0.0 }
  0xb8   : > { %1359 = vmatpush.msra.mxu0 %v1089_v42  ;;  %1417 = vmatpush.msra.mxu2 %v1090_v29  ;;  %v4515_v20 = vadd.f32 %v496_v45, %v438_v23  ;;  %v415_v50 = vperm.slane %v3800_v19, 3  ;;  %v448_v2 = vperm.slane %v3807_v22, 3  ;;  %v473_v53 = vperm.slane %v3788_v14, 3 }
  0xb9   : > { %v1217_v54 = vmul.f32 %v889_v17, %v3865_v41  ;;  %v1218_v55 = vmul.f32 %v890_v62, %v4156_v49  ;;  %v1209_v59 = vmul.f32 %v889_v17, %v4161_v52  ;;  %v1210_v60 = vmul.f32 %v890_v62, %v4168_v4  ;;  %v4535_v49 = vld [vmem:[#allocation2 + $0x8] sm:$0xff] }
  0xba   : > { %1360 = vmatpush.msra.mxu0 %v1081_v30  ;;  %1418 = vmatpush.msra.mxu2 %v1082_v44  ;;  %v1203_v57 = vmul.f32 %v883_v31, %v4515_v20  ;;  %v1331_v7 = vmul.f32 %v947_v0, %v4515_v20  ;;  %v439_v41 = vsel %vm4500_vm8, %v415_v50, 0.0  ;;  %vm464_vm4 = vcmp.eq.s32.totalorder %v3797_v18, %v448_v2 }
  0xbb   : > { %1388 = vmatpush.msra.mxu1 %v1217_v54  ;;  %1446 = vmatpush.msra.mxu3 %v1218_v55  ;;  %v497_v52 = vsel %vm464_vm4, %v473_v53, 0.0  ;;  %v884_v4 = vperm.slane %v4058_v33, 3  ;;  %v948_v37 = vperm.slane %v4154_v48, 3  ;;  %vm397_vm5 = vcmp.eq.s32.totalorder %v3786_v11, %v389_v36  ;;  %v4587_v54 = vld [vmem:[#allocation2 + $0x10] sm:$0xff]  ;;  %v4589_v55 = vld [vmem:[#allocation2 + $0x18] sm:$0xff] }
  0xbc   : > { %1361 = vmatmul.f32.vlgmr.msra.gmra.mxu0 %v4524_v56  ;;  %1419 = vmatmul.f32.vlgmr.msra.gmra.mxu2 %v4524_v56  ;;  %v4544_v39 = vadd.f32 %v497_v52, %v439_v41  ;;  %v430_v1 = vsel %vm397_vm5, %v414_v63, 0.0  ;;  %vm455_vm6 = vcmp.eq.s32.totalorder %v3786_v11, %v447_v43  ;;  %vm398_vm15 = vcmp.eq.s32.totalorder %v3786_v11, %v390_v61 }
  0xbd   : > { %1389 = vmatpush.msra.mxu1 %v1209_v59  ;;  %1447 = vmatpush.msra.mxu3 %v1210_v60  ;;  %v488_v36 = vsel %vm455_vm6, %v472_v32, 0.0  ;;  %v431_v10 = vsel %vm398_vm15, %v415_v50, 0.0  ;;  %vm456_vm0 = vcmp.eq.s32.totalorder %v3786_v11, %v448_v2  ;;  %v875_v47 = vperm.slane %v4203_v27, 2 }
  0xbe   : > { %1390 = vmatmul.f32.vlgmr.msra.gmra.mxu1 %v4535_v49  ;;  %1448 = vmatmul.f32.vlgmr.msra.gmra.mxu3 %v4535_v49  ;;  %v1204_v63 = vmul.f32 %v884_v4, %v4544_v39  ;;  %v1332_v43 = vmul.f32 %v948_v37, %v4544_v39  ;;  %v4560_v12 = vadd.f32 %v488_v36, %v430_v1  ;;  %v489_v61 = vsel %vm456_vm0, %v473_v53, 0.0 }
  0xbf   : > { %1461 = vmatpush.msrb.mxu0 %v1203_v57  ;;  %1490 = vmatpush.msrb.mxu1 %v1331_v7  ;;  %v4562_v13 = vadd.f32 %v489_v61, %v431_v10  ;;  %v1187_v32 = vmul.f32 %v875_v47, %v4515_v20  ;;  %v939_v35 = vperm.slane %v4221_v46, 2  ;;  %v876_v3 = vperm.slane %v4203_v27, 3 }
  0xc0   : > { %1519 = vmatpush.msrb.mxu2 %v1204_v63  ;;  %1548 = vmatpush.msrb.mxu3 %v1332_v43  ;;  %v1195_v15 = vmul.f32 %v883_v31, %v4560_v12  ;;  %v1323_v34 = vmul.f32 %v947_v0, %v4560_v12  ;;  %v940_v23 = vperm.slane %v4221_v46, 3  ;;  %v1179_v40 = vmul.f32 %v875_v47, %v4560_v12 }
  0xc1   : > { %v1196_v42 = vmul.f32 %v884_v4, %v4562_v13  ;;  %v1324_v29 = vmul.f32 %v948_v37, %v4562_v13  ;;  %v1315_v30 = vmul.f32 %v939_v35, %v4515_v20  ;;  %v1188_v17 = vmul.f32 %v876_v3, %v4544_v39 }
  0xc2   : > { %1462 = vmatpush.msrb.mxu0 %v1195_v15  ;;  %1491 = vmatpush.msrb.mxu1 %v1323_v34  ;;  %v1316_v31 = vmul.f32 %v940_v23, %v4544_v39  ;;  %v1307_v62 = vmul.f32 %v939_v35, %v4560_v12  ;;  %v1180_v0 = vmul.f32 %v876_v3, %v4562_v13  ;;  %v867_v44 = vperm.slane %v4241_v9, 2 }
  0xc3   : > { %1520 = vmatpush.msrb.mxu2 %v1196_v42  ;;  %1549 = vmatpush.msrb.mxu3 %v1324_v29  ;;  %v1308_v45 = vmul.f32 %v940_v23, %v4562_v13  ;;  %v931_v50 = vperm.slane %v4260_v28, 2  ;;  %v868_v2 = vperm.slane %v4241_v9, 3  ;;  %v932_v53 = vperm.slane %v4260_v28, 3 }
  0xc4   : > { %1463 = vmatpush.msrb.mxu0 %v1187_v32  ;;  %1492 = vmatpush.msrb.mxu1 %v1315_v30  ;;  %v1171_v59 = vmul.f32 %v867_v44, %v4515_v20  ;;  %v859_v57 = vperm.slane %v4291_v6, 2  ;;  %v923_v7 = vperm.slane %v4312_v24, 2  ;;  %v860_v4 = vperm.slane %v4291_v6, 3 }
  0xc5   : > { %1521 = vmatpush.msrb.mxu2 %v1188_v17  ;;  %1550 = vmatpush.msrb.mxu3 %v1316_v31  ;;  %v1299_v60 = vmul.f32 %v931_v50, %v4515_v20  ;;  %v1172_v41 = vmul.f32 %v868_v2, %v4544_v39  ;;  %v1300_v52 = vmul.f32 %v932_v53, %v4544_v39  ;;  %v924_v37 = vperm.slane %v4312_v24, 3  ;;  %v4621_v31 = vld [vmem:[#allocation2 + $0x20] sm:$0xff] }
  0xc6   : > { %1464 = vmatpush.msrb.mxu0 %v1179_v40  ;;  %1493 = vmatpush.msrb.mxu1 %v1307_v62  ;;  %v1163_v1 = vmul.f32 %v867_v44, %v4560_v12  ;;  %v1291_v36 = vmul.f32 %v931_v50, %v4560_v12  ;;  %v1164_v10 = vmul.f32 %v868_v2, %v4562_v13  ;;  %v851_v35 = vperm.slane %v4343_v8, 2  ;;  %v4623_v62 = vld [vmem:[#allocation2 + $0x28] sm:$0xff] }
  0xc7   : > { %1522 = vmatpush.msrb.mxu2 %v1180_v0  ;;  %1551 = vmatpush.msrb.mxu3 %v1308_v45  ;;  %v1292_v47 = vmul.f32 %v932_v53, %v4562_v13  ;;  %v1155_v63 = vmul.f32 %v859_v57, %v4515_v20  ;;  %v1283_v43 = vmul.f32 %v923_v7, %v4515_v20  ;;  %v915_v3 = vperm.slane %v4359_v21, 2 }
  0xc8   : > { %1364 = vmatmul.f32.gmra.mxu0 %v4587_v54  ;;  %1393 = vmatmul.f32.gmra.mxu1 %v4589_v55  ;;  %v1156_v61 = vmul.f32 %v860_v4, %v4544_v39  ;;  %v1284_v32 = vmul.f32 %v924_v37, %v4544_v39  ;;  %v1147_v15 = vmul.f32 %v859_v57, %v4560_v12  ;;  %v852_v23 = vperm.slane %v4343_v8, 3 }
  0xc9   : > { %1422 = vmatmul.f32.gmra.mxu2 %v4587_v54  ;;  %1451 = vmatmul.f32.gmra.mxu3 %v4589_v55  ;;  %v1275_v34 = vmul.f32 %v923_v7, %v4560_v12  ;;  %v1148_v40 = vmul.f32 %v860_v4, %v4562_v13  ;;  %v1276_v42 = vmul.f32 %v924_v37, %v4562_v13  ;;  %v916_v29 = vperm.slane %v4359_v21, 3 }
  0xca   : > { %1465 = vmatpush.msrb.mxu0 %v1171_v59  ;;  %1494 = vmatpush.msrb.mxu1 %v1299_v60  ;;  %v843_v30 = vperm.slane %v4384_v5, 2  ;;  %v907_v17 = vperm.slane %v4409_v58, 2  ;;  %v1139_v0 = vmul.f32 %v851_v35, %v4515_v20  ;;  %v1267_v44 = vmul.f32 %v915_v3, %v4515_v20 }
  0xcb   : > { %1523 = vmatpush.msrb.mxu2 %v1172_v41  ;;  %1552 = vmatpush.msrb.mxu3 %v1300_v52  ;;  %v844_v45 = vperm.slane %v4384_v5, 3  ;;  %v908_v50 = vperm.slane %v4409_v58, 3  ;;  %v1140_v2 = vmul.f32 %v852_v23, %v4544_v39  ;;  %v1131_v53 = vmul.f32 %v851_v35, %v4560_v12 }
  0xcc   : > { %1466 = vmatpush.msrb.mxu0 %v1163_v1  ;;  %1495 = vmatpush.msrb.mxu1 %v1291_v36  ;;  %v1259_v59 = vmul.f32 %v915_v3, %v4560_v12  ;;  %v1268_v60 = vmul.f32 %v916_v29, %v4544_v39  ;;  %v1132_v57 = vmul.f32 %v852_v23, %v4562_v13  ;;  %v835_v7 = vperm.slane %v4440_v26, 2 }
  0xcd   : > { %1524 = vmatpush.msrb.mxu2 %v1164_v10  ;;  %1553 = vmatpush.msrb.mxu3 %v1292_v47  ;;  %v899_v41 = vperm.slane %v4454_v51, 2  ;;  %v1260_v52 = vmul.f32 %v916_v29, %v4562_v13  ;;  %v1123_v4 = vmul.f32 %v843_v30, %v4515_v20  ;;  %v1251_v37 = vmul.f32 %v907_v17, %v4515_v20 }
  0xce   : > { %1467 = vmatpush.msrb.mxu0 %v1155_v63  ;;  %1496 = vmatpush.msrb.mxu1 %v1283_v43  ;;  %v1124_v1 = vmul.f32 %v844_v45, %v4544_v39  ;;  %v1252_v36 = vmul.f32 %v908_v50, %v4544_v39  ;;  %v1115_v10 = vmul.f32 %v843_v30, %v4560_v12  ;;  %v836_v47 = vperm.slane %v4440_v26, 3 }
  0xcf   : > { %1525 = vmatpush.msrb.mxu2 %v1156_v61  ;;  %1554 = vmatpush.msrb.mxu3 %v1284_v32  ;;  %v1243_v63 = vmul.f32 %v907_v17, %v4560_v12  ;;  %v1116_v43 = vmul.f32 %v844_v45, %v4562_v13  ;;  %v1244_v61 = vmul.f32 %v908_v50, %v4562_v13  ;;  %v900_v32 = vperm.slane %v4454_v51, 3 }
  0xd0   : > { %1468 = vmatpush.msrb.mxu0 %v1147_v15  ;;  %1497 = vmatpush.msrb.mxu1 %v1275_v34  ;;  %v1107_v35 = vmul.f32 %v835_v7, %v4515_v20  ;;  %v1235_v3 = vmul.f32 %v899_v41, %v4515_v20  ;;  %v827_v15 = vperm.slane %v4474_v38, 2  ;;  %v891_v34 = vperm.slane %v4506_v25, 2 }
  0xd1   : > { %1526 = vmatpush.msrb.mxu2 %v1148_v40  ;;  %1555 = vmatpush.msrb.mxu3 %v1276_v42  ;;  %v1099_v23 = vmul.f32 %v835_v7, %v4560_v12  ;;  %v1227_v40 = vmul.f32 %v899_v41, %v4560_v12  ;;  %v391_v42 = vperm.slane %v3792_v16, 4  ;;  %v449_v29 = vperm.slane %v3807_v22, 4 }
  0xd2   : > { %1367 = vmatmul.f32.gmra.mxu0 %v4621_v31  ;;  %1396 = vmatmul.f32.gmra.mxu1 %v4623_v62  ;;  %v1108_v30 = vmul.f32 %v836_v47, %v4544_v39  ;;  %v1100_v17 = vmul.f32 %v836_v47, %v4562_v13  ;;  %v1236_v45 = vmul.f32 %v900_v32, %v4544_v39  ;;  %v416_v41 = vperm.slane %v3800_v19, 4 }
  0xd3   : > { %1425 = vmatmul.f32.gmra.mxu2 %v4621_v31  ;;  %1454 = vmatmul.f32.gmra.mxu3 %v4623_v62  ;;  %v1228_v50 = vmul.f32 %v900_v32, %v4562_v13  ;;  %v1219_v7 = vmul.f32 %v891_v34, %v4515_v20  ;;  %vm4676_vm1 = vcmp.eq.s32.totalorder %v3797_v18, %v391_v42 }
  0xd4   : > { %1469 = vmatpush.msrb.mxu0 %v1139_v0  ;;  %1498 = vmatpush.msrb.mxu1 %v1267_v44  ;;  %v392_v0 = vperm.slane %v3792_v16, 5  ;;  %v450_v44 = vperm.slane %v3807_v22, 5  ;;  %vm4681_vm9 = vcmp.eq.s32.totalorder %v3797_v18, %v449_v29  ;;  %vm4702_vm14 = vcmp.eq.s32.totalorder %v3786_v11, %v391_v42 }
  0xd5   : > { %1527 = vmatpush.msrb.mxu2 %v1140_v2  ;;  %1556 = vmatpush.msrb.mxu3 %v1268_v60  ;;  %v828_v2 = vperm.slane %v4474_v38, 3  ;;  %v4669_v60 = vld [vmem:[#allocation2 + $0x38] sm:$0xff]  ;;  %vm4707_vm11 = vcmp.eq.s32.totalorder %v3786_v11, %v449_v29  ;;  %v440_v32 = vsel %vm4676_vm1, %v416_v41, 0.0  ;;  %v869_v42 = vperm.slane %v4241_v9, 4 }
  0xd6   : > { %1470 = vmatpush.msrb.mxu0 %v1131_v53  ;;  %1499 = vmatpush.msrb.mxu1 %v1259_v59  ;;  %v892_v53 = vperm.slane %v4506_v25, 3  ;;  %v4667_v59 = vld [vmem:[#allocation2 + $0x30] sm:$0xff]  ;;  %5640 = vst [vmem:[#allocation18_spill] sm:$0xff] %v4669_v60  ;;  %vm4689_vm7 = vcmp.eq.s32.totalorder %v3797_v18, %v392_v0  ;;  %vm4694_vm3 = vcmp.eq.s32.totalorder %v3797_v18, %v450_v44  ;;  %v933_v29 = vperm.slane %v4260_v28, 4 }
  0xd7   : > { %1528 = vmatpush.msrb.mxu2 %v1132_v57  ;;  %1557 = vmatpush.msrb.mxu3 %v1260_v52  ;;  %5639 = vst [vmem:[#allocation17_spill] sm:$0xff] %v4667_v59  ;;  %v1091_v57 = vmul.f32 %v827_v15, %v4515_v20  ;;  %v474_v52 = vperm.slane %v3788_v14, 4  ;;  %v475_v20 = vperm.slane %v3788_v14, 5  ;;  %vm4718_vm10 = vcmp.eq.s32.totalorder %v3786_v11, %v392_v0 }
  0xd8   : > { %1471 = vmatpush.msrb.mxu0 %v1123_v4  ;;  %1500 = vmatpush.msrb.mxu1 %v1251_v37  ;;  %vm4723_vm12 = vcmp.eq.s32.totalorder %v3786_v11, %v450_v44  ;;  %v1211_v4 = vmul.f32 %v891_v34, %v4560_v12  ;;  %v885_v44 = vperm.slane %v4058_v33, 4  ;;  %vm1882_vm1 = vcmask 261120  }
  0xd9   : > { %1529 = vmatpush.msrb.mxu2 %v1124_v1  ;;  %1558 = vmatpush.msrb.mxu3 %v1252_v36  ;;  %v417_v1 = vperm.slane %v3800_v19, 5  ;;  %v1083_v36 = vmul.f32 %v827_v15, %v4560_v12  ;;  %v498_v15 = vsel %vm4681_vm9, %v474_v52, 0.0  ;;  %v499_v0 = vsel %vm4694_vm3, %v475_v20, 0.0 }
  0xda   : > { %1472 = vmatpush.msrb.mxu0 %v1115_v10  ;;  %1501 = vmatpush.msrb.mxu1 %v1243_v63  ;;  %v1092_v63 = vmul.f32 %v828_v2, %v4544_v39  ;;  %v4739_v12 = vadd.f32 %v498_v15, %v440_v32 }
  0xdb   : > { %1530 = vmatpush.msrb.mxu2 %v1116_v43  ;;  %1559 = vmatpush.msrb.mxu3 %v1244_v61  ;;  %v441_v37 = vsel %vm4689_vm7, %v417_v1, 0.0  ;;  %v433_v34 = vsel %vm4718_vm10, %v417_v1, 0.0  ;;  %v942_v1 = vperm.slane %v4221_v46, 5 }
  0xdc   : > { %1370 = vmatmul.f32.gmra.mxu0 %v4667_v59  ;;  %1399 = vmatmul.f32.gmra.mxu1 %v4669_v60 }
  0xdd   : > { %1428 = vmatmul.f32.gmra.mxu2 %v4667_v59  ;;  %1457 = vmatmul.f32.gmra.mxu3 %v4669_v60  ;;  %v1220_v60 = vmul.f32 %v892_v53, %v4544_v39  ;;  %v1084_v59 = vmul.f32 %v828_v2, %v4562_v13  ;;  %v490_v39 = vsel %vm4707_vm11, %v474_v52, 0.0  ;;  %v4747_v2 = vadd.f32 %v499_v0, %v441_v37 }
  0xde   : > { %1473 = vmatpush.msrb.mxu0 %v1107_v35  ;;  %1502 = vmatpush.msrb.mxu1 %v1235_v3  ;;  %v432_v35 = vsel %vm4702_vm14, %v416_v41, 0.0  ;;  %v949_v3 = vperm.slane %v4154_v48, 4  ;;  %v886_v41 = vperm.slane %v4058_v33, 5  ;;  %v870_v0 = vperm.slane %v4241_v9, 5 }
  0xdf   : > { %1531 = vmatpush.msrb.mxu2 %v1108_v30  ;;  %1560 = vmatpush.msrb.mxu3 %v1236_v45  ;;  %v491_v30 = vsel %vm4723_vm12, %v475_v20, 0.0  ;;  %v1212_v45 = vmul.f32 %v892_v53, %v4562_v13  ;;  %v941_v53 = vperm.slane %v4221_v46, 4  ;;  %v1318_v61 = vmul.f32 %v942_v1, %v4747_v2 }
  0xe0   : > { %1474 = vmatpush.msrb.mxu0 %v1099_v23  ;;  %1503 = vmatpush.msrb.mxu1 %v1227_v40  ;;  %v950_v23 = vperm.slane %v4154_v48, 5  ;;  %v4751_v40 = vadd.f32 %v490_v39, %v432_v35  ;;  %v4753_v52 = vadd.f32 %v491_v30, %v433_v34  ;;  %v1333_v13 = vmul.f32 %v949_v3, %v4739_v12 }
  0xe1   : > { %1532 = vmatpush.msrb.mxu2 %v1100_v17  ;;  %1561 = vmatpush.msrb.mxu3 %v1228_v50  ;;  %v1205_v17 = vmul.f32 %v885_v44, %v4739_v12  ;;  %v877_v50 = vperm.slane %v4203_v27, 4  ;;  %v1173_v35 = vmul.f32 %v869_v42, %v4739_v12  ;;  %v1301_v39 = vmul.f32 %v933_v29, %v4739_v12 }
  0xe2   : > { %1475 = vmatpush.msrb.mxu0 %v1091_v57  ;;  %1504 = vmatpush.msrb.mxu1 %v1219_v7  ;;  %v1206_v57 = vmul.f32 %v886_v41, %v4747_v2  ;;  %v1334_v7 = vmul.f32 %v950_v23, %v4747_v2  ;;  %v1197_v20 = vmul.f32 %v885_v44, %v4751_v40  ;;  %v934_v44 = vperm.slane %v4260_v28, 5 }
  0xe3   : > { %1533 = vmatpush.msrb.mxu2 %v1092_v63  ;;  %1562 = vmatpush.msrb.mxu3 %v1220_v60  ;;  %v878_v60 = vperm.slane %v4203_v27, 5  ;;  %v1326_v10 = vmul.f32 %v950_v23, %v4753_v52  ;;  %v1189_v47 = vmul.f32 %v877_v50, %v4739_v12  ;;  %v1317_v63 = vmul.f32 %v941_v53, %v4739_v12 }
  0xe4   : > { %1476 = vmatpush.msrb.mxu0 %v1083_v36  ;;  %1505 = vmatpush.msrb.mxu1 %v1211_v4  ;;  %v1325_v36 = vmul.f32 %v949_v3, %v4751_v40  ;;  %v1181_v32 = vmul.f32 %v877_v50, %v4751_v40  ;;  %v1309_v15 = vmul.f32 %v941_v53, %v4751_v40  ;;  %v861_v3 = vperm.slane %v4291_v6, 4 }
  0xe5   : > { %1534 = vmatpush.msrb.mxu2 %v1084_v59  ;;  %1563 = vmatpush.msrb.mxu3 %v1212_v45  ;;  %v1198_v59 = vmul.f32 %v886_v41, %v4753_v52  ;;  %v1190_v43 = vmul.f32 %v878_v60, %v4747_v2  ;;  %v1182_v4 = vmul.f32 %v878_v60, %v4753_v52  ;;  %v925_v34 = vperm.slane %v4312_v24, 4 }
  0xe6   : > { %1477 = vmatmul.f32.vlgmr.msrb.gmra.mxu0 %v4524_v56  ;;  %1506 = vmatmul.f32.vlgmr.msrb.gmra.mxu1 %v4535_v49  ;;  %v1310_v37 = vmul.f32 %v942_v1, %v4753_v52  ;;  %v1174_v30 = vmul.f32 %v870_v0, %v4747_v2  ;;  %v1302_v45 = vmul.f32 %v934_v44, %v4747_v2  ;;  %v862_v41 = vperm.slane %v4291_v6, 5 }
  0xe7   : > { %1535 = vmatmul.f32.vlgmr.msrb.gmra.mxu2 %v4524_v56  ;;  %1564 = vmatmul.f32.vlgmr.msrb.gmra.mxu3 %v4535_v49  ;;  %v926_v23 = vperm.slane %v4312_v24, 5  ;;  %v1166_v50 = vmul.f32 %v870_v0, %v4753_v52  ;;  %v1294_v53 = vmul.f32 %v934_v44, %v4753_v52  ;;  %v846_v0 = vperm.slane %v4384_v5, 5 }
  0xe8   : > { %1577 = vmatpush.msra.mxu0 %v1205_v17  ;;  %1606 = vmatpush.msra.mxu1 %v1333_v13  ;;  %v1165_v17 = vmul.f32 %v869_v42, %v4751_v40  ;;  %v1293_v13 = vmul.f32 %v933_v29, %v4751_v40  ;;  %v1158_v60 = vmul.f32 %v862_v41, %v4747_v2  ;;  %v909_v29 = vperm.slane %v4409_v58, 4 }
  0xe9   : > { %1635 = vmatpush.msra.mxu2 %v1206_v57  ;;  %1664 = vmatpush.msra.mxu3 %v1334_v7  ;;  %v1157_v57 = vmul.f32 %v861_v3, %v4739_v12  ;;  %v1285_v7 = vmul.f32 %v925_v34, %v4739_v12  ;;  %v1286_v1 = vmul.f32 %v926_v23, %v4747_v2  ;;  %v910_v44 = vperm.slane %v4409_v58, 5 }
  0xea   : > { %1578 = vmatpush.msra.mxu0 %v1197_v20  ;;  %1607 = vmatpush.msra.mxu1 %v1325_v36  ;;  %v853_v20 = vperm.slane %v4343_v8, 4  ;;  %v917_v36 = vperm.slane %v4359_v21, 4 }
  0xeb   : > { %1636 = vmatpush.msra.mxu2 %v1198_v59  ;;  %1665 = vmatpush.msra.mxu3 %v1326_v10  ;;  %v1149_v59 = vmul.f32 %v861_v3, %v4751_v40  ;;  %v1277_v10 = vmul.f32 %v925_v34, %v4751_v40  ;;  %v837_v3 = vperm.slane %v4440_v26, 4  ;;  %v901_v34 = vperm.slane %v4454_v51, 4 }
  0xec   : > { %1579 = vmatpush.msra.mxu0 %v1189_v47  ;;  %1608 = vmatpush.msra.mxu1 %v1317_v63  ;;  %v854_v47 = vperm.slane %v4343_v8, 5  ;;  %v1150_v63 = vmul.f32 %v862_v41, %v4753_v52  ;;  %v1269_v42 = vmul.f32 %v917_v36, %v4739_v12 }
  0xed   : > { %1637 = vmatpush.msra.mxu2 %v1190_v43  ;;  %1666 = vmatpush.msra.mxu3 %v1318_v61  ;;  %v1278_v43 = vmul.f32 %v926_v23, %v4753_v52  ;;  %v918_v61 = vperm.slane %v4359_v21, 5  ;;  %v838_v23 = vperm.slane %v4440_v26, 5 }
  0xee   : > { %1580 = vmatpush.msra.mxu0 %v1181_v32  ;;  %1609 = vmatpush.msra.mxu1 %v1309_v15  ;;  %v845_v32 = vperm.slane %v4384_v5, 4  ;;  %v1141_v15 = vmul.f32 %v853_v20, %v4739_v12 }
  0xef   : > { %1638 = vmatpush.msra.mxu2 %v1182_v4  ;;  %1667 = vmatpush.msra.mxu3 %v1310_v37  ;;  %v1142_v4 = vmul.f32 %v854_v47, %v4747_v2  ;;  %v1133_v37 = vmul.f32 %v853_v20, %v4751_v40  ;;  %v1246_v20 = vmul.f32 %v910_v44, %v4753_v52 }
  0xf0   : > { %1480 = vmatmul.f32.gmra.mxu0 %v4587_v54  ;;  %1509 = vmatmul.f32.gmra.mxu1 %v4589_v55  ;;  %v1125_v41 = vmul.f32 %v845_v32, %v4739_v12 }
  0xf1   : > { %1538 = vmatmul.f32.gmra.mxu2 %v4587_v54  ;;  %1567 = vmatmul.f32.gmra.mxu3 %v4589_v55 }
  0xf2   : > { %1581 = vmatpush.msra.mxu0 %v1173_v35  ;;  %1610 = vmatpush.msra.mxu1 %v1301_v39  ;;  %v1270_v35 = vmul.f32 %v918_v61, %v4747_v2  ;;  %v1261_v39 = vmul.f32 %v917_v36, %v4751_v40  ;;  %v1109_v36 = vmul.f32 %v837_v3, %v4739_v12 }
  0xf3   : > { %1639 = vmatpush.msra.mxu2 %v1174_v30  ;;  %1668 = vmatpush.msra.mxu3 %v1302_v45  ;;  %v1134_v30 = vmul.f32 %v854_v47, %v4753_v52  ;;  %v1262_v45 = vmul.f32 %v918_v61, %v4753_v52  ;;  %v1110_v47 = vmul.f32 %v838_v23, %v4747_v2  ;;  %v451_v61 = vperm.slane %v3807_v22, 6 }
  0xf4   : > { %1582 = vmatpush.msra.mxu0 %v1165_v17  ;;  %1611 = vmatpush.msra.mxu1 %v1293_v13  ;;  %v1253_v17 = vmul.f32 %v909_v29, %v4739_v12  ;;  %v1117_v13 = vmul.f32 %v845_v32, %v4751_v40 }
  0xf5   : > { %1640 = vmatpush.msra.mxu2 %v1166_v50  ;;  %1669 = vmatpush.msra.mxu3 %v1294_v53  ;;  %v1245_v50 = vmul.f32 %v909_v29, %v4751_v40  ;;  %v902_v53 = vperm.slane %v4454_v51, 5  ;;  %v452_v29 = vperm.slane %v3807_v22, 7  ;;  %vm4864_vm8 = vcmp.eq.s32.totalorder %v3797_v18, %v451_v61 }
  0xf6   : > { %1583 = vmatpush.msra.mxu0 %v1157_v57  ;;  %1612 = vmatpush.msra.mxu1 %v1285_v7  ;;  %v1126_v57 = vmul.f32 %v846_v0, %v4747_v2  ;;  %v1254_v7 = vmul.f32 %v910_v44, %v4747_v2  ;;  %vm4891_vm6 = vcmp.eq.s32.totalorder %v3786_v11, %v451_v61  ;;  %v951_v61 = vperm.slane %v4154_v48, 6 }
  0xf7   : > { %1641 = vmatpush.msra.mxu2 %v1158_v60  ;;  %1670 = vmatpush.msra.mxu3 %v1286_v1  ;;  %v1118_v60 = vmul.f32 %v846_v0, %v4753_v52  ;;  %v829_v1 = vperm.slane %v4474_v38, 4  ;;  %v1238_v32 = vmul.f32 %v902_v53, %v4747_v2  ;;  %vm4878_vm4 = vcmp.eq.s32.totalorder %v3797_v18, %v452_v29 }
  0xf8   : > { %1584 = vmatpush.msra.mxu0 %v1149_v59  ;;  %1613 = vmatpush.msra.mxu1 %v1277_v10  ;;  %v1237_v59 = vmul.f32 %v901_v34, %v4739_v12  ;;  %v893_v10 = vperm.slane %v4506_v25, 4  ;;  %vm4907_vm0 = vcmp.eq.s32.totalorder %v3786_v11, %v452_v29  ;;  %v888_v29 = vperm.slane %v4058_v33, 7 }
  0xf9   : > { %1642 = vmatpush.msra.mxu2 %v1150_v63  ;;  %1671 = vmatpush.msra.mxu3 %v1278_v43  ;;  %v1101_v63 = vmul.f32 %v837_v3, %v4751_v40  ;;  %v393_v43 = vperm.slane %v3792_v16, 6  ;;  %v1093_v0 = vmul.f32 %v829_v1, %v4739_v12 }
  0xfa   : > { %1483 = vmatmul.f32.gmra.mxu0 %v4621_v31  ;;  %1512 = vmatmul.f32.gmra.mxu1 %v4623_v62  ;;  %v1221_v44 = vmul.f32 %v893_v10, %v4739_v12  ;;  %v419_v12 = vperm.slane %v3800_v19, 7 }
  0xfb   : > { %1541 = vmatmul.f32.gmra.mxu2 %v4621_v31  ;;  %1570 = vmatmul.f32.gmra.mxu3 %v4623_v62  ;;  %vm4859_vm13 = vcmp.eq.s32.totalorder %v3797_v18, %v393_v43  ;;  %vm4886_vm5 = vcmp.eq.s32.totalorder %v3786_v11, %v393_v43 }
  0xfc   : > { %1585 = vmatpush.msra.mxu0 %v1141_v15  ;;  %1614 = vmatpush.msra.mxu1 %v1269_v42  ;;  %v1229_v15 = vmul.f32 %v901_v34, %v4751_v40  ;;  %v394_v42 = vperm.slane %v3792_v16, 7  ;;  %v476_v16 = vperm.slane %v3788_v14, 6  ;;  %v477_v34 = vperm.slane %v3788_v14, 7 }
  0xfd   : > { %1643 = vmatpush.msra.mxu2 %v1142_v4  ;;  %1672 = vmatpush.msra.mxu3 %v1270_v35  ;;  %v1102_v4 = vmul.f32 %v838_v23, %v4753_v52  ;;  %v830_v35 = vperm.slane %v4474_v38, 5  ;;  %v1213_v14 = vmul.f32 %v893_v10, %v4751_v40 }
  0xfe   : > { %1586 = vmatpush.msra.mxu0 %v1133_v37  ;;  %1615 = vmatpush.msra.mxu1 %v1261_v39  ;;  %v1230_v37 = vmul.f32 %v902_v53, %v4753_v52  ;;  %v418_v39 = vperm.slane %v3800_v19, 6  ;;  %vm4873_vm2 = vcmp.eq.s32.totalorder %v3797_v18, %v394_v42  ;;  %v5666_v19 = vld [vmem:[#allocation18_spill] sm:$0xff]  ;;  %vm4902_vm15 = vcmp.eq.s32.totalorder %v3786_v11, %v394_v42 }
  0xff   : > { %1644 = vmatpush.msra.mxu2 %v1134_v30  ;;  %1673 = vmatpush.msra.mxu3 %v1262_v45  ;;  %v894_v30 = vperm.slane %v4506_v25, 5  ;;  %v1085_v45 = vmul.f32 %v829_v1, %v4751_v40  ;;  %v500_v40 = vsel %vm4864_vm8, %v476_v16, 0.0  ;;  %v443_v1 = vsel %vm4873_vm2, %v419_v12, 0.0 }
 0x100   : > { %1587 = vmatpush.msra.mxu0 %v1125_v41  ;;  %1616 = vmatpush.msra.mxu1 %v1253_v17  ;;  %v5665_v17 = vld [vmem:[#allocation17_spill] sm:$0xff]  ;;  %v442_v18 = vsel %vm4859_vm13, %v418_v39, 0.0  ;;  %v887_v11 = vperm.slane %v4058_v33, 6  ;;  %v943_v33 = vperm.slane %v4221_v46, 6  ;;  %v935_v41 = vperm.slane %v4260_v28, 6 }
 0x101   : > { %1645 = vmatpush.msra.mxu2 %v1126_v57  ;;  %1674 = vmatpush.msra.mxu3 %v1254_v7  ;;  %v1094_v7 = vmul.f32 %v830_v35, %v4747_v2  ;;  %v1222_v10 = vmul.f32 %v894_v30, %v4747_v2  ;;  %v4923_v43 = vadd.f32 %v500_v40, %v442_v18  ;;  %v493_v2 = vsel %vm4907_vm0, %v477_v34, 0.0 }
 0x102   : > { %1588 = vmatpush.msra.mxu0 %v1117_v13  ;;  %1617 = vmatpush.msra.mxu1 %v1245_v50  ;;  %v872_v13 = vperm.slane %v4241_v9, 7  ;;  %v936_v50 = vperm.slane %v4260_v28, 7  ;;  %v863_v53 = vperm.slane %v4291_v6, 6  ;;  %v927_v57 = vperm.slane %v4312_v24, 6 }
 0x103   : > { %1646 = vmatpush.msra.mxu2 %v1118_v60  ;;  %1675 = vmatpush.msra.mxu3 %v1246_v20  ;;  %v1086_v60 = vmul.f32 %v830_v35, %v4753_v52  ;;  %v501_v20 = vsel %vm4878_vm4, %v477_v34, 0.0  ;;  %v1303_v40 = vmul.f32 %v935_v41, %v4923_v43 }
 0x104   : > { %1486 = vmatmul.f32.gmra.mxu0 %v5665_v17  ;;  %1515 = vmatmul.f32.gmra.mxu1 %v5666_v19  ;;  %v4931_v42 = vadd.f32 %v501_v20, %v443_v1 }
 0x105   : > { %1544 = vmatmul.f32.gmra.mxu2 %v5665_v17  ;;  %1573 = vmatmul.f32.gmra.mxu3 %v5666_v19 }
 0x106   : > { %1589 = vmatpush.msra.mxu0 %v1109_v36  ;;  %1618 = vmatpush.msra.mxu1 %v1237_v59  ;;  %v434_v36 = vsel %vm4886_vm5, %v418_v39, 0.0  ;;  %v492_v59 = vsel %vm4891_vm6, %v476_v16, 0.0  ;;  %v944_v39 = vperm.slane %v4221_v46, 7  ;;  %v1319_v46 = vmul.f32 %v943_v33, %v4923_v43 }
 0x107   : > { %1647 = vmatpush.msra.mxu2 %v1110_v47  ;;  %1676 = vmatpush.msra.mxu3 %v1238_v32  ;;  %v435_v47 = vsel %vm4902_vm15, %v419_v12, 0.0  ;;  %v1214_v32 = vmul.f32 %v894_v30, %v4753_v52  ;;  %v1335_v52 = vmul.f32 %v951_v61, %v4923_v43  ;;  %v1304_v28 = vmul.f32 %v936_v50, %v4931_v42 }
 0x108   : > { %1590 = vmatpush.msra.mxu0 %v1101_v63  ;;  %1619 = vmatpush.msra.mxu1 %v1229_v15  ;;  %v952_v63 = vperm.slane %v4154_v48, 7  ;;  %v4935_v15 = vadd.f32 %v492_v59, %v434_v36  ;;  %v4937_v35 = vadd.f32 %v493_v2, %v435_v47  ;;  %v1208_v48 = vmul.f32 %v888_v29, %v4931_v42 }
 0x109   : > { %1648 = vmatpush.msra.mxu2 %v1102_v4  ;;  %1677 = vmatpush.msra.mxu3 %v1230_v37  ;;  %v1207_v4 = vmul.f32 %v887_v11, %v4923_v43  ;;  %v879_v37 = vperm.slane %v4203_v27, 6  ;;  %v1320_v30 = vmul.f32 %v944_v39, %v4931_v42  ;;  %v919_v47 = vperm.slane %v4359_v21, 6 }
 0x10a   : > { %1591 = vmatpush.msra.mxu0 %v1093_v0  ;;  %1620 = vmatpush.msra.mxu1 %v1221_v44  ;;  %v1336_v0 = vmul.f32 %v952_v63, %v4931_v42  ;;  %v880_v44 = vperm.slane %v4203_v27, 7  ;;  %v1199_v16 = vmul.f32 %v887_v11, %v4935_v15  ;;  %v1327_v22 = vmul.f32 %v951_v61, %v4935_v15 }
 0x10b   : > { %1649 = vmatpush.msra.mxu2 %v1094_v7  ;;  %1678 = vmatpush.msra.mxu3 %v1222_v10  ;;  %v1200_v3 = vmul.f32 %v888_v29, %v4937_v35  ;;  %v1328_v12 = vmul.f32 %v952_v63, %v4937_v35  ;;  %v1191_v27 = vmul.f32 %v879_v37, %v4923_v43  ;;  %v864_v7 = vperm.slane %v4291_v6, 7 }
 0x10c   : > { %1592 = vmatpush.msra.mxu0 %v1085_v45  ;;  %1621 = vmatpush.msra.mxu1 %v1213_v14  ;;  %v1192_v34 = vmul.f32 %v880_v44, %v4931_v42  ;;  %v871_v45 = vperm.slane %v4241_v9, 6  ;;  %v1184_v23 = vmul.f32 %v880_v44, %v4937_v35  ;;  %v1312_v14 = vmul.f32 %v944_v39, %v4937_v35 }
 0x10d   : > { %1650 = vmatpush.msra.mxu2 %v1086_v60  ;;  %1679 = vmatpush.msra.mxu3 %v1214_v32  ;;  %v1176_v9 = vmul.f32 %v872_v13, %v4931_v42  ;;  %v928_v60 = vperm.slane %v4312_v24, 7  ;;  %v1295_v20 = vmul.f32 %v935_v41, %v4935_v15  ;;  %v1168_v10 = vmul.f32 %v872_v13, %v4937_v35 }
 0x10e   : > { %1593 = vmatmul.f32.vlgmr.msra.gmra.mxu0 %v4524_v56  ;;  %1622 = vmatmul.f32.vlgmr.msra.gmra.mxu1 %v4535_v49  ;;  %v1175_v18 = vmul.f32 %v871_v45, %v4923_v43  ;;  %v1167_v1 = vmul.f32 %v871_v45, %v4935_v15  ;;  %v1296_v11 = vmul.f32 %v936_v50, %v4937_v35  ;;  %v855_v61 = vperm.slane %v4343_v8, 6 }
 0x10f   : > { %1651 = vmatmul.f32.vlgmr.msra.gmra.mxu2 %v4524_v56  ;;  %1680 = vmatmul.f32.vlgmr.msra.gmra.mxu3 %v4535_v49  ;;  %v1183_v56 = vmul.f32 %v879_v37, %v4935_v15  ;;  %v1311_v49 = vmul.f32 %v943_v33, %v4935_v15  ;;  %v1159_v6 = vmul.f32 %v863_v53, %v4923_v43  ;;  %v856_v29 = vperm.slane %v4343_v8, 7 }
 0x110   : > { %1693 = vmatpush.msrb.mxu0 %v1207_v4  ;;  %1722 = vmatpush.msrb.mxu1 %v1335_v52  ;;  %v1287_v24 = vmul.f32 %v927_v57, %v4923_v43  ;;  %v1160_v36 = vmul.f32 %v864_v7, %v4931_v42  ;;  %v1288_v59 = vmul.f32 %v928_v60, %v4931_v42  ;;  %v920_v63 = vperm.slane %v4359_v21, 7 }
 0x111   : > { %1751 = vmatpush.msrb.mxu2 %v1208_v48  ;;  %1780 = vmatpush.msrb.mxu3 %v1336_v0  ;;  %v1152_v2 = vmul.f32 %v864_v7, %v4937_v35  ;;  %v1280_v32 = vmul.f32 %v928_v60, %v4937_v35  ;;  %v1143_v4 = vmul.f32 %v855_v61, %v4923_v43  ;;  %v847_v37 = vperm.slane %v4384_v5, 6 }
 0x112   : > { %1694 = vmatpush.msrb.mxu0 %v1199_v16  ;;  %1723 = vmatpush.msrb.mxu1 %v1327_v22  ;;  %v1271_v52 = vmul.f32 %v919_v47, %v4923_v43  ;;  %v911_v33 = vperm.slane %v4409_v58, 6  ;;  %v1144_v8 = vmul.f32 %v856_v29, %v4931_v42  ;;  %v1272_v21 = vmul.f32 %v920_v63, %v4931_v42 }
 0x113   : > { %1752 = vmatpush.msrb.mxu2 %v1200_v3  ;;  %1781 = vmatpush.msrb.mxu3 %v1328_v12  ;;  %v848_v48 = vperm.slane %v4384_v5, 7  ;;  %v912_v0 = vperm.slane %v4409_v58, 7  ;;  %v1135_v44 = vmul.f32 %v855_v61, %v4935_v15  ;;  %v1263_v39 = vmul.f32 %v919_v47, %v4935_v15 }
 0x114   : > { %1695 = vmatpush.msrb.mxu0 %v1191_v27  ;;  %1724 = vmatpush.msrb.mxu1 %v1319_v46  ;;  %v1136_v16 = vmul.f32 %v856_v29, %v4937_v35  ;;  %v1264_v22 = vmul.f32 %v920_v63, %v4937_v35  ;;  %v1127_v5 = vmul.f32 %v847_v37, %v4923_v43  ;;  %v839_v27 = vperm.slane %v4440_v26, 6 }
 0x115   : > { %1753 = vmatpush.msrb.mxu2 %v1192_v34  ;;  %1782 = vmatpush.msrb.mxu3 %v1320_v30  ;;  %v1255_v58 = vmul.f32 %v911_v33, %v4923_v43  ;;  %v1128_v3 = vmul.f32 %v848_v48, %v4931_v42  ;;  %v1256_v12 = vmul.f32 %v912_v0, %v4931_v42  ;;  %v903_v46 = vperm.slane %v4454_v51, 6 }
 0x116   : > { %1696 = vmatpush.msrb.mxu0 %v1183_v56  ;;  %1725 = vmatpush.msrb.mxu1 %v1311_v49  ;;  %v1120_v34 = vmul.f32 %v848_v48, %v4937_v35  ;;  %v1248_v30 = vmul.f32 %v912_v0, %v4937_v35  ;;  %v840_v56 = vperm.slane %v4440_v26, 7  ;;  %v904_v49 = vperm.slane %v4454_v51, 7 }
 0x117   : > { %1754 = vmatpush.msrb.mxu2 %v1184_v23  ;;  %1783 = vmatpush.msrb.mxu3 %v1312_v14  ;;  %v1111_v45 = vmul.f32 %v839_v27, %v4923_v43  ;;  %v1239_v41 = vmul.f32 %v903_v46, %v4923_v43  ;;  %v831_v23 = vperm.slane %v4474_v38, 6  ;;  %v895_v14 = vperm.slane %v4506_v25, 6 }
 0x118   : > { %1596 = vmatmul.f32.gmra.mxu0 %v4587_v54  ;;  %1625 = vmatmul.f32.gmra.mxu1 %v4589_v55  ;;  %v1112_v26 = vmul.f32 %v840_v56, %v4931_v42  ;;  %v1240_v51 = vmul.f32 %v904_v49, %v4931_v42  ;;  %v832_v13 = vperm.slane %v4474_v38, 7  ;;  %v896_v50 = vperm.slane %v4506_v25, 7 }
 0x119   : > { %1654 = vmatmul.f32.gmra.mxu2 %v4587_v54  ;;  %1683 = vmatmul.f32.gmra.mxu3 %v4589_v55  ;;  %v1151_v54 = vmul.f32 %v863_v53, %v4935_v15  ;;  %v1279_v55 = vmul.f32 %v927_v57, %v4935_v15  ;;  %v1104_v53 = vmul.f32 %v840_v56, %v4937_v35 }
 0x11a   : > { %1697 = vmatpush.msrb.mxu0 %v1175_v18  ;;  %1726 = vmatpush.msrb.mxu1 %v1303_v40  ;;  %v1103_v18 = vmul.f32 %v839_v27, %v4935_v15  ;;  %v1231_v40 = vmul.f32 %v903_v46, %v4935_v15  ;;  %v1232_v57 = vmul.f32 %v904_v49, %v4937_v35  ;;  %v5063_v46 = vld [vmem:[%s5563_s2 + $0x8] sm:$0xff] }
 0x11b   : > { %1755 = vmatpush.msrb.mxu2 %v1176_v9  ;;  %1784 = vmatpush.msrb.mxu3 %v1304_v28  ;;  %v1095_v38 = vmul.f32 %v831_v23, %v4923_v43  ;;  %v1223_v25 = vmul.f32 %v895_v14, %v4923_v43  ;;  %v1096_v9 = vmul.f32 %v832_v13, %v4931_v42  ;;  %v3352_v43 = vld [vmem:[#allocation2] sm:$0xff] }
 0x11c   : > { %1698 = vmatpush.msrb.mxu0 %v1167_v1  ;;  %1727 = vmatpush.msrb.mxu1 %v1295_v20  ;;  %v1224_v28 = vmul.f32 %v896_v50, %v4931_v42  ;;  %v1087_v7 = vmul.f32 %v831_v23, %v4935_v15  ;;  %v1215_v60 = vmul.f32 %v895_v14, %v4935_v15  ;;  %v3353_v42 = vld [vmem:[#allocation2 + $0x8] sm:$0xff] }
 0x11d   : > { %1756 = vmatpush.msrb.mxu2 %v1168_v10  ;;  %1785 = vmatpush.msrb.mxu3 %v1296_v11  ;;  %v1088_v1 = vmul.f32 %v832_v13, %v4937_v35  ;;  %v1216_v20 = vmul.f32 %v896_v50, %v4937_v35  ;;  %v3354_v11 = vld [vmem:[#allocation2 + $0x10] sm:$0xff] }
 0x11e   : > { %1699 = vmatpush.msrb.mxu0 %v1159_v6  ;;  %1728 = vmatpush.msrb.mxu1 %v1287_v24  ;;  %v3355_v6 = vld [vmem:[#allocation2 + $0x18] sm:$0xff] }
 0x11f   : > { %1757 = vmatpush.msrb.mxu2 %v1160_v36  ;;  %1786 = vmatpush.msrb.mxu3 %v1288_v59 }
 0x120   : > { %1700 = vmatpush.msrb.mxu0 %v1151_v54  ;;  %1729 = vmatpush.msrb.mxu1 %v1279_v55  ;;  %v3356_v54 = vld [vmem:[#allocation2 + $0x20] sm:$0xff]  ;;  %v3357_v55 = vld [vmem:[#allocation2 + $0x28] sm:$0xff] }
 0x121   : > { %1758 = vmatpush.msrb.mxu2 %v1152_v2  ;;  %1787 = vmatpush.msrb.mxu3 %v1280_v32 }
 0x122   : > { %1599 = vmatmul.f32.gmra.mxu0 %v4621_v31  ;;  %1628 = vmatmul.f32.gmra.mxu1 %v4623_v62 }
 0x123   : > { %1657 = vmatmul.f32.gmra.mxu2 %v4621_v31  ;;  %1686 = vmatmul.f32.gmra.mxu3 %v4623_v62  ;;  %v1119_v31 = vmul.f32 %v847_v37, %v4935_v15  ;;  %v1247_v62 = vmul.f32 %v911_v33, %v4935_v15 }
 0x124   : > { %1701 = vmatpush.msrb.mxu0 %v1143_v4  ;;  %1730 = vmatpush.msrb.mxu1 %v1271_v52 }
 0x125   : > { %1759 = vmatpush.msrb.mxu2 %v1144_v8  ;;  %1788 = vmatpush.msrb.mxu3 %v1272_v21 }
 0x126   : > { %1702 = vmatpush.msrb.mxu0 %v1135_v44  ;;  %1731 = vmatpush.msrb.mxu1 %v1263_v39 }
 0x127   : > { %1760 = vmatpush.msrb.mxu2 %v1136_v16  ;;  %1789 = vmatpush.msrb.mxu3 %v1264_v22 }
 0x128   : > { %1703 = vmatpush.msrb.mxu0 %v1127_v5  ;;  %1732 = vmatpush.msrb.mxu1 %v1255_v58 }
 0x129   : > { %1761 = vmatpush.msrb.mxu2 %v1128_v3  ;;  %1790 = vmatpush.msrb.mxu3 %v1256_v12  ;;  %v5054_v3 = vld [vmem:[%s5563_s2] sm:$0xff] }
 0x12a   : > { %1704 = vmatpush.msrb.mxu0 %v1119_v31  ;;  %1733 = vmatpush.msrb.mxu1 %v1247_v62 }
 0x12b   : > { %1762 = vmatpush.msrb.mxu2 %v1120_v34  ;;  %1791 = vmatpush.msrb.mxu3 %v1248_v30 }
 0x12c   : > { %1602 = vmatmul.f32.gmra.mxu0 %v5665_v17  ;;  %1631 = vmatmul.f32.gmra.mxu1 %v5666_v19 }
 0x12d   : > { %1660 = vmatmul.f32.gmra.mxu2 %v5665_v17  ;;  %1689 = vmatmul.f32.gmra.mxu3 %v5666_v19 }
 0x12e   : > { %1705 = vmatpush.msrb.mxu0 %v1111_v45  ;;  %1734 = vmatpush.msrb.mxu1 %v1239_v41  ;;  %v5072_v45 = vld [vmem:[%s5563_s2 + $0x10] sm:$0xff] }
 0x12f   : > { %1763 = vmatpush.msrb.mxu2 %v1112_v26  ;;  %1792 = vmatpush.msrb.mxu3 %v1240_v51 }
 0x130   : > { %1706 = vmatpush.msrb.mxu0 %v1103_v18  ;;  %1735 = vmatpush.msrb.mxu1 %v1231_v40 }
 0x131   : > { %1764 = vmatpush.msrb.mxu2 %v1104_v53  ;;  %1793 = vmatpush.msrb.mxu3 %v1232_v57  ;;  %v5081_v53 = vld [vmem:[%s5563_s2 + $0x18] sm:$0xff] }
 0x132   : > { %1707 = vmatpush.msrb.mxu0 %v1095_v38  ;;  %1736 = vmatpush.msrb.mxu1 %v1223_v25 }
 0x133   : > { %1765 = vmatpush.msrb.mxu2 %v1096_v9  ;;  %1794 = vmatpush.msrb.mxu3 %v1224_v28 }
 0x134   : > { %1708 = vmatpush.msrb.mxu0 %v1087_v7  ;;  %1737 = vmatpush.msrb.mxu1 %v1215_v60 }
 0x135   : > { %1766 = vmatpush.msrb.mxu2 %v1088_v1  ;;  %1795 = vmatpush.msrb.mxu3 %v1216_v20 }
 0x136   : > { %1709 = vmatmul.f32.vlgmr.msrb.gmra.mxu0 %v3352_v43  ;;  %1738 = vmatmul.f32.vlgmr.msrb.gmra.mxu1 %v3353_v42 }
 0x137   : > { %1767 = vmatmul.f32.vlgmr.msrb.gmra.mxu2 %v3352_v43  ;;  %1796 = vmatmul.f32.vlgmr.msrb.gmra.mxu3 %v3353_v42  ;;  %v3596_v43 = vmov 32  }
 0x138   : > { %3340 = vset.pattern.permute.xlu0 %v3596_v43  ;;  %3341 = vset.pattern.permute.xlu1 %v3596_v43 }
 0x139   : > { %v1362_v15 = vpop.f32.mrf.mxu0  ;;  %1830 = vperm.xlu0 %3340, %v5081_v53   ;;  %1820 = vperm.xlu1 %3341, %v5063_v46  }
 0x13a   : > { %3343 = vset.pattern.permute.xlu2 %v3596_v43 }
 0x13b   : > { %v1391_v10 = vpop.f32.mrf.mxu1  ;;  %1815 = vperm.xlu2 %3343, %v5054_v3  }
 0x13c   : > { %v1392_v21 = vadd.f32 %v1391_v10, %v1362_v15 }
 0x13e   : > { %1712 = vmatmul.f32.gmra.mxu0 %v3354_v11  ;;  %1741 = vmatmul.f32.gmra.mxu1 %v3355_v6 }
 0x13f   : > { %1770 = vmatmul.f32.gmra.mxu2 %v3354_v11  ;;  %1799 = vmatmul.f32.gmra.mxu3 %v3355_v6  ;;  %v1420_v35 = vpop.f32.mrf.mxu2  ;;  %v3597_v6 = vmov 0  }
 0x141   : > { %v1449_v24 = vpop.f32.mrf.mxu3  ;;  %1825 = vperm.xlu0 %3340, %v5072_v45   ;;  %3342 = vset.pattern.permute.xlu1 %v3597_v6 }
 0x142   : > { %v1450_v22 = vadd.f32 %v1449_v24, %v1420_v35  ;;  %v5106_v35 = vld [vmem:[%s5567_s6 + $0x18] sm:$0xff] }
 0x143   : > { %2144 = vperm.xlu1 %3342, %v5106_v35   ;;  %3344 = vset.pattern.permute.xlu2 %v3597_v6 }
 0x145   : > { %v1365_v36 = vpop.f32.mrf.mxu0  ;;  %v1394_v59 = vpop.f32.mrf.mxu1 }
 0x146   : > { %1715 = vmatmul.f32.gmra.mxu0 %v3356_v54  ;;  %1744 = vmatmul.f32.gmra.mxu1 %v3357_v55  ;;  %v1395_v8 = vadd.f32 %v1394_v59, %v1365_v36  ;;  %v5114_v59 = vld [vmem:[%s5567_s6 + $0x8] sm:$0xff] }
 0x147   : > { %1773 = vmatmul.f32.gmra.mxu2 %v3356_v54  ;;  %1802 = vmatmul.f32.gmra.mxu3 %v3357_v55 }
 0x149   : > { %3345 = vset.pattern.permute.xlu0 %v3597_v6 }
 0x14a   : > { %2134 = vperm.xlu0 %3345, %v5114_v59  }
 0x14c   : > { %v1423_v61 = vpop.f32.mrf.mxu2  ;;  %v1452_v47 = vpop.f32.mrf.mxu3 }
 0x14d   : > { %v1453_v16 = vadd.f32 %v1452_v47, %v1423_v61  ;;  %v5122_v47 = vld [vmem:[%s5567_s6] sm:$0xff] }
 0x14e   : > { %1718 = vmatmul.f32.gmra.mxu0 %v5665_v17  ;;  %1747 = vmatmul.f32.gmra.mxu1 %v5666_v19 }
 0x14f   : > { %1776 = vmatmul.f32.gmra.mxu2 %v5665_v17  ;;  %1805 = vmatmul.f32.gmra.mxu3 %v5666_v19  ;;  %v1368_v2 = vpop.f32.mrf.mxu0  ;;  %v1397_v32 = vpop.f32.mrf.mxu1 }
 0x150   : > { %v1398_v33 = vadd.f32 %v1397_v32, %v1368_v2  ;;  %2129 = vperm.xlu1 %3342, %v5122_v47  }
 0x156   : > { %v1426_v29 = vpop.f32.mrf.mxu2  ;;  %v1455_v63 = vpop.f32.mrf.mxu3 }
 0x157   : > { %v1456_v17 = vadd.f32 %v1455_v63, %v1426_v29 }
 0x159   : > { %v1371_v4 = vpop.f32.mrf.mxu0  ;;  %v1400_v52 = vpop.f32.mrf.mxu1 }
 0x15a   : > { %v1401_v37 = vadd.f32 %v1400_v52, %v1371_v4 }
 0x15c   : > { %1903 = vmatpush.msra.mxu0 %v1401_v37 }
 0x15e   : > { %1904 = vmatpush.msra.mxu0 %v1398_v33 }
 0x160   : > { %v1429_v48 = vpop.f32.mrf.mxu2  ;;  %v1458_v0 = vpop.f32.mrf.mxu3  ;;  %1905 = vmatpush.msra.mxu0 %v1395_v8 }
 0x161   : > { %v1459_v44 = vadd.f32 %v1458_v0, %v1429_v48 }
 0x162   : > { %1906 = vmatpush.msra.mxu0 %v1392_v21 }
 0x163   : > { %v1478_v39 = vpop.f32.mrf.mxu0  ;;  %v1507_v19 = vpop.f32.mrf.mxu1  ;;  %1932 = vmatpush.msra.mxu1 %v1459_v44  ;;  %3129 = vmatmul.msk.f32.vlgmr.msra.gmra.mxu0 %vm1882_vm1, %v5054_v3 }
 0x164   : > { %v1508_v13 = vadd.f32 %v1507_v19, %v1478_v39  ;;  %v5134_v19 = vld [vmem:[%s5567_s6 + $0x10] sm:$0xff] }
 0x165   : > { %1933 = vmatpush.msra.mxu1 %v1456_v17  ;;  %2139 = vperm.xlu2 %3344, %v5134_v19  }
 0x167   : > { %1934 = vmatpush.msra.mxu1 %v1453_v16 }
 0x169   : > { %1935 = vmatpush.msra.mxu1 %v1450_v22 }
 0x16a   : > { %v1536_v5 = vpop.f32.mrf.mxu2  ;;  %v1565_v58 = vpop.f32.mrf.mxu3  ;;  %3133 = vmatmul.msk.f32.vlgmr.msra.gmra.mxu1 %vm1882_vm1, %v5054_v3 }
 0x16b   : > { %3130 = vmatmul.msk.f32.gmra.mxu0 %vm1882_vm1, %v5063_v46  ;;  %v1566_v28 = vadd.f32 %v1565_v58, %v1536_v5 }
 0x16d   : > { %v1481_v12 = vpop.f32.mrf.mxu0  ;;  %v1510_v31 = vpop.f32.mrf.mxu1 }
 0x16e   : > { %v1511_v51 = vadd.f32 %v1510_v31, %v1481_v12 }
 0x172   : > { %3134 = vmatmul.msk.f32.gmra.mxu1 %vm1882_vm1, %v5063_v46 }
 0x173   : > { %3131 = vmatmul.msk.f32.gmra.mxu0 %vm1882_vm1, %v5072_v45 }
 0x174   : > { %v1539_v62 = vpop.f32.mrf.mxu2  ;;  %v1568_v27 = vpop.f32.mrf.mxu3 }
 0x175   : > { %v1569_v9 = vadd.f32 %v1568_v27, %v1539_v62 }
 0x177   : > { %v1484_v34 = vpop.f32.mrf.mxu0  ;;  %v1513_v30 = vpop.f32.mrf.mxu1 }
 0x178   : > { %v1514_v26 = vadd.f32 %v1513_v30, %v1484_v34 }
 0x17a   : > { %3135 = vmatmul.msk.f32.gmra.mxu1 %vm1882_vm1, %v5072_v45 }
 0x17b   : > { %3132 = vmatmul.msk.f32.gmra.mxu0 %vm1882_vm1, %v5081_v53 }
 0x17e   : > { %v1542_v56 = vpop.f32.mrf.mxu2  ;;  %v1571_v49 = vpop.f32.mrf.mxu3 }
 0x17f   : > { %v1572_v57 = vadd.f32 %v1571_v49, %v1542_v56 }
 0x181   : > { %v1487_v41 = vpop.f32.mrf.mxu0  ;;  %v1516_v23 = vpop.f32.mrf.mxu1 }
 0x182   : > { %v1517_v14 = vadd.f32 %v1516_v23, %v1487_v41  ;;  %3136 = vmatmul.msk.f32.gmra.mxu1 %vm1882_vm1, %v5081_v53 }
 0x184   : > { %1961 = vmatpush.msra.mxu2 %v1517_v14 }
 0x186   : > { %1962 = vmatpush.msra.mxu2 %v1514_v26 }
 0x188   : > { %v1545_v50 = vpop.f32.mrf.mxu2  ;;  %v1574_v18 = vpop.f32.mrf.mxu3  ;;  %1963 = vmatpush.msra.mxu2 %v1511_v51 }
 0x189   : > { %v1575_v40 = vadd.f32 %v1574_v18, %v1545_v50 }
 0x18a   : > { %1964 = vmatpush.msra.mxu2 %v1508_v13 }
 0x18b   : > { %v1594_v38 = vpop.f32.mrf.mxu0  ;;  %v1623_v25 = vpop.f32.mrf.mxu1  ;;  %1990 = vmatpush.msra.mxu3 %v1575_v40  ;;  %3137 = vmatmul.msk.f32.vlgmr.msra.gmra.mxu2 %vm1882_vm1, %v5054_v3 }
 0x18c   : > { %v1624_v29 = vadd.f32 %v1623_v25, %v1594_v38  ;;  %v5164_v38 = vld [vmem:[%s3770_s16 + $0x2] ss:$4 sm:$0xff] }
 0x18d   : > { %1991 = vmatpush.msra.mxu3 %v1572_v57 }
 0x18f   : > { %1992 = vmatpush.msra.mxu3 %v1569_v9 }
 0x191   : > { %1993 = vmatpush.msra.mxu3 %v1566_v28 }
 0x192   : > { %v1652_v7 = vpop.f32.mrf.mxu2  ;;  %v1681_v60 = vpop.f32.mrf.mxu3  ;;  %3141 = vmatmul.msk.f32.vlgmr.msra.gmra.mxu3 %vm1882_vm1, %v5054_v3 }
 0x193   : > { %3138 = vmatmul.msk.f32.gmra.mxu2 %vm1882_vm1, %v5063_v46  ;;  %v1682_v48 = vadd.f32 %v1681_v60, %v1652_v7 }
 0x195   : > { %v1597_v1 = vpop.f32.mrf.mxu0  ;;  %v1626_v20 = vpop.f32.mrf.mxu1 }
 0x196   : > { %v1627_v32 = vadd.f32 %v1626_v20, %v1597_v1  ;;  %v5174_v60 = vpop.permute.xlu2 %1815  ;;  %v1834_v1 = vperm.slane %v5164_v38, 0 }
 0x19a   : > { %3142 = vmatmul.msk.f32.gmra.mxu3 %vm1882_vm1, %v5063_v46 }
 0x19b   : > { %3139 = vmatmul.msk.f32.gmra.mxu2 %vm1882_vm1, %v5072_v45 }
 0x19c   : > { %v1655_v42 = vpop.f32.mrf.mxu2  ;;  %v1684_v15 = vpop.f32.mrf.mxu3 }
 0x19d   : > { %v1685_v21 = vadd.f32 %v1684_v15, %v1655_v42 }
 0x19f   : > { %v1600_v10 = vpop.f32.mrf.mxu0  ;;  %v1629_v11 = vpop.f32.mrf.mxu1 }
 0x1a0   : > { %v1630_v2 = vadd.f32 %v1629_v11, %v1600_v10 }
 0x1a2   : > { %3143 = vmatmul.msk.f32.gmra.mxu3 %vm1882_vm1, %v5072_v45 }
 0x1a3   : > { %3140 = vmatmul.msk.f32.gmra.mxu2 %vm1882_vm1, %v5081_v53 }
 0x1a6   : > { %v1658_v24 = vpop.f32.mrf.mxu2  ;;  %v1687_v36 = vpop.f32.mrf.mxu3 }
 0x1a7   : > { %v1688_v37 = vadd.f32 %v1687_v36, %v1658_v24 }
 0x1a9   : > { %v1603_v54 = vpop.f32.mrf.mxu0  ;;  %v1632_v55 = vpop.f32.mrf.mxu1 }
 0x1aa   : > { %v1633_v61 = vadd.f32 %v1632_v55, %v1603_v54  ;;  %3144 = vmatmul.msk.f32.gmra.mxu3 %vm1882_vm1, %v5081_v53 }
 0x1ab   : > { %v5166_v25 = vpop.permute.xlu0 %1830  ;;  %v5168_v9 = vpop.permute.xlu1 %1820 }
 0x1ac   : > { %2019 = vmatpush.msrb.mxu0 %v1633_v61  ;;  %v1874_v15 = vmul.f32 %v1834_v1, %v5166_v25 }
 0x1ae   : > { %2020 = vmatpush.msrb.mxu0 %v1630_v2 }
 0x1b0   : > { %v1661_v63 = vpop.f32.mrf.mxu2  ;;  %v1690_v4 = vpop.f32.mrf.mxu3  ;;  %2021 = vmatpush.msrb.mxu0 %v1627_v32 }
 0x1b1   : > { %v1691_v52 = vadd.f32 %v1690_v4, %v1661_v63  ;;  %v1858_v63 = vmul.f32 %v1834_v1, %v5168_v9 }
 0x1b2   : > { %2022 = vmatpush.msrb.mxu0 %v1624_v29 }
 0x1b3   : > { %v1710_v33 = vpop.f32.mrf.mxu0  ;;  %v1739_v8 = vpop.f32.mrf.mxu1  ;;  %2048 = vmatpush.msrb.mxu1 %v1691_v52  ;;  %3145 = vmatmul.msk.f32.vlgmr.msrb.gmra.mxu0 %vm1882_vm1, %v5054_v3 }
 0x1b4   : > { %v1740_v49 = vadd.f32 %v1739_v8, %v1710_v33 }
 0x1b5   : > { %2049 = vmatpush.msrb.mxu1 %v1688_v37  ;;  %v5182_v11 = vpop.permute.xlu1 %2144 }
 0x1b7   : > { %2050 = vmatpush.msrb.mxu1 %v1685_v21 }
 0x1b9   : > { %2051 = vmatpush.msrb.mxu1 %v1682_v48 }
 0x1ba   : > { %v1768_v0 = vpop.f32.mrf.mxu2  ;;  %v1797_v44 = vpop.f32.mrf.mxu3  ;;  %3149 = vmatmul.msk.f32.vlgmr.msrb.gmra.mxu1 %vm1882_vm1, %v5054_v3 }
 0x1bb   : > { %v1713_v17 = vpop.f32.mrf.mxu0  ;;  %v1742_v39 = vpop.f32.mrf.mxu1  ;;  %3146 = vmatmul.msk.f32.gmra.mxu0 %vm1882_vm1, %v5063_v46  ;;  %v1798_v13 = vadd.f32 %v1797_v44, %v1768_v0  ;;  %v1836_v0 = vperm.slane %v5164_v38, 2 }
 0x1bc   : > { %v1743_v56 = vadd.f32 %v1742_v39, %v1713_v17 }
 0x1bf   : > { %v5188_v32 = vpop.permute.xlu2 %2139 }
 0x1c2   : > { %v1771_v16 = vpop.f32.mrf.mxu2  ;;  %v1800_v22 = vpop.f32.mrf.mxu3  ;;  %3150 = vmatmul.msk.f32.gmra.mxu1 %vm1882_vm1, %v5063_v46 }
 0x1c3   : > { %v1716_v5 = vpop.f32.mrf.mxu0  ;;  %v1745_v58 = vpop.f32.mrf.mxu1  ;;  %3147 = vmatmul.msk.f32.gmra.mxu0 %vm1882_vm1, %v5072_v45  ;;  %v1801_v51 = vadd.f32 %v1800_v22, %v1771_v16 }
 0x1c4   : > { %v1746_v30 = vadd.f32 %v1745_v58, %v1716_v5  ;;  %v1850_v5 = vmul.f32 %v1834_v1, %v5174_v60 }
 0x1ca   : > { %v1774_v12 = vpop.f32.mrf.mxu2  ;;  %v1803_v31 = vpop.f32.mrf.mxu3  ;;  %3151 = vmatmul.msk.f32.gmra.mxu1 %vm1882_vm1, %v5072_v45 }
 0x1cb   : > { %v1719_v62 = vpop.f32.mrf.mxu0  ;;  %v1748_v27 = vpop.f32.mrf.mxu1  ;;  %3148 = vmatmul.msk.f32.gmra.mxu0 %vm1882_vm1, %v5081_v53  ;;  %v1804_v26 = vadd.f32 %v1803_v31, %v1774_v12 }
 0x1cc   : > { %v1749_v34 = vadd.f32 %v1748_v27, %v1719_v62  ;;  %v5200_v31 = vpop.permute.xlu1 %2129 }
 0x1ce   : > { %2077 = vmatpush.msrb.mxu2 %v1749_v34 }
 0x1d0   : > { %2078 = vmatpush.msrb.mxu2 %v1746_v30 }
 0x1d2   : > { %v1777_v41 = vpop.f32.mrf.mxu2  ;;  %v1806_v23 = vpop.f32.mrf.mxu3  ;;  %2079 = vmatpush.msrb.mxu2 %v1743_v56  ;;  %3152 = vmatmul.msk.f32.gmra.mxu1 %vm1882_vm1, %v5081_v53 }
 0x1d3   : > { %v1807_v14 = vadd.f32 %v1806_v23, %v1777_v41  ;;  %v1860_v41 = vmul.f32 %v1836_v0, %v5168_v9 }
 0x1d4   : > { %2080 = vmatpush.msrb.mxu2 %v1740_v49 }
 0x1d5   : > { %2106 = vmatpush.msrb.mxu3 %v1807_v14  ;;  %3153 = vmatmul.msk.f32.vlgmr.msrb.gmra.mxu2 %vm1882_vm1, %v5054_v3 }
 0x1d7   : > { %2107 = vmatpush.msrb.mxu3 %v1804_v26  ;;  %v1852_v26 = vmul.f32 %v1836_v0, %v5174_v60 }
 0x1d9   : > { %2108 = vmatpush.msrb.mxu3 %v1801_v51  ;;  %v1876_v51 = vmul.f32 %v1836_v0, %v5166_v25 }
 0x1db   : > { %2109 = vmatpush.msrb.mxu3 %v1798_v13 }
 0x1dc   : > { %3157 = vmatmul.msk.f32.vlgmr.msrb.gmra.mxu3 %vm1882_vm1, %v5054_v3 }
 0x1dd   : > { %3154 = vmatmul.msk.f32.gmra.mxu2 %vm1882_vm1, %v5063_v46 }
 0x1e0   : > { %v1908_v3 = vpop.f32.mrf.mxu0 }
 0x1e1   : > { %v1909_v30 = vadd.f32 %v1908_v3, %v1850_v5 }
 0x1e3   : > { %v2147_v23 = vadd.f32 %v5200_v31, %v1909_v30  ;;  %v5256_v30 = vld [vmem:[#allocation7 + $0x10] sm:$0xff] }
 0x1e4   : > { %3158 = vmatmul.msk.f32.gmra.mxu3 %vm1882_vm1, %v5063_v46 }
 0x1e5   : > { %3155 = vmatmul.msk.f32.gmra.mxu2 %vm1882_vm1, %v5072_v45 }
 0x1e7   : > { %v1937_v50 = vpop.f32.mrf.mxu1 }
 0x1e8   : > { %v1911_v40 = vpop.f32.mrf.mxu0 }
 0x1e9   : > { %v1912_v48 = vadd.f32 %v1911_v40, %v1858_v63  ;;  %v1841_v63 = vperm.slane %v5164_v38, 7 }
 0x1ec   : > { %3159 = vmatmul.msk.f32.gmra.mxu3 %vm1882_vm1, %v5072_v45  ;;  %v1835_v45 = vperm.slane %v5164_v38, 1 }
 0x1ed   : > { %3156 = vmatmul.msk.f32.gmra.mxu2 %vm1882_vm1, %v5081_v53 }
 0x1ee   : > { %v1875_v7 = vmul.f32 %v1835_v45, %v5166_v25  ;;  %v1859_v4 = vmul.f32 %v1835_v45, %v5168_v9  ;;  %v1851_v58 = vmul.f32 %v1835_v45, %v5174_v60 }
 0x1ef   : > { %v1940_v18 = vpop.f32.mrf.mxu1 }
 0x1f0   : > { %v1914_v46 = vpop.f32.mrf.mxu0  ;;  %v1941_v17 = vadd.f32 %v1940_v18, %v1859_v4  ;;  %v1938_v56 = vadd.f32 %v1937_v50, %v1851_v58  ;;  %v2179_v18 = vmax.f32 %v2147_v23, 0.0  ;;  %v1837_v50 = vperm.slane %v5164_v38, 3 }
 0x1f2   : > { %v2148_v14 = vadd.f32 %v5200_v31, %v1938_v56 }
 0x1f4   : > { %3160 = vmatmul.msk.f32.gmra.mxu3 %vm1882_vm1, %v5081_v53  ;;  %v5176_v53 = vpop.permute.xlu0 %1825  ;;  %v2180_v40 = vmax.f32 %v2148_v14, 0.0 }
 0x1f5   : > { %v1866_v36 = vmul.f32 %v1834_v1, %v5176_v53  ;;  %v1867_v54 = vmul.f32 %v1835_v45, %v5176_v53  ;;  %v1868_v27 = vmul.f32 %v1836_v0, %v5176_v53 }
 0x1f7   : > { %v1943_v57 = vpop.f32.mrf.mxu1  ;;  %v1915_v2 = vadd.f32 %v1914_v46, %v1866_v36  ;;  %v1877_v36 = vmul.f32 %v1837_v50, %v5166_v25 }
 0x1f8   : > { %v1917_v43 = vpop.f32.mrf.mxu0  ;;  %v1944_v29 = vadd.f32 %v1943_v57, %v1867_v54  ;;  %v5209_v57 = vld [vmem:[#allocation7] sm:$0xff] }
 0x1f9   : > { %v1918_v24 = vadd.f32 %v1917_v43, %v1874_v15  ;;  %v2163_v33 = vadd.f32 %v5188_v32, %v1915_v2  ;;  %v1861_v15 = vmul.f32 %v1837_v50, %v5168_v9  ;;  %v5225_v2 = vld [vmem:[#allocation7 + $0x8] sm:$0xff] }
 0x1fa   : > { %v2164_v21 = vadd.f32 %v5188_v32, %v1944_v29  ;;  %v1840_v29 = vperm.slane %v5164_v38, 6 }
 0x1fb   : > { %v2171_v55 = vadd.f32 %v5182_v11, %v1918_v24  ;;  %v2195_v44 = vmax.f32 %v2163_v33, 0.0  ;;  %v1853_v24 = vmul.f32 %v1837_v50, %v5174_v60 }
 0x1fc   : > { %v5193_v8 = vpop.permute.xlu0 %2134  ;;  %v2196_v16 = vmax.f32 %v2164_v21, 0.0  ;;  %v5231_v21 = vmul.f32 %v1840_v29, %v5176_v53  ;;  %v5237_v0 = vmul.f32 %v1840_v29, %v5166_v25  ;;  %v5259_v56 = vmul.f32 %v1840_v29, %v5174_v60 }
 0x1fd   : > { %v2203_v52 = vmax.f32 %v2171_v55, 0.0  ;;  %v2155_v22 = vadd.f32 %v5193_v8, %v1912_v48  ;;  %v2156_v62 = vadd.f32 %v5193_v8, %v1941_v17  ;;  %v5234_v48 = vmul.f32 %v1841_v63, %v5176_v53 }
 0x1ff   : > { %v1946_v20 = vpop.f32.mrf.mxu1  ;;  %2255 = vmatpush.msra.mxu0 %v2203_v52  ;;  %v2187_v34 = vmax.f32 %v2155_v22, 0.0  ;;  %v2188_v49 = vmax.f32 %v2156_v62, 0.0  ;;  %v5251_v22 = vmul.f32 %v1841_v63, %v5168_v9 }
 0x200   : > { %v1947_v42 = vadd.f32 %v1946_v20, %v1875_v7  ;;  %v1869_v7 = vmul.f32 %v1837_v50, %v5176_v53 }
 0x201   : > { %2256 = vmatpush.msra.mxu0 %v2195_v44 }
 0x202   : > { %v2172_v61 = vadd.f32 %v5182_v11, %v1947_v42 }
 0x203   : > { %2257 = vmatpush.msra.mxu0 %v2187_v34 }
 0x204   : > { %v2204_v37 = vmax.f32 %v2172_v61, 0.0 }
 0x205   : > { %2258 = vmatpush.msra.mxu0 %v2179_v18 }
 0x206   : > { %2284 = vmatpush.msra.mxu1 %v2204_v37  ;;  %3161 = vmatmul.msk.f32.vlgmr.msra.gmra.mxu0 %vm1882_vm1, %v5209_v57 }
 0x208   : > { %2285 = vmatpush.msra.mxu1 %v2196_v16  ;;  %v5248_v16 = vmul.f32 %v1840_v29, %v5168_v9 }
 0x20a   : > { %2286 = vmatpush.msra.mxu1 %v2188_v49  ;;  %v5262_v49 = vmul.f32 %v1841_v63, %v5174_v60 }
 0x20c   : > { %2287 = vmatpush.msra.mxu1 %v2180_v40 }
 0x20d   : > { %3165 = vmatmul.msk.f32.vlgmr.msra.gmra.mxu1 %vm1882_vm1, %v5209_v57 }
 0x20e   : > { %v5171_v28 = vpop.f32.mrf.mxu2  ;;  %3162 = vmatmul.msk.f32.gmra.mxu0 %vm1882_vm1, %v5225_v2 }
 0x20f   : > { %v1967_v1 = vadd.f32 %v5171_v28, %v1852_v26 }
 0x211   : > { %v2149_v54 = vadd.f32 %v5200_v31, %v1967_v1  ;;  %v1839_v1 = vperm.slane %v5164_v38, 5 }
 0x215   : > { %v5180_v10 = vpop.f32.mrf.mxu3  ;;  %3166 = vmatmul.msk.f32.gmra.mxu1 %vm1882_vm1, %v5225_v2 }
 0x216   : > { %v1969_v6 = vpop.f32.mrf.mxu2  ;;  %v1996_v33 = vadd.f32 %v5180_v10, %v1853_v24  ;;  %v5245_v10 = vmul.f32 %v1841_v63, %v5166_v25  ;;  %3163 = vmatmul.msk.f32.gmra.mxu0 %vm1882_vm1, %v5256_v30  ;;  %v1855_v63 = vmul.f32 %v1839_v1, %v5174_v60 }
 0x217   : > { %v1970_v3 = vadd.f32 %v1969_v6, %v1860_v41 }
 0x218   : > { %v2150_v34 = vadd.f32 %v5200_v31, %v1996_v33 }
 0x219   : > { %v2157_v42 = vadd.f32 %v5193_v8, %v1970_v3 }
 0x21a   : > { %v2182_v23 = vmax.f32 %v2150_v34, 0.0 }
 0x21b   : > { %v2189_v4 = vmax.f32 %v2157_v42, 0.0 }
 0x21d   : > { %v1998_v39 = vpop.f32.mrf.mxu3  ;;  %3167 = vmatmul.msk.f32.gmra.mxu1 %vm1882_vm1, %v5256_v30 }
 0x21e   : > { %v1972_v12 = vpop.f32.mrf.mxu2  ;;  %v1999_v52 = vadd.f32 %v1998_v39, %v1861_v15  ;;  %v2181_v39 = vmax.f32 %v2149_v54, 0.0 }
 0x21f   : > { %v1973_v13 = vadd.f32 %v1972_v12, %v1868_v27 }
 0x220   : > { %v2158_v12 = vadd.f32 %v5193_v8, %v1999_v52 }
 0x221   : > { %v2165_v43 = vadd.f32 %v5188_v32, %v1973_v13  ;;  %v1838_v13 = vperm.slane %v5164_v38, 4 }
 0x222   : > { %v2190_v41 = vmax.f32 %v2158_v12, 0.0 }
 0x223   : > { %v2197_v61 = vmax.f32 %v2165_v43, 0.0  ;;  %v1870_v50 = vmul.f32 %v1838_v13, %v5176_v53  ;;  %v1862_v3 = vmul.f32 %v1838_v13, %v5168_v9 }
 0x225   : > { %v2001_v46 = vpop.f32.mrf.mxu3 }
 0x226   : > { %v1975_v45 = vpop.f32.mrf.mxu2  ;;  %v2002_v28 = vadd.f32 %v2001_v46, %v1869_v7  ;;  %v1854_v7 = vmul.f32 %v1838_v13, %v5174_v60 }
 0x227   : > { %v1976_v20 = vadd.f32 %v1975_v45, %v1876_v51  ;;  %v5272_v51 = vld [vmem:[#allocation7 + $0x18] sm:$0xff]  ;;  %v1878_v45 = vmul.f32 %v1838_v13, %v5166_v25 }
 0x228   : > { %v2166_v17 = vadd.f32 %v5188_v32, %v2002_v28  ;;  %3164 = vmatmul.msk.f32.gmra.mxu0 %vm1882_vm1, %v5272_v51  ;;  %3168 = vmatmul.msk.f32.gmra.mxu1 %vm1882_vm1, %v5272_v51 }
 0x229   : > { %v2173_v6 = vadd.f32 %v5182_v11, %v1976_v20 }
 0x22a   : > { %v2198_v27 = vmax.f32 %v2166_v17, 0.0 }
 0x22b   : > { %v2205_v55 = vmax.f32 %v2173_v6, 0.0 }
 0x22d   : > { %v2004_v37 = vpop.f32.mrf.mxu3  ;;  %2313 = vmatpush.msra.mxu2 %v2205_v55  ;;  %v1863_v55 = vmul.f32 %v1839_v1, %v5168_v9  ;;  %v3598_v9 = vmov 1  }
 0x22e   : > { %v2005_v44 = vadd.f32 %v2004_v37, %v1877_v36  ;;  %v1871_v36 = vmul.f32 %v1839_v1, %v5176_v53  ;;  %v1879_v53 = vmul.f32 %v1839_v1, %v5166_v25  ;;  %3347 = vset.pattern.permute.xlu1 %v3598_v9  ;;  %3348 = vset.pattern.permute.xlu0 %v3598_v9 }
 0x22f   : > { %2314 = vmatpush.msra.mxu2 %v2197_v61  ;;  %2224 = vperm.xlu1 %3347, %v5134_v19  }
 0x230   : > { %v2024_v5 = vpop.f32.mrf.mxu0  ;;  %v2174_v58 = vadd.f32 %v5182_v11, %v2005_v44  ;;  %2216 = vperm.xlu0 %3348, %v5122_v47   ;;  %3346 = vset.pattern.permute.xlu2 %v3598_v9 }
 0x231   : > { %2315 = vmatpush.msra.mxu2 %v2189_v4  ;;  %v2025_v24 = vadd.f32 %v2024_v5, %v1854_v7  ;;  %2228 = vperm.xlu2 %3346, %v5106_v35  }
 0x232   : > { %v2206_v62 = vmax.f32 %v2174_v58, 0.0 }
 0x233   : > { %2316 = vmatpush.msra.mxu2 %v2181_v39  ;;  %v2151_v29 = vadd.f32 %v5200_v31, %v2025_v24 }
 0x234   : > { %2342 = vmatpush.msra.mxu3 %v2206_v62  ;;  %3169 = vmatmul.msk.f32.vlgmr.msra.gmra.mxu2 %vm1882_vm1, %v5209_v57 }
 0x235   : > { %v2183_v17 = vmax.f32 %v2151_v29, 0.0 }
 0x236   : > { %2343 = vmatpush.msra.mxu3 %v2198_v27 }
 0x237   : > { %v2053_v14 = vpop.f32.mrf.mxu1 }
 0x238   : > { %v2027_v26 = vpop.f32.mrf.mxu0  ;;  %2344 = vmatpush.msra.mxu3 %v2190_v41  ;;  %v2054_v39 = vadd.f32 %v2053_v14, %v1855_v63 }
 0x239   : > { %v2028_v20 = vadd.f32 %v2027_v26, %v1862_v3  ;;  %2220 = vperm.xlu2 %3346, %v5114_v59  }
 0x23a   : > { %2345 = vmatpush.msra.mxu3 %v2182_v23  ;;  %v2152_v62 = vadd.f32 %v5200_v31, %v2054_v39 }
 0x23b   : > { %3173 = vmatmul.msk.f32.vlgmr.msra.gmra.mxu3 %vm1882_vm1, %v5209_v57  ;;  %v2159_v54 = vadd.f32 %v5193_v8, %v2028_v20 }
 0x23c   : > { %3170 = vmatmul.msk.f32.gmra.mxu2 %vm1882_vm1, %v5225_v2  ;;  %v2184_v41 = vmax.f32 %v2152_v62, 0.0 }
 0x23d   : > { %v2191_v37 = vmax.f32 %v2159_v54, 0.0 }
 0x23f   : > { %v2056_v18 = vpop.f32.mrf.mxu1 }
 0x240   : > { %v2030_v40 = vpop.f32.mrf.mxu0  ;;  %v2057_v33 = vadd.f32 %v2056_v18, %v1863_v55 }
 0x241   : > { %v2031_v46 = vadd.f32 %v2030_v40, %v1870_v50 }
 0x242   : > { %v2160_v25 = vadd.f32 %v5193_v8, %v2057_v33 }
 0x243   : > { %3174 = vmatmul.msk.f32.gmra.mxu3 %vm1882_vm1, %v5225_v2  ;;  %v2167_v15 = vadd.f32 %v5188_v32, %v2031_v46 }
 0x244   : > { %3171 = vmatmul.msk.f32.gmra.mxu2 %vm1882_vm1, %v5256_v30  ;;  %v2192_v27 = vmax.f32 %v2160_v25, 0.0 }
 0x245   : > { %v2199_v38 = vmax.f32 %v2167_v15, 0.0 }
 0x247   : > { %v2059_v43 = vpop.f32.mrf.mxu1 }
 0x248   : > { %v2033_v42 = vpop.f32.mrf.mxu0  ;;  %v2060_v4 = vadd.f32 %v2059_v43, %v1871_v36 }
 0x249   : > { %v2034_v6 = vadd.f32 %v2033_v42, %v1878_v45 }
 0x24a   : > { %v2168_v5 = vadd.f32 %v5188_v32, %v2060_v4 }
 0x24b   : > { %v2175_v28 = vadd.f32 %v5182_v11, %v2034_v6  ;;  %3175 = vmatmul.msk.f32.gmra.mxu3 %vm1882_vm1, %v5256_v30 }
 0x24c   : > { %3172 = vmatmul.msk.f32.gmra.mxu2 %vm1882_vm1, %v5272_v51  ;;  %v2200_v12 = vmax.f32 %v2168_v5, 0.0 }
 0x24d   : > { %v2207_v61 = vmax.f32 %v2175_v28, 0.0 }
 0x24f   : > { %v2062_v52 = vpop.f32.mrf.mxu1  ;;  %2371 = vmatpush.msrb.mxu0 %v2207_v61 }
 0x250   : > { %v2063_v44 = vadd.f32 %v2062_v52, %v1879_v53 }
 0x251   : > { %2372 = vmatpush.msrb.mxu0 %v2199_v38 }
 0x252   : > { %v2176_v58 = vadd.f32 %v5182_v11, %v2063_v44 }
 0x253   : > { %2373 = vmatpush.msrb.mxu0 %v2191_v37  ;;  %3176 = vmatmul.msk.f32.gmra.mxu3 %vm1882_vm1, %v5272_v51 }
 0x254   : > { %v2208_v60 = vmax.f32 %v2176_v58, 0.0 }
 0x255   : > { %2374 = vmatpush.msrb.mxu0 %v2183_v17 }
 0x256   : > { %2400 = vmatpush.msrb.mxu1 %v2208_v60  ;;  %3177 = vmatmul.msk.f32.vlgmr.msrb.gmra.mxu0 %vm1882_vm1, %v5209_v57 }
 0x258   : > { %v2082_v34 = vpop.f32.mrf.mxu2  ;;  %2401 = vmatpush.msrb.mxu1 %v2200_v12 }
 0x259   : > { %v2083_v45 = vadd.f32 %v2082_v34, %v5259_v56 }
 0x25a   : > { %2402 = vmatpush.msrb.mxu1 %v2192_v27 }
 0x25b   : > { %v2153_v42 = vadd.f32 %v5200_v31, %v2083_v45 }
 0x25c   : > { %2403 = vmatpush.msrb.mxu1 %v2184_v41 }
 0x25d   : > { %3181 = vmatmul.msk.f32.vlgmr.msrb.gmra.mxu1 %vm1882_vm1, %v5209_v57  ;;  %v2185_v54 = vmax.f32 %v2153_v42, 0.0  ;;  %v5381_v42 = vld [vmem:[#allocation8] sm:$0xff] }
 0x25e   : > { %3178 = vmatmul.msk.f32.gmra.mxu0 %vm1882_vm1, %v5225_v2 }
 0x25f   : > { %v2111_v23 = vpop.f32.mrf.mxu3 }
 0x260   : > { %v2085_v14 = vpop.f32.mrf.mxu2  ;;  %v2112_v24 = vadd.f32 %v2111_v23, %v5262_v49 }
 0x261   : > { %v2086_v3 = vadd.f32 %v2085_v14, %v5248_v16 }
 0x262   : > { %v2154_v38 = vadd.f32 %v5200_v31, %v2112_v24 }
 0x263   : > { %v2161_v20 = vadd.f32 %v5193_v8, %v2086_v3 }
 0x265   : > { %3182 = vmatmul.msk.f32.gmra.mxu1 %vm1882_vm1, %v5225_v2  ;;  %v2193_v6 = vmax.f32 %v2161_v20, 0.0 }
 0x266   : > { %3179 = vmatmul.msk.f32.gmra.mxu0 %vm1882_vm1, %v5256_v30 }
 0x267   : > { %v2114_v26 = vpop.f32.mrf.mxu3 }
 0x268   : > { %v2088_v13 = vpop.f32.mrf.mxu2 }
 0x269   : > { %v2089_v18 = vadd.f32 %v2088_v13, %v5231_v21 }
 0x26b   : > { %v2169_v7 = vadd.f32 %v5188_v32, %v2089_v18 }
 0x26d   : > { %3183 = vmatmul.msk.f32.gmra.mxu1 %vm1882_vm1, %v5256_v30  ;;  %v2201_v15 = vmax.f32 %v2169_v7, 0.0 }
 0x26e   : > { %3180 = vmatmul.msk.f32.gmra.mxu0 %vm1882_vm1, %v5272_v51 }
 0x26f   : > { %v2117_v40 = vpop.f32.mrf.mxu3 }
 0x270   : > { %v2091_v50 = vpop.f32.mrf.mxu2  ;;  %v2118_v21 = vadd.f32 %v2117_v40, %v5234_v48 }
 0x271   : > { %v2092_v46 = vadd.f32 %v2091_v50, %v5237_v0  ;;  %v2115_v0 = vadd.f32 %v2114_v26, %v5251_v22  ;;  %v2186_v22 = vmax.f32 %v2154_v38, 0.0  ;;  %v5392_v38 = vld [vmem:[#allocation8 + $0x8] sm:$0xff] }
 0x272   : > { %v2170_v36 = vadd.f32 %v5188_v32, %v2118_v21 }
 0x273   : > { %v2177_v1 = vadd.f32 %v5182_v11, %v2092_v46  ;;  %v2162_v48 = vadd.f32 %v5193_v8, %v2115_v0 }
 0x274   : > { %v2202_v61 = vmax.f32 %v2170_v36, 0.0 }
 0x275   : > { %v2209_v43 = vmax.f32 %v2177_v1, 0.0  ;;  %3184 = vmatmul.msk.f32.gmra.mxu1 %vm1882_vm1, %v5272_v51 }
 0x277   : > { %v2120_v16 = vpop.f32.mrf.mxu3  ;;  %2429 = vmatpush.msrb.mxu2 %v2209_v43 }
 0x278   : > { %v2121_v56 = vadd.f32 %v2120_v16, %v5245_v10  ;;  %v2194_v10 = vmax.f32 %v2162_v48, 0.0 }
 0x279   : > { %2430 = vmatpush.msrb.mxu2 %v2201_v15 }
 0x27a   : > { %v2178_v28 = vadd.f32 %v5182_v11, %v2121_v56 }
 0x27b   : > { %2431 = vmatpush.msrb.mxu2 %v2193_v6 }
 0x27c   : > { %v2210_v55 = vmax.f32 %v2178_v28, 0.0 }
 0x27d   : > { %2432 = vmatpush.msrb.mxu2 %v2185_v54 }
 0x27e   : > { %2458 = vmatpush.msrb.mxu3 %v2210_v55  ;;  %3185 = vmatmul.msk.f32.vlgmr.msrb.gmra.mxu2 %vm1882_vm1, %v5209_v57 }
 0x280   : > { %2459 = vmatpush.msrb.mxu3 %v2202_v61 }
 0x282   : > { %2460 = vmatpush.msrb.mxu3 %v2194_v10 }
 0x283   : > { %v2260_v11 = vpop.f32.mrf.mxu0 }
 0x284   : > { %2461 = vmatpush.msrb.mxu3 %v2186_v22  ;;  %v5402_v22 = vld [vmem:[#allocation8 + $0x10] sm:$0xff] }
 0x285   : > { %3189 = vmatmul.msk.f32.vlgmr.msrb.gmra.mxu3 %vm1882_vm1, %v5209_v57 }
 0x286   : > { %3186 = vmatmul.msk.f32.gmra.mxu2 %vm1882_vm1, %v5225_v2 }
 0x28a   : > { %v2289_v32 = vpop.f32.mrf.mxu1 }
 0x28b   : > { %v2263_v8 = vpop.f32.mrf.mxu0  ;;  %v5360_v4 = vpop.permute.xlu2 %2228 }
 0x28d   : > { %3190 = vmatmul.msk.f32.gmra.mxu3 %vm1882_vm1, %v5225_v2 }
 0x28e   : > { %3187 = vmatmul.msk.f32.gmra.mxu2 %vm1882_vm1, %v5256_v30 }
 0x292   : > { %v2292_v31 = vpop.f32.mrf.mxu1 }
 0x293   : > { %v2266_v49 = vpop.f32.mrf.mxu0  ;;  %v5366_v39 = vpop.permute.xlu2 %2220 }
 0x294   : > { %v2264_v60 = vadd.f32 %v2263_v8, %v5366_v39  ;;  %v2293_v12 = vadd.f32 %v2292_v31, %v5366_v39 }
 0x295   : > { %3191 = vmatmul.msk.f32.gmra.mxu3 %vm1882_vm1, %v5256_v30 }
 0x296   : > { %3188 = vmatmul.msk.f32.gmra.mxu2 %vm1882_vm1, %v5272_v51  ;;  %v2483_v13 = vmax.f32 %v2264_v60, 0.0  ;;  %v2484_v50 = vmax.f32 %v2293_v12, 0.0 }
 0x29a   : > { %v2295_v29 = vpop.f32.mrf.mxu1 }
 0x29d   : > { %3192 = vmatmul.msk.f32.gmra.mxu3 %vm1882_vm1, %v5272_v51 }
 0x2a1   : > { %v5364_v9 = vpop.permute.xlu1 %2224 }
 0x2a2   : > { %v5368_v5 = vpop.permute.xlu0 %2216  ;;  %v2267_v58 = vadd.f32 %v2266_v49, %v5364_v9  ;;  %v2296_v25 = vadd.f32 %v2295_v29, %v5364_v9  ;;  %v5415_v49 = vld [vmem:[#allocation8 + $0x18] sm:$0xff] }
 0x2a3   : > { %v2261_v34 = vadd.f32 %v2260_v11, %v5368_v5  ;;  %v2290_v41 = vadd.f32 %v2289_v32, %v5368_v5 }
 0x2a4   : > { %v2491_v14 = vmax.f32 %v2267_v58, 0.0  ;;  %v2492_v26 = vmax.f32 %v2296_v25, 0.0 }
 0x2a5   : > { %v2269_v53 = vpop.f32.mrf.mxu0  ;;  %v2298_v52 = vpop.f32.mrf.mxu1  ;;  %v2475_v3 = vmax.f32 %v2261_v34, 0.0  ;;  %v2476_v46 = vmax.f32 %v2290_v41, 0.0 }
 0x2a6   : > { %v2270_v30 = vadd.f32 %v2269_v53, %v5360_v4  ;;  %v2299_v37 = vadd.f32 %v2298_v52, %v5360_v4 }
 0x2a8   : > { %v2499_v51 = vmax.f32 %v2270_v30, 0.0  ;;  %v2500_v17 = vmax.f32 %v2299_v37, 0.0 }
 0x2aa   : > { %2551 = vmatpush.msra.mxu0 %v2499_v51  ;;  %2580 = vmatpush.msra.mxu1 %v2500_v17  ;;  %v3599_v51 = vmov 2  }
 0x2ab   : > { %3349 = vset.pattern.permute.xlu1 %v3599_v51  ;;  %3350 = vset.pattern.permute.xlu2 %v3599_v51 }
 0x2ac   : > { %2552 = vmatpush.msra.mxu0 %v2491_v14  ;;  %2581 = vmatpush.msra.mxu1 %v2492_v26 }
 0x2ad   : > { %2524 = vperm.xlu1 %3349, %v5106_v35   ;;  %2520 = vperm.xlu2 %3350, %v5134_v19  }
 0x2ae   : > { %2553 = vmatpush.msra.mxu0 %v2483_v13  ;;  %2582 = vmatpush.msra.mxu1 %v2484_v50 }
 0x2b0   : > { %2554 = vmatpush.msra.mxu0 %v2475_v3  ;;  %2583 = vmatpush.msra.mxu1 %v2476_v46 }
 0x2b1   : > { %3193 = vmatmul.msk.f32.vlgmr.msra.gmra.mxu0 %vm1882_vm1, %v5381_v42  ;;  %3197 = vmatmul.msk.f32.vlgmr.msra.gmra.mxu1 %vm1882_vm1, %v5381_v42 }
 0x2b5   : > { %2516 = vperm.xlu1 %3349, %v5114_v59   ;;  %2512 = vperm.xlu2 %3350, %v5122_v47  }
 0x2b7   : > { %v2318_v57 = vpop.f32.mrf.mxu2 }
 0x2b8   : > { %v2319_v1 = vadd.f32 %v2318_v57, %v5368_v5 }
 0x2b9   : > { %3194 = vmatmul.msk.f32.gmra.mxu0 %vm1882_vm1, %v5392_v38  ;;  %3198 = vmatmul.msk.f32.gmra.mxu1 %vm1882_vm1, %v5392_v38 }
 0x2ba   : > { %v2477_v16 = vmax.f32 %v2319_v1, 0.0 }
 0x2be   : > { %v2347_v2 = vpop.f32.mrf.mxu3 }
 0x2bf   : > { %v2321_v63 = vpop.f32.mrf.mxu2  ;;  %v2348_v36 = vadd.f32 %v2347_v2, %v5368_v5 }
 0x2c0   : > { %v2322_v40 = vadd.f32 %v2321_v63, %v5366_v39 }
 0x2c1   : > { %v2478_v55 = vmax.f32 %v2348_v36, 0.0  ;;  %3195 = vmatmul.msk.f32.gmra.mxu0 %vm1882_vm1, %v5402_v22  ;;  %3199 = vmatmul.msk.f32.gmra.mxu1 %vm1882_vm1, %v5402_v22 }
 0x2c2   : > { %v2485_v43 = vmax.f32 %v2322_v40, 0.0 }
 0x2c6   : > { %v2350_v33 = vpop.f32.mrf.mxu3 }
 0x2c7   : > { %v2324_v44 = vpop.f32.mrf.mxu2  ;;  %v2351_v56 = vadd.f32 %v2350_v33, %v5366_v39 }
 0x2c8   : > { %v2325_v27 = vadd.f32 %v2324_v44, %v5364_v9 }
 0x2c9   : > { %v2486_v54 = vmax.f32 %v2351_v56, 0.0  ;;  %3196 = vmatmul.msk.f32.gmra.mxu0 %vm1882_vm1, %v5415_v49  ;;  %3200 = vmatmul.msk.f32.gmra.mxu1 %vm1882_vm1, %v5415_v49 }
 0x2ca   : > { %v2493_v7 = vmax.f32 %v2325_v27, 0.0 }
 0x2ce   : > { %v2353_v62 = vpop.f32.mrf.mxu3 }
 0x2cf   : > { %v2327_v23 = vpop.f32.mrf.mxu2  ;;  %v2354_v21 = vadd.f32 %v2353_v62, %v5364_v9 }
 0x2d0   : > { %v2328_v18 = vadd.f32 %v2327_v23, %v5360_v4 }
 0x2d1   : > { %v2494_v24 = vmax.f32 %v2354_v21, 0.0 }
 0x2d2   : > { %v2501_v45 = vmax.f32 %v2328_v18, 0.0 }
 0x2d3   : > { %v2376_v20 = vpop.f32.mrf.mxu0 }
 0x2d4   : > { %2609 = vmatpush.msra.mxu2 %v2501_v45  ;;  %v2377_v63 = vadd.f32 %v2376_v20, %v5368_v5 }
 0x2d6   : > { %v2356_v15 = vpop.f32.mrf.mxu3  ;;  %2610 = vmatpush.msra.mxu2 %v2493_v7  ;;  %v2479_v37 = vmax.f32 %v2377_v63, 0.0 }
 0x2d7   : > { %v2357_v0 = vadd.f32 %v2356_v15, %v5360_v4 }
 0x2d8   : > { %2611 = vmatpush.msra.mxu2 %v2485_v43 }
 0x2d9   : > { %v2502_v6 = vmax.f32 %v2357_v0, 0.0 }
 0x2da   : > { %v2405_v28 = vpop.f32.mrf.mxu1  ;;  %2612 = vmatpush.msra.mxu2 %v2477_v16 }
 0x2db   : > { %2638 = vmatpush.msra.mxu3 %v2502_v6  ;;  %v2379_v48 = vpop.f32.mrf.mxu0  ;;  %3201 = vmatmul.msk.f32.vlgmr.msra.gmra.mxu2 %vm1882_vm1, %v5381_v42  ;;  %v2406_v25 = vadd.f32 %v2405_v28, %v5368_v5 }
 0x2dc   : > { %v2380_v31 = vadd.f32 %v2379_v48, %v5366_v39 }
 0x2dd   : > { %2639 = vmatpush.msra.mxu3 %v2494_v24  ;;  %v2480_v12 = vmax.f32 %v2406_v25, 0.0 }
 0x2de   : > { %v2487_v53 = vmax.f32 %v2380_v31, 0.0 }
 0x2df   : > { %2640 = vmatpush.msra.mxu3 %v2486_v54 }
 0x2e1   : > { %2641 = vmatpush.msra.mxu3 %v2478_v55 }
 0x2e2   : > { %v2408_v61 = vpop.f32.mrf.mxu1  ;;  %3205 = vmatmul.msk.f32.vlgmr.msra.gmra.mxu3 %vm1882_vm1, %v5381_v42 }
 0x2e3   : > { %v2382_v10 = vpop.f32.mrf.mxu0  ;;  %3202 = vmatmul.msk.f32.gmra.mxu2 %vm1882_vm1, %v5392_v38  ;;  %v2409_v33 = vadd.f32 %v2408_v61, %v5366_v39 }
 0x2e4   : > { %v2383_v11 = vadd.f32 %v2382_v10, %v5364_v9 }
 0x2e5   : > { %v2488_v60 = vmax.f32 %v2409_v33, 0.0 }
 0x2e6   : > { %v2495_v29 = vmax.f32 %v2383_v11, 0.0 }
 0x2ea   : > { %v2411_v32 = vpop.f32.mrf.mxu1  ;;  %3206 = vmatmul.msk.f32.gmra.mxu3 %vm1882_vm1, %v5392_v38 }
 0x2eb   : > { %v2385_v8 = vpop.f32.mrf.mxu0  ;;  %3203 = vmatmul.msk.f32.gmra.mxu2 %vm1882_vm1, %v5402_v22  ;;  %v2412_v52 = vadd.f32 %v2411_v32, %v5364_v9 }
 0x2ec   : > { %v2386_v57 = vadd.f32 %v2385_v8, %v5360_v4 }
 0x2ed   : > { %v2496_v17 = vmax.f32 %v2412_v52, 0.0 }
 0x2ee   : > { %v2503_v2 = vmax.f32 %v2386_v57, 0.0 }
 0x2f0   : > { %2667 = vmatpush.msrb.mxu0 %v2503_v2 }
 0x2f2   : > { %v2414_v30 = vpop.f32.mrf.mxu1  ;;  %2668 = vmatpush.msrb.mxu0 %v2495_v29  ;;  %3207 = vmatmul.msk.f32.gmra.mxu3 %vm1882_vm1, %v5402_v22 }
 0x2f3   : > { %v2415_v44 = vadd.f32 %v2414_v30, %v5360_v4  ;;  %3204 = vmatmul.msk.f32.gmra.mxu2 %vm1882_vm1, %v5415_v49 }
 0x2f4   : > { %2669 = vmatpush.msrb.mxu0 %v2487_v53 }
 0x2f5   : > { %v2504_v58 = vmax.f32 %v2415_v44, 0.0 }
 0x2f6   : > { %2670 = vmatpush.msrb.mxu0 %v2479_v37 }
 0x2f7   : > { %2696 = vmatpush.msrb.mxu1 %v2504_v58  ;;  %3209 = vmatmul.msk.f32.vlgmr.msrb.gmra.mxu0 %vm1882_vm1, %v5381_v42 }
 0x2f9   : > { %2697 = vmatpush.msrb.mxu1 %v2496_v17 }
 0x2fa   : > { %3208 = vmatmul.msk.f32.gmra.mxu3 %vm1882_vm1, %v5415_v49 }
 0x2fb   : > { %2698 = vmatpush.msrb.mxu1 %v2488_v60 }
 0x2fd   : > { %2699 = vmatpush.msrb.mxu1 %v2480_v12 }
 0x2fe   : > { %3213 = vmatmul.msk.f32.vlgmr.msrb.gmra.mxu1 %vm1882_vm1, %v5381_v42 }
 0x2ff   : > { %3210 = vmatmul.msk.f32.gmra.mxu0 %vm1882_vm1, %v5392_v38 }
 0x301   : > { %v2434_v35 = vpop.f32.mrf.mxu2 }
 0x302   : > { %v2435_v13 = vadd.f32 %v2434_v35, %v5368_v5 }
 0x304   : > { %v2481_v45 = vmax.f32 %v2435_v13, 0.0 }
 0x306   : > { %3214 = vmatmul.msk.f32.gmra.mxu1 %vm1882_vm1, %v5392_v38 }
 0x307   : > { %3211 = vmatmul.msk.f32.gmra.mxu0 %vm1882_vm1, %v5402_v22  ;;  %v5478_v36 = vpop.permute.xlu2 %2520 }
 0x308   : > { %v2463_v19 = vpop.f32.mrf.mxu3 }
 0x309   : > { %v2437_v62 = vpop.f32.mrf.mxu2  ;;  %v2464_v20 = vadd.f32 %v2463_v19, %v5368_v5 }
 0x30a   : > { %v2438_v14 = vadd.f32 %v2437_v62, %v5366_v39 }
 0x30b   : > { %v2482_v15 = vmax.f32 %v2464_v20, 0.0 }
 0x30c   : > { %v2489_v40 = vmax.f32 %v2438_v14, 0.0 }
 0x30e   : > { %3215 = vmatmul.msk.f32.gmra.mxu1 %vm1882_vm1, %v5402_v22 }
 0x30f   : > { %3212 = vmatmul.msk.f32.gmra.mxu0 %vm1882_vm1, %v5415_v49  ;;  %v5486_v31 = vpop.permute.xlu2 %2512 }
 0x310   : > { %v2466_v59 = vpop.f32.mrf.mxu3 }
 0x311   : > { %v2440_v47 = vpop.f32.mrf.mxu2  ;;  %v2467_v7 = vadd.f32 %v2466_v59, %v5366_v39 }
 0x312   : > { %v2441_v41 = vadd.f32 %v2440_v47, %v5364_v9 }
 0x313   : > { %v2490_v21 = vmax.f32 %v2467_v7, 0.0 }
 0x314   : > { %v2497_v18 = vmax.f32 %v2441_v41, 0.0 }
 0x316   : > { %3216 = vmatmul.msk.f32.gmra.mxu1 %vm1882_vm1, %v5415_v49 }
 0x318   : > { %v2469_v27 = vpop.f32.mrf.mxu3 }
 0x319   : > { %v2443_v34 = vpop.f32.mrf.mxu2  ;;  %v2470_v3 = vadd.f32 %v2469_v27, %v5364_v9 }
 0x31a   : > { %v2444_v23 = vadd.f32 %v2443_v34, %v5360_v4 }
 0x31b   : > { %v2498_v43 = vmax.f32 %v2470_v3, 0.0 }
 0x31c   : > { %v2505_v26 = vmax.f32 %v2444_v23, 0.0 }
 0x31e   : > { %2725 = vmatpush.msrb.mxu2 %v2505_v26 }
 0x31f   : > { %v5476_v24 = vpop.permute.xlu1 %2524 }
 0x320   : > { %v2472_v50 = vpop.f32.mrf.mxu3  ;;  %2726 = vmatpush.msrb.mxu2 %v2497_v18 }
 0x321   : > { %v2473_v46 = vadd.f32 %v2472_v50, %v5360_v4 }
 0x322   : > { %2727 = vmatpush.msrb.mxu2 %v2489_v40 }
 0x323   : > { %v2506_v1 = vmax.f32 %v2473_v46, 0.0 }
 0x324   : > { %2728 = vmatpush.msrb.mxu2 %v2481_v45 }
 0x325   : > { %2754 = vmatpush.msrb.mxu3 %v2506_v1  ;;  %3217 = vmatmul.msk.f32.vlgmr.msrb.gmra.mxu2 %vm1882_vm1, %v5381_v42 }
 0x327   : > { %2755 = vmatpush.msrb.mxu3 %v2498_v43  ;;  %v5482_v11 = vpop.permute.xlu1 %2516 }
 0x329   : > { %2756 = vmatpush.msrb.mxu3 %v2490_v21 }
 0x32b   : > { %2757 = vmatpush.msrb.mxu3 %v2482_v15 }
 0x32c   : > { %3221 = vmatmul.msk.f32.vlgmr.msrb.gmra.mxu3 %vm1882_vm1, %v5381_v42 }
 0x32d   : > { %3218 = vmatmul.msk.f32.gmra.mxu2 %vm1882_vm1, %v5392_v38 }
 0x32e   : > { %v2556_v4 = vpop.f32.mrf.mxu0  ;;  %v2585_v9 = vpop.f32.mrf.mxu1 }
 0x32f   : > { %v2557_v44 = vadd.f32 %v2556_v4, %v5486_v31  ;;  %v2586_v58 = vadd.f32 %v2585_v9, %v5486_v31 }
 0x331   : > { %v2771_v25 = vmax.f32 %v2557_v44, 0.0  ;;  %v2772_v19 = vmax.f32 %v2586_v58, 0.0 }
 0x334   : > { %3222 = vmatmul.msk.f32.gmra.mxu3 %vm1882_vm1, %v5392_v38 }
 0x335   : > { %3219 = vmatmul.msk.f32.gmra.mxu2 %vm1882_vm1, %v5402_v22 }
 0x336   : > { %v2559_v39 = vpop.f32.mrf.mxu0  ;;  %v2588_v5 = vpop.f32.mrf.mxu1 }
 0x337   : > { %v2560_v57 = vadd.f32 %v2559_v39, %v5482_v11 }
 0x339   : > { %v2779_v37 = vmax.f32 %v2560_v57, 0.0 }
 0x33c   : > { %3223 = vmatmul.msk.f32.gmra.mxu3 %vm1882_vm1, %v5402_v22 }
 0x33d   : > { %3220 = vmatmul.msk.f32.gmra.mxu2 %vm1882_vm1, %v5415_v49 }
 0x33e   : > { %v2562_v16 = vpop.f32.mrf.mxu0  ;;  %v2591_v0 = vpop.f32.mrf.mxu1 }
 0x33f   : > { %v2563_v32 = vadd.f32 %v2562_v16, %v5478_v36  ;;  %v2592_v8 = vadd.f32 %v2591_v0, %v5478_v36 }
 0x341   : > { %v2787_v53 = vmax.f32 %v2563_v32, 0.0  ;;  %v2788_v52 = vmax.f32 %v2592_v8, 0.0  ;;  %v3600_v32 = vmov 3  }
 0x342   : > { %3351 = vset.pattern.permute.xlu0 %v3600_v32 }
 0x344   : > { %3224 = vmatmul.msk.f32.gmra.mxu3 %vm1882_vm1, %v5415_v49  ;;  %v2589_v49 = vadd.f32 %v2588_v5, %v5482_v11 }
 0x346   : > { %v2565_v28 = vpop.f32.mrf.mxu0  ;;  %v2594_v48 = vpop.f32.mrf.mxu1  ;;  %v2780_v33 = vmax.f32 %v2589_v49, 0.0 }
 0x347   : > { %v2566_v38 = vadd.f32 %v2565_v28, %v5476_v24  ;;  %v2595_v61 = vadd.f32 %v2594_v48, %v5476_v24 }
 0x349   : > { %v2795_v10 = vmax.f32 %v2566_v38, 0.0  ;;  %v2796_v22 = vmax.f32 %v2595_v61, 0.0  ;;  %v2803_v38 = vld [vmem:[#allocation10] sm:$0xff] }
 0x34b   : > { %2825 = vmatpush.msra.mxu0 %v2795_v10  ;;  %2845 = vmatpush.msra.mxu1 %v2796_v22  ;;  %v2804_v22 = vld [vmem:[%s5567_s6] sm:$0xff] }
 0x34c   : > { %2807 = vperm.xlu0 %3351, %v2804_v22  }
 0x34d   : > { %2826 = vmatpush.msra.mxu0 %v2787_v53  ;;  %2846 = vmatpush.msra.mxu1 %v2788_v52 }
 0x34f   : > { %2827 = vmatpush.msra.mxu0 %v2779_v37  ;;  %2847 = vmatpush.msra.mxu1 %v2780_v33 }
 0x351   : > { %2828 = vmatpush.msra.mxu0 %v2771_v25  ;;  %2848 = vmatpush.msra.mxu1 %v2772_v19 }
 0x352   : > { %3225 = vmatmul.msk.f32.vlgmr.msra.gmra.mxu0 %vm1882_vm1, %v2803_v38  ;;  %3226 = vmatmul.msk.f32.vlgmr.msra.gmra.mxu1 %vm1882_vm1, %v2803_v38 }
 0x35e   : > { %v2614_v42 = vpop.f32.mrf.mxu2 }
 0x35f   : > { %v2615_v35 = vadd.f32 %v2614_v42, %v5486_v31 }
 0x361   : > { %v2773_v34 = vmax.f32 %v2615_v35, 0.0 }
 0x365   : > { %v2643_v56 = vpop.f32.mrf.mxu3 }
 0x366   : > { %v2617_v6 = vpop.f32.mrf.mxu2  ;;  %v2644_v18 = vadd.f32 %v2643_v56, %v5486_v31 }
 0x367   : > { %v2618_v17 = vadd.f32 %v2617_v6, %v5482_v11 }
 0x368   : > { %v2774_v3 = vmax.f32 %v2644_v18, 0.0 }
 0x369   : > { %v2781_v59 = vmax.f32 %v2618_v17, 0.0 }
 0x36d   : > { %v2646_v54 = vpop.f32.mrf.mxu3 }
 0x36e   : > { %v2620_v55 = vpop.f32.mrf.mxu2  ;;  %v2647_v23 = vadd.f32 %v2646_v54, %v5482_v11 }
 0x36f   : > { %v2621_v63 = vadd.f32 %v2620_v55, %v5478_v36 }
 0x370   : > { %v2782_v40 = vmax.f32 %v2647_v23, 0.0 }
 0x371   : > { %v2789_v12 = vmax.f32 %v2621_v63, 0.0 }
 0x374   : > { %v2672_v2 = vpop.f32.mrf.mxu0 }
 0x375   : > { %v2649_v29 = vpop.f32.mrf.mxu3  ;;  %v2673_v56 = vadd.f32 %v2672_v2, %v5486_v31 }
 0x376   : > { %v2623_v30 = vpop.f32.mrf.mxu2  ;;  %v2650_v47 = vadd.f32 %v2649_v29, %v5478_v36 }
 0x377   : > { %v2624_v51 = vadd.f32 %v2623_v30, %v5476_v24  ;;  %v2775_v54 = vmax.f32 %v2673_v56, 0.0 }
 0x378   : > { %v2790_v13 = vmax.f32 %v2650_v47, 0.0 }
 0x379   : > { %v2797_v60 = vmax.f32 %v2624_v51, 0.0 }
 0x37b   : > { %v2701_v62 = vpop.f32.mrf.mxu1  ;;  %2865 = vmatpush.msra.mxu2 %v2797_v60 }
 0x37c   : > { %v2675_v14 = vpop.f32.mrf.mxu0  ;;  %v2702_v6 = vadd.f32 %v2701_v62, %v5486_v31 }
 0x37d   : > { %v2652_v27 = vpop.f32.mrf.mxu3  ;;  %2866 = vmatpush.msra.mxu2 %v2789_v12  ;;  %v2676_v1 = vadd.f32 %v2675_v14, %v5482_v11 }
 0x37e   : > { %v2653_v41 = vadd.f32 %v2652_v27, %v5476_v24  ;;  %v2776_v48 = vmax.f32 %v2702_v6, 0.0 }
 0x37f   : > { %2867 = vmatpush.msra.mxu2 %v2781_v59  ;;  %v2783_v9 = vmax.f32 %v2676_v1, 0.0 }
 0x380   : > { %v2798_v26 = vmax.f32 %v2653_v41, 0.0 }
 0x381   : > { %2868 = vmatpush.msra.mxu2 %v2773_v34 }
 0x382   : > { %2885 = vmatpush.msra.mxu3 %v2798_v26  ;;  %3227 = vmatmul.msk.f32.vlgmr.msra.gmra.mxu2 %vm1882_vm1, %v2803_v38 }
 0x383   : > { %v2704_v50 = vpop.f32.mrf.mxu1 }
 0x384   : > { %2886 = vmatpush.msra.mxu3 %v2790_v13  ;;  %v2678_v46 = vpop.f32.mrf.mxu0  ;;  %v2705_v39 = vadd.f32 %v2704_v50, %v5482_v11 }
 0x385   : > { %v2679_v43 = vadd.f32 %v2678_v46, %v5478_v36 }
 0x386   : > { %2887 = vmatpush.msra.mxu3 %v2782_v40  ;;  %v2784_v28 = vmax.f32 %v2705_v39, 0.0 }
 0x387   : > { %v2791_v5 = vmax.f32 %v2679_v43, 0.0 }
 0x388   : > { %2888 = vmatpush.msra.mxu3 %v2774_v3 }
 0x389   : > { %3228 = vmatmul.msk.f32.vlgmr.msra.gmra.mxu3 %vm1882_vm1, %v2803_v38 }
 0x38b   : > { %v2707_v45 = vpop.f32.mrf.mxu1 }
 0x38c   : > { %v2681_v7 = vpop.f32.mrf.mxu0  ;;  %v2708_v21 = vadd.f32 %v2707_v45, %v5478_v36 }
 0x38d   : > { %v2682_v20 = vadd.f32 %v2681_v7, %v5476_v24 }
 0x38e   : > { %v2792_v16 = vmax.f32 %v2708_v21, 0.0 }
 0x38f   : > { %v2799_v15 = vmax.f32 %v2682_v20, 0.0 }
 0x391   : > { %2905 = vmatpush.msrb.mxu0 %v2799_v15 }
 0x393   : > { %v2710_v4 = vpop.f32.mrf.mxu1  ;;  %2906 = vmatpush.msrb.mxu0 %v2791_v5 }
 0x394   : > { %v2711_v42 = vadd.f32 %v2710_v4, %v5476_v24 }
 0x395   : > { %2907 = vmatpush.msrb.mxu0 %v2783_v9 }
 0x396   : > { %v2800_v0 = vmax.f32 %v2711_v42, 0.0 }
 0x397   : > { %2908 = vmatpush.msrb.mxu0 %v2775_v54 }
 0x398   : > { %2925 = vmatpush.msrb.mxu1 %v2800_v0  ;;  %3229 = vmatmul.msk.f32.vlgmr.msrb.gmra.mxu0 %vm1882_vm1, %v2803_v38 }
 0x39a   : > { %2926 = vmatpush.msrb.mxu1 %v2792_v16 }
 0x39c   : > { %2927 = vmatpush.msrb.mxu1 %v2784_v28 }
 0x39e   : > { %2928 = vmatpush.msrb.mxu1 %v2776_v48 }
 0x39f   : > { %3230 = vmatmul.msk.f32.vlgmr.msrb.gmra.mxu1 %vm1882_vm1, %v2803_v38 }
 0x3a8   : > { %v2730_v55 = vpop.f32.mrf.mxu2 }
 0x3a9   : > { %v2731_v30 = vadd.f32 %v2730_v55, %v5486_v31 }
 0x3ab   : > { %v2777_v58 = vmax.f32 %v2731_v30, 0.0 }
 0x3af   : > { %v2759_v61 = vpop.f32.mrf.mxu3 }
 0x3b0   : > { %v2733_v10 = vpop.f32.mrf.mxu2  ;;  %v2760_v12 = vadd.f32 %v2759_v61, %v5486_v31 }
 0x3b1   : > { %v2734_v53 = vadd.f32 %v2733_v10, %v5482_v11 }
 0x3b2   : > { %v2778_v62 = vmax.f32 %v2760_v12, 0.0 }
 0x3b3   : > { %v2785_v33 = vmax.f32 %v2734_v53, 0.0 }
 0x3b7   : > { %v2762_v8 = vpop.f32.mrf.mxu3 }
 0x3b8   : > { %v2736_v57 = vpop.f32.mrf.mxu2  ;;  %v2763_v25 = vadd.f32 %v2762_v8, %v5482_v11 }
 0x3b9   : > { %v2737_v2 = vadd.f32 %v2736_v57, %v5478_v36 }
 0x3ba   : > { %v2786_v19 = vmax.f32 %v2763_v25, 0.0 }
 0x3bb   : > { %v2793_v37 = vmax.f32 %v2737_v2, 0.0 }
 0x3bf   : > { %v2765_v49 = vpop.f32.mrf.mxu3 }
 0x3c0   : > { %v2739_v29 = vpop.f32.mrf.mxu2  ;;  %v2766_v51 = vadd.f32 %v2765_v49, %v5478_v36 }
 0x3c1   : > { %v2740_v63 = vadd.f32 %v2739_v29, %v5476_v24 }
 0x3c2   : > { %v2794_v35 = vmax.f32 %v2766_v51, 0.0 }
 0x3c3   : > { %v2801_v52 = vmax.f32 %v2740_v63, 0.0 }
 0x3c5   : > { %2945 = vmatpush.msrb.mxu2 %v2801_v52 }
 0x3c7   : > { %v2768_v44 = vpop.f32.mrf.mxu3  ;;  %2946 = vmatpush.msrb.mxu2 %v2793_v37 }
 0x3c8   : > { %v2769_v17 = vadd.f32 %v2768_v44, %v5476_v24  ;;  %v2808_v24 = vpop.permute.xlu0 %2807 }
 0x3c9   : > { %2947 = vmatpush.msrb.mxu2 %v2785_v33 }
 0x3ca   : > { %v2802_v60 = vmax.f32 %v2769_v17, 0.0 }
 0x3cb   : > { %2948 = vmatpush.msrb.mxu2 %v2777_v58 }
 0x3cc   : > { %2965 = vmatpush.msrb.mxu3 %v2802_v60  ;;  %3231 = vmatmul.msk.f32.vlgmr.msrb.gmra.mxu2 %vm1882_vm1, %v2803_v38 }
 0x3ce   : > { %2966 = vmatpush.msrb.mxu3 %v2794_v35 }
 0x3cf   : > { %v2830_v36 = vpop.f32.mrf.mxu0  ;;  %v2850_v59 = vpop.f32.mrf.mxu1 }
 0x3d0   : > { %2967 = vmatpush.msrb.mxu3 %v2786_v19  ;;  %v2831_v11 = vadd.f32 %v2830_v36, %v2808_v24  ;;  %v2851_v47 = vadd.f32 %v2850_v59, %v2808_v24 }
 0x3d2   : > { %2968 = vmatpush.msrb.mxu3 %v2778_v62  ;;  %2973 = vst [vmem:[%s360_s19] sm:$0xff] %v2831_v11 }
 0x3d3   : > { %3232 = vmatmul.msk.f32.vlgmr.msrb.gmra.mxu3 %vm1882_vm1, %v2803_v38  ;;  %2974 = vst [vmem:[%s360_s19 + $0x8] sm:$0xff] %v2851_v47 }
 0x405   : > { %v2870_v31 = vpop.f32.mrf.mxu2 }
 0x406   : > { %v2871_v34 = vadd.f32 %v2870_v31, %v2808_v24 }
 0x408   : > { %2975 = vst [vmem:[%s360_s19 + $0x10] sm:$0xff] %v2871_v34 }
 0x40c   : > { %v2890_v27 = vpop.f32.mrf.mxu3 }
 0x40d   : > { %v2891_v41 = vadd.f32 %v2890_v27, %v2808_v24 }
 0x40f   : > { %2976 = vst [vmem:[%s360_s19 + $0x18] sm:$0xff] %v2891_v41 }
 0x415   : > { %v2910_v23 = vpop.f32.mrf.mxu0 }
 0x416   : > { %v2911_v26 = vadd.f32 %v2910_v23, %v2808_v24 }
 0x418   : > { %2977 = vst [vmem:[%s360_s19 + $0x20] sm:$0xff] %v2911_v26 }
 0x41c   : > { %v2930_v14 = vpop.f32.mrf.mxu1 }
 0x41d   : > { %v2931_v13 = vadd.f32 %v2930_v14, %v2808_v24 }
 0x41f   : > { %2978 = vst [vmem:[%s360_s19 + $0x28] sm:$0xff] %v2931_v13 }
 0x44f   : > { %v2950_v18 = vpop.f32.mrf.mxu2 }
 0x450   : > { %v2951_v40 = vadd.f32 %v2950_v18, %v2808_v24 }
 0x452   : > { %2979 = vst [vmem:[%s360_s19 + $0x30] sm:$0xff] %v2951_v40 }
 0x456   : > { %v2970_v50 = vpop.f32.mrf.mxu3 }
 0x457   : > { %v2971_v3 = vadd.f32 %v2970_v50, %v2808_v24 }
 0x459   : > { %2980 = vst [vmem:[%s360_s19 + $0x38] sm:$0xff] %v2971_v3 }
 0x45a   : > { %3535 = shalt.err (!%p3532_p9)
}
 0x45b   : > { %3262 = dma.vmem_to_hbm [thread:$0]  (%p3715_p12), %s2996_s12, 1024, %s2998_s22, %s2982_s3  }
 0x45c PF: > { %s3009_s29 = sand.u32 1, %s3574_s24   ;;  %p5675_p10 = scmp.ge.s32.totalorder %s3586_s27, 2 }
 0x45d   : > { %s3010_s14 = scalar_lea.sflag [#allocation4], %s3009_s29 }
 0x45e   : > { %p3282_p11 = pnand %p5675_p10, %p3734_p7 }
 0x460   : > { %p3283_p0 = pneg %p3282_p11 }
 0x462   : > { %3569 = dma.done.wait (%p3283_p0), %s3010_s14, 1024  }
 0x463   : > { %3571 = vsyncadd (%p3283_p0), %s3010_s14, 4294966272  ;;  %p22_p3 = scmp.ge.s32.totalorder %s3703_s17, 4   ;;  %s5676_s24 = smov %s3578_s25 }
 0x464   : > { %s5677_s25 = smov %s3582_s26  ;;  %s5678_s26 = smov %s3720_s15 }
 0x465   : > { %s5679_s27 = smov %s3703_s17  ;;  %24 = sbr.rel (!%p22_p3) target bundleno = 10 (0xa), region = 112 }
 0x46a   :  { %3016 = vsyncpa [#allocation3], 1 }
 0x46b   :  { %3018 = vsyncpa [#allocation3 + $0x1], 1 }
 0x46c   :  { %3019 = vsyncpa [#allocation6], 1 }
 0x46d   :  { %3021 = vsyncpa [#allocation6 + $0x1], 1 }
 0x46e   :  { %3022 = vsyncpa [#allocation9], 1 }
 0x46f   :  { %3023 = vsyncpa [#allocation4], 1 }
 0x470   :  { %3025 = vsyncpa [#allocation4 + $0x1], 1 }

</bundles_post_ra>
